<compile_context>
chip_gen: v5e
topology: v5e:2x2
jax: 0.10.0
libtpu: 0.0.40
codegen_flags: <defaults>
</compile_context>

<pallas_src>
import functools

import jax
import jax.numpy as jnp
import numpy as np
from jax import lax
from jax.experimental import pallas as pl
from jax.experimental.pallas import tpu as pltpu

# ----------------------------- dimensions -----------------------------------
B = 2            # batch
T = 8            # max sequence length
INPUT_DIM = 8
HIDDEN_DIM = 32
ENC_DIM = 16     # encoding_dim
OUT_DIM = 4      # output_dim (classifier)
N_LAYERS = 2
CLS_HID = 32     # classifier MLP hidden width (fixed to 32 in the module)

# ------------------------- packed-parameter slab layout ----------------------
# One f32 slab of shape (R_TOTAL, 3*128).  Gated weight matrices are stored
# transposed (act @ W) with each gate occupying a 128-lane block (lanes
# [g*128, g*128+32) used, rest zero).  All section row offsets are 8-aligned.
GATE_PAD = 128
NG = 3 * GATE_PAD                       # 384 lanes

R_WIH0 = 0                               # (INPUT_DIM, NG)
R_WHH0 = R_WIH0 + INPUT_DIM              # (HIDDEN_DIM, NG)
R_WIH1 = R_WHH0 + HIDDEN_DIM
R_WHH1 = R_WIH1 + HIDDEN_DIM
R_WMU = R_WHH1 + HIDDEN_DIM              # (HIDDEN_DIM, ENC_DIM) in lanes 0:16
R_WC1 = R_WMU + HIDDEN_DIM               # (ENC_DIM, CLS_HID)    in lanes 0:32
R_WC2 = R_WC1 + ENC_DIM                  # (CLS_HID, OUT_DIM)    in lanes 0:4
R_BIAS = R_WC2 + CLS_HID                 # 8 bias rows
B_GRU0 = R_BIAS + 0                      # layer0: [bih_r+bhh_r | bih_z+bhh_z | bih_n]
B_GRU0_HN = R_BIAS + 1                   # layer0: bhh_n at lanes [256:288)
B_GRU1 = R_BIAS + 2
B_GRU1_HN = R_BIAS + 3
B_MU = R_BIAS + 4                        # lanes 0:16
B_C1 = R_BIAS + 5                        # lanes 0:32
B_C2 = R_BIAS + 6                        # lanes 0:4
R_TOTAL = R_BIAS + 8                     # 192 rows -> (192, 384) f32 ~ 288 KB


# ------------------------------ kernel ---------------------------------------
def rvae_kernel(x_ref, len_ref, slab_ref, y_ref, *, t_steps, batch):
    H, GP = HIDDEN_DIM, GATE_PAD

    # ---- hoisted GRU biases (tiny, live across the loop) ---------------------
    b0 = slab_ref[B_GRU0:B_GRU0 + 1, :]                               # (1, NG)
    bhh0n = slab_ref[B_GRU0_HN:B_GRU0_HN + 1, 2 * GP:2 * GP + H]      # (1, H)
    b1 = slab_ref[B_GRU1:B_GRU1 + 1, :]
    bhh1n = slab_ref[B_GRU1_HN:B_GRU1_HN + 1, 2 * GP:2 * GP + H]

    # ---- layer-0 input projection hoisted out of the recurrence -------------
    # One (T*B, IN) @ (IN, NG) matmul covers all timesteps (r/z biases are
    # pre-summed into b0; the n-gate bhh is added inside the gate update).
    wih0 = slab_ref[R_WIH0:R_WIH0 + INPUT_DIM, :]                     # (IN, NG)
    gi0_all = jnp.dot(x_ref[...], wih0,
                      preferred_element_type=jnp.float32) + b0        # (T*B, NG)

    # ---- per-step valid masks precomputed once ------------------------------
    lens = len_ref[...]                                               # (B, 1)
    masks = (lax.broadcasted_iota(jnp.int32, (t_steps, batch, 1), 0)
             < lens[None, :, :])                                      # (T, B, 1)

    def gru_update(gi, gh, bhhn, h):
        # Gate slices start at 128-lane boundaries -> plain sub-vreg selects,
        # no cross-lane shuffles.
        r = jax.nn.sigmoid(gi[:, 0:H] + gh[:, 0:H])
        z = jax.nn.sigmoid(gi[:, GP:GP + H] + gh[:, GP:GP + H])
        n = jnp.tanh(gi[:, 2 * GP:2 * GP + H]
                     + r * (gh[:, 2 * GP:2 * GP + H] + bhhn))
        return (1.0 - z) * n + z * h

    h0 = jnp.zeros((batch, H), jnp.float32)
    h1 = jnp.zeros((batch, H), jnp.float32)

    # Fully unrolled time loop (T is a compile-time constant): the scheduler
    # can overlap layer-0 of step t+1 with layer-1 of step t and hide the EUP
    # sigmoid/tanh under MXU latency.  The recurrent weight tiles are streamed
    # from VMEM at their point of use (too large to stay vreg-resident).
    for t in range(t_steps):
        m = masks[t]                                                  # (B, 1)
        gi0 = gi0_all[t * batch:(t + 1) * batch, :]                   # (B, NG)
        gh0 = jnp.dot(h0, slab_ref[R_WHH0:R_WHH0 + H, :],
                      preferred_element_type=jnp.float32)
        h0 = jnp.where(m, gru_update(gi0, gh0, bhh0n, h0), h0)

        gi1 = jnp.dot(h0, slab_ref[R_WIH1:R_WIH1 + H, :],
                      preferred_element_type=jnp.float32) + b1
        gh1 = jnp.dot(h1, slab_ref[R_WHH1:R_WHH1 + H, :],
                      preferred_element_type=jnp.float32)
        h1 = jnp.where(m, gru_update(gi1, gh1, bhh1n, h1), h1)

    # ---- fc_mu + classifier head --------------------------------------------
    # Head weight/bias loads are issued AFTER the recurrence so they are not
    # live (and eating vregs) across the unrolled time loop.
    wmu = slab_ref[R_WMU:R_WMU + H, 0:ENC_DIM]                        # (H, ENC)
    bmu = slab_ref[B_MU:B_MU + 1, 0:ENC_DIM]
    wc1 = slab_ref[R_WC1:R_WC1 + ENC_DIM, 0:CLS_HID]
    bc1 = slab_ref[B_C1:B_C1 + 1, 0:CLS_HID]
    wc2 = slab_ref[R_WC2:R_WC2 + CLS_HID, 0:OUT_DIM]
    bc2 = slab_ref[B_C2:B_C2 + 1, 0:OUT_DIM]

    mu = jnp.dot(h1, wmu, preferred_element_type=jnp.float32) + bmu
    hc = jnp.maximum(
        jnp.dot(mu, wc1, preferred_element_type=jnp.float32) + bc1, 0.0)
    y = jax.nn.sigmoid(
        jnp.dot(hc, wc2, preferred_element_type=jnp.float32) + bc2)
    y_ref[...] = y.astype(y_ref.dtype)


def rvae_forward(x_tm, lengths, slab):
    """x_tm: (T, B, INPUT_DIM) f32 time-major; lengths: (B, 1) i32; slab: packed params."""
    x2d = x_tm.reshape(T * B, INPUT_DIM)          # row index = t*B + b
    vmem = pl.BlockSpec(memory_space=pltpu.MemorySpace.VMEM)
    return pl.pallas_call(
        functools.partial(rvae_kernel, t_steps=T, batch=B),
        out_shape=jax.ShapeDtypeStruct((B, OUT_DIM), jnp.float32),
        in_specs=[vmem, vmem, vmem],
        out_specs=vmem,
    )(x2d, lengths, slab)


# --------------------------- host-side param packing --------------------------
def pack_params(p):
    """Pack all weights/biases (PyTorch layout) into one 128-lane slab (one DMA)."""
    H, GP = HIDDEN_DIM, GATE_PAD
    slab = np.zeros((R_TOTAL, NG), np.float32)

    def put_gated(row, w):                        # w: (3H, Din) PyTorch layout
        wt = np.asarray(w).T                      # (Din, 3H), gate order r|z|n
        for g in range(3):
            slab[row:row + wt.shape[0], g * GP:g * GP + H] = \
                wt[:, g * H:(g + 1) * H]

    put_gated(R_WIH0, p["w_ih_l0"])
    put_gated(R_WHH0, p["w_hh_l0"])
    put_gated(R_WIH1, p["w_ih_l1"])
    put_gated(R_WHH1, p["w_hh_l1"])

    def put_gate_bias(row, b_ih, b_hh):
        bi, bh = np.asarray(b_ih), np.asarray(b_hh)
        slab[row, 0 * GP:0 * GP + H] = bi[0:H] + bh[0:H]              # r pre-sum
        slab[row, 1 * GP:1 * GP + H] = bi[H:2 * H] + bh[H:2 * H]      # z pre-sum
        slab[row, 2 * GP:2 * GP + H] = bi[2 * H:3 * H]                # n: b_ih
        slab[row + 1, 2 * GP:2 * GP + H] = bh[2 * H:3 * H]            # n: b_hh

    put_gate_bias(B_GRU0, p["b_ih_l0"], p["b_hh_l0"])
    put_gate_bias(B_GRU1, p["b_ih_l1"], p["b_hh_l1"])

    slab[R_WMU:R_WMU + H, 0:ENC_DIM] = np.asarray(p["w_mu"]).T
    slab[B_MU, 0:ENC_DIM] = np.asarray(p["b_mu"])
    slab[R_WC1:R_WC1 + ENC_DIM, 0:CLS_HID] = np.asarray(p["w_c1"]).T
    slab[B_C1, 0:CLS_HID] = np.asarray(p["b_c1"])
    slab[R_WC2:R_WC2 + CLS_HID, 0:OUT_DIM] = np.asarray(p["w_c2"]).T
    slab[B_C2, 0:OUT_DIM] = np.asarray(p["b_c2"])
    return jnp.asarray(slab)


# --------------------------- pure-JAX reference -------------------------------
def _gru_cell_ref(x_t, h, w_ih, w_hh, b_ih, b_hh):
    H = HIDDEN_DIM
    gi = x_t @ w_ih.T + b_ih
    gh = h @ w_hh.T + b_hh
    r = jax.nn.sigmoid(gi[:, 0:H] + gh[:, 0:H])
    z = jax.nn.sigmoid(gi[:, H:2 * H] + gh[:, H:2 * H])
    n = jnp.tanh(gi[:, 2 * H:3 * H] + r * gh[:, 2 * H:3 * H])
    return (1.0 - z) * n + z * h


def rvae_reference(x_tm, lengths, p):
    h0 = jnp.zeros((B, HIDDEN_DIM), jnp.float32)
    h1 = jnp.zeros((B, HIDDEN_DIM), jnp.float32)
    for t in range(T):
        m = t < lengths                                              # (B, 1)
        h0n = _gru_cell_ref(x_tm[t], h0, p["w_ih_l0"], p["w_hh_l0"],
                            p["b_ih_l0"], p["b_hh_l0"])
        h0 = jnp.where(m, h0n, h0)
        h1n = _gru_cell_ref(h0, h1, p["w_ih_l1"], p["w_hh_l1"],
                            p["b_ih_l1"], p["b_hh_l1"])
        h1 = jnp.where(m, h1n, h1)
    mu = h1 @ p["w_mu"].T + p["b_mu"]
    hc = jnp.maximum(mu @ p["w_c1"].T + p["b_c1"], 0.0)
    return jax.nn.sigmoid(hc @ p["w_c2"].T + p["b_c2"])


# ------------------------------ param init -----------------------------------
def init_params(key):
    def uni(k, shape, bound):
        return jax.random.uniform(k, shape, jnp.float32, -bound, bound)

    ks = jax.random.split(key, 16)
    kg = 1.0 / np.sqrt(HIDDEN_DIM)
    return {
        # GRU layer 0 (PyTorch layout: (3H, Din), gate order r|z|n)
        "w_ih_l0": uni(ks[0], (3 * HIDDEN_DIM, INPUT_DIM), kg),
        "w_hh_l0": uni(ks[1], (3 * HIDDEN_DIM, HIDDEN_DIM), kg),
        "b_ih_l0": uni(ks[2], (3 * HIDDEN_DIM,), kg),
        "b_hh_l0": uni(ks[3], (3 * HIDDEN_DIM,), kg),
        # GRU layer 1
        "w_ih_l1": uni(ks[4], (3 * HIDDEN_DIM, HIDDEN_DIM), kg),
        "w_hh_l1": uni(ks[5], (3 * HIDDEN_DIM, HIDDEN_DIM), kg),
        "b_ih_l1": uni(ks[6], (3 * HIDDEN_DIM,), kg),
        "b_hh_l1": uni(ks[7], (3 * HIDDEN_DIM,), kg),
        # fc_mu
        "w_mu": uni(ks[8], (ENC_DIM, HIDDEN_DIM), kg),
        "b_mu": uni(ks[9], (ENC_DIM,), kg),
        # classifier
        "w_c1": uni(ks[10], (CLS_HID, ENC_DIM), 1.0 / np.sqrt(ENC_DIM)),
        "b_c1": uni(ks[11], (CLS_HID,), 1.0 / np.sqrt(ENC_DIM)),
        "w_c2": uni(ks[12], (OUT_DIM, CLS_HID), 1.0 / np.sqrt(CLS_HID)),
        "b_c2": uni(ks[13], (OUT_DIM,), 1.0 / np.sqrt(CLS_HID)),
    }


# --------------------------------- main ---------------------------------------
if __name__ == "__main__":
    key = jax.random.PRNGKey(0)
    kx, kp = jax.random.split(key)

    # Padded batch, batch-first like PyTorch (B, T, input_dim); lengths sorted
    # descending (pack_padded_sequence's default requirement).
    x_bf = jax.random.normal(kx, (B, T, INPUT_DIM), jnp.float32)
    lengths_np = np.array([T, 5], dtype=np.int32)
    valid = (np.arange(T)[None, :] < lengths_np[:, None]).astype(np.float32)
    x_bf = x_bf * jnp.asarray(valid)[:, :, None]       # zero padded region

    x_tm = jnp.transpose(x_bf, (1, 0, 2))               # (T, B, input_dim)
    lengths = jnp.asarray(lengths_np).reshape(B, 1)     # (B, 1) int32

    params = init_params(kp)
    slab = pack_params(params)

    y = rvae_forward(x_tm, lengths, slab)
    y = jax.block_until_ready(y)

    y_ref = rvae_reference(x_tm, lengths, params)
    np.testing.assert_allclose(np.asarray(y), np.asarray(y_ref),
                               rtol=1e-5, atol=1e-5)
    assert y.shape == (B, OUT_DIM)

    print("KERNEL_OK")
</pallas_src>

<mosaic_0001>
module attributes {stable_mosaic.version = 11 : i64} {
  func.func @rvae_kernel(%arg0: memref<16x8xf32, #tpu.memory_space<vmem>>, %arg1: memref<2x1xi32, #tpu.memory_space<vmem>>, %arg2: memref<192x384xf32, #tpu.memory_space<vmem>>, %arg3: memref<2x4xf32, #tpu.memory_space<vmem>>) attributes {dimension_semantics = [], scalar_prefetch = 0 : i64, scratch_operands = 0 : i64, tpu.core_type = #tpu.core_type<tc>} {
    %c184 = arith.constant 184 : index
    %c0 = arith.constant 0 : index
    %0 = vector.load %arg2[%c184, %c0] : memref<192x384xf32, #tpu.memory_space<vmem>>, vector<1x384xf32>
    %c185 = arith.constant 185 : index
    %c256 = arith.constant 256 : index
    %1 = vector.load %arg2[%c185, %c256] : memref<192x384xf32, #tpu.memory_space<vmem>>, vector<1x32xf32>
    %c186 = arith.constant 186 : index
    %c0_0 = arith.constant 0 : index
    %2 = vector.load %arg2[%c186, %c0_0] : memref<192x384xf32, #tpu.memory_space<vmem>>, vector<1x384xf32>
    %c187 = arith.constant 187 : index
    %c256_1 = arith.constant 256 : index
    %3 = vector.load %arg2[%c187, %c256_1] : memref<192x384xf32, #tpu.memory_space<vmem>>, vector<1x32xf32>
    %c0_2 = arith.constant 0 : index
    %c0_3 = arith.constant 0 : index
    %4 = vector.load %arg2[%c0_2, %c0_3] : memref<192x384xf32, #tpu.memory_space<vmem>>, vector<8x384xf32>
    %c0_4 = arith.constant 0 : index
    %c0_5 = arith.constant 0 : index
    %5 = vector.load %arg0[%c0_4, %c0_5] : memref<16x8xf32, #tpu.memory_space<vmem>>, vector<16x8xf32>
    %cst = arith.constant dense<0.000000e+00> : vector<16x384xf32>
    %6 = tpu.matmul %5, %4, %cst {dimension_numbers = #tpu.dot_dimension_numbers<[1], [0], [0], [1], [0, 0, 1, 1], [], []>} : vector<16x8xf32>, vector<8x384xf32>, vector<16x384xf32> -> vector<16x384xf32>
    %7 = vector.broadcast %0 : vector<1x384xf32> to vector<16x384xf32>
    %8 = arith.addf %6, %7 : vector<16x384xf32>
    %c0_6 = arith.constant 0 : index
    %c0_7 = arith.constant 0 : index
    %9 = vector.load %arg1[%c0_6, %c0_7] : memref<2x1xi32, #tpu.memory_space<vmem>>, vector<2x1xi32>
    %10 = tpu.iota {dimensions = array<i32: 0>} : vector<8x2x1xi32>
    %11 = vector.shape_cast %9 : vector<2x1xi32> to vector<1x2x1xi32>
    %12 = vector.broadcast %11 : vector<1x2x1xi32> to vector<8x2x1xi32>
    %13 = arith.cmpi slt, %10, %12 : vector<8x2x1xi32>
    %cst_8 = arith.constant 0.000000e+00 : f32
    %14 = vector.broadcast %cst_8 : f32 to vector<2x32xf32>
    %cst_9 = arith.constant 0.000000e+00 : f32
    %15 = vector.broadcast %cst_9 : f32 to vector<2x32xf32>
    %16 = vector.extract_strided_slice %13 {offsets = [0, 0, 0], sizes = [1, 2, 1], strides = [1, 1, 1]} : vector<8x2x1xi1> to vector<1x2x1xi1>
    %17 = vector.shape_cast %16 : vector<1x2x1xi1> to vector<2x1xi1>
    %18 = vector.extract_strided_slice %8 {offsets = [0, 0], sizes = [2, 384], strides = [1, 1]} : vector<16x384xf32> to vector<2x384xf32>
    %c8 = arith.constant 8 : index
    %c0_10 = arith.constant 0 : index
    %19 = vector.load %arg2[%c8, %c0_10] : memref<192x384xf32, #tpu.memory_space<vmem>>, vector<32x384xf32>
    %cst_11 = arith.constant dense<0.000000e+00> : vector<2x384xf32>
    %20 = tpu.matmul %14, %19, %cst_11 {dimension_numbers = #tpu.dot_dimension_numbers<[1], [0], [0], [1], [0, 0, 1, 1], [], []>} : vector<2x32xf32>, vector<32x384xf32>, vector<2x384xf32> -> vector<2x384xf32>
    %21 = vector.extract_strided_slice %18 {offsets = [0, 0], sizes = [2, 32], strides = [1, 1]} : vector<2x384xf32> to vector<2x32xf32>
    %22 = vector.extract_strided_slice %20 {offsets = [0, 0], sizes = [2, 32], strides = [1, 1]} : vector<2x384xf32> to vector<2x32xf32>
    %23 = arith.addf %21, %22 : vector<2x32xf32>
    %24 = arith.negf %23 : vector<2x32xf32>
    %25 = math.exp %24 : vector<2x32xf32>
    %cst_12 = arith.constant 1.000000e+00 : f32
    %26 = vector.broadcast %cst_12 : f32 to vector<2x32xf32>
    %27 = arith.addf %26, %25 : vector<2x32xf32>
    %28 = arith.divf %26, %27 : vector<2x32xf32>
    %29 = vector.extract_strided_slice %18 {offsets = [0, 128], sizes = [2, 32], strides = [1, 1]} : vector<2x384xf32> to vector<2x32xf32>
    %30 = vector.extract_strided_slice %20 {offsets = [0, 128], sizes = [2, 32], strides = [1, 1]} : vector<2x384xf32> to vector<2x32xf32>
    %31 = arith.addf %29, %30 : vector<2x32xf32>
    %32 = arith.negf %31 : vector<2x32xf32>
    %33 = math.exp %32 : vector<2x32xf32>
    %cst_13 = arith.constant 1.000000e+00 : f32
    %34 = vector.broadcast %cst_13 : f32 to vector<2x32xf32>
    %35 = arith.addf %34, %33 : vector<2x32xf32>
    %36 = arith.divf %34, %35 : vector<2x32xf32>
    %37 = vector.extract_strided_slice %18 {offsets = [0, 256], sizes = [2, 32], strides = [1, 1]} : vector<2x384xf32> to vector<2x32xf32>
    %38 = vector.extract_strided_slice %20 {offsets = [0, 256], sizes = [2, 32], strides = [1, 1]} : vector<2x384xf32> to vector<2x32xf32>
    %39 = vector.broadcast %1 : vector<1x32xf32> to vector<2x32xf32>
    %40 = arith.addf %38, %39 : vector<2x32xf32>
    %41 = arith.mulf %28, %40 : vector<2x32xf32>
    %42 = arith.addf %37, %41 : vector<2x32xf32>
    %43 = math.tanh %42 : vector<2x32xf32>
    %cst_14 = arith.constant 1.000000e+00 : f32
    %44 = vector.broadcast %cst_14 : f32 to vector<2x32xf32>
    %45 = arith.subf %44, %36 : vector<2x32xf32>
    %46 = arith.mulf %45, %43 : vector<2x32xf32>
    %47 = arith.mulf %36, %14 : vector<2x32xf32>
    %48 = arith.addf %46, %47 : vector<2x32xf32>
    %49 = vector.shape_cast %17 : vector<2x1xi1> to vector<2x1xi1>
    %50 = vector.broadcast %49 : vector<2x1xi1> to vector<2x32xi1>
    %51 = arith.select %50, %48, %14 : vector<2x32xi1>, vector<2x32xf32>
    %c40 = arith.constant 40 : index
    %c0_15 = arith.constant 0 : index
    %52 = vector.load %arg2[%c40, %c0_15] : memref<192x384xf32, #tpu.memory_space<vmem>>, vector<32x384xf32>
    %cst_16 = arith.constant dense<0.000000e+00> : vector<2x384xf32>
    %53 = tpu.matmul %51, %52, %cst_16 {dimension_numbers = #tpu.dot_dimension_numbers<[1], [0], [0], [1], [0, 0, 1, 1], [], []>} : vector<2x32xf32>, vector<32x384xf32>, vector<2x384xf32> -> vector<2x384xf32>
    %54 = vector.broadcast %2 : vector<1x384xf32> to vector<2x384xf32>
    %55 = arith.addf %53, %54 : vector<2x384xf32>
    %c72 = arith.constant 72 : index
    %c0_17 = arith.constant 0 : index
    %56 = vector.load %arg2[%c72, %c0_17] : memref<192x384xf32, #tpu.memory_space<vmem>>, vector<32x384xf32>
    %cst_18 = arith.constant dense<0.000000e+00> : vector<2x384xf32>
    %57 = tpu.matmul %15, %56, %cst_18 {dimension_numbers = #tpu.dot_dimension_numbers<[1], [0], [0], [1], [0, 0, 1, 1], [], []>} : vector<2x32xf32>, vector<32x384xf32>, vector<2x384xf32> -> vector<2x384xf32>
    %58 = vector.extract_strided_slice %55 {offsets = [0, 0], sizes = [2, 32], strides = [1, 1]} : vector<2x384xf32> to vector<2x32xf32>
    %59 = vector.extract_strided_slice %57 {offsets = [0, 0], sizes = [2, 32], strides = [1, 1]} : vector<2x384xf32> to vector<2x32xf32>
    %60 = arith.addf %58, %59 : vector<2x32xf32>
    %61 = arith.negf %60 : vector<2x32xf32>
    %62 = math.exp %61 : vector<2x32xf32>
    %cst_19 = arith.constant 1.000000e+00 : f32
    %63 = vector.broadcast %cst_19 : f32 to vector<2x32xf32>
    %64 = arith.addf %63, %62 : vector<2x32xf32>
    %65 = arith.divf %63, %64 : vector<2x32xf32>
    %66 = vector.extract_strided_slice %55 {offsets = [0, 128], sizes = [2, 32], strides = [1, 1]} : vector<2x384xf32> to vector<2x32xf32>
    %67 = vector.extract_strided_slice %57 {offsets = [0, 128], sizes = [2, 32], strides = [1, 1]} : vector<2x384xf32> to vector<2x32xf32>
    %68 = arith.addf %66, %67 : vector<2x32xf32>
    %69 = arith.negf %68 : vector<2x32xf32>
    %70 = math.exp %69 : vector<2x32xf32>
    %cst_20 = arith.constant 1.000000e+00 : f32
    %71 = vector.broadcast %cst_20 : f32 to vector<2x32xf32>
    %72 = arith.addf %71, %70 : vector<2x32xf32>
    %73 = arith.divf %71, %72 : vector<2x32xf32>
    %74 = vector.extract_strided_slice %55 {offsets = [0, 256], sizes = [2, 32], strides = [1, 1]} : vector<2x384xf32> to vector<2x32xf32>
    %75 = vector.extract_strided_slice %57 {offsets = [0, 256], sizes = [2, 32], strides = [1, 1]} : vector<2x384xf32> to vector<2x32xf32>
    %76 = vector.broadcast %3 : vector<1x32xf32> to vector<2x32xf32>
    %77 = arith.addf %75, %76 : vector<2x32xf32>
    %78 = arith.mulf %65, %77 : vector<2x32xf32>
    %79 = arith.addf %74, %78 : vector<2x32xf32>
    %80 = math.tanh %79 : vector<2x32xf32>
    %cst_21 = arith.constant 1.000000e+00 : f32
    %81 = vector.broadcast %cst_21 : f32 to vector<2x32xf32>
    %82 = arith.subf %81, %73 : vector<2x32xf32>
    %83 = arith.mulf %82, %80 : vector<2x32xf32>
    %84 = arith.mulf %73, %15 : vector<2x32xf32>
    %85 = arith.addf %83, %84 : vector<2x32xf32>
    %86 = vector.shape_cast %17 : vector<2x1xi1> to vector<2x1xi1>
    %87 = vector.broadcast %86 : vector<2x1xi1> to vector<2x32xi1>
    %88 = arith.select %87, %85, %15 : vector<2x32xi1>, vector<2x32xf32>
    %89 = vector.extract_strided_slice %13 {offsets = [1, 0, 0], sizes = [1, 2, 1], strides = [1, 1, 1]} : vector<8x2x1xi1> to vector<1x2x1xi1>
    %90 = vector.shape_cast %89 : vector<1x2x1xi1> to vector<2x1xi1>
    %91 = vector.extract_strided_slice %8 {offsets = [2, 0], sizes = [2, 384], strides = [1, 1]} : vector<16x384xf32> to vector<2x384xf32>
    %c8_22 = arith.constant 8 : index
    %c0_23 = arith.constant 0 : index
    %92 = vector.load %arg2[%c8_22, %c0_23] : memref<192x384xf32, #tpu.memory_space<vmem>>, vector<32x384xf32>
    %cst_24 = arith.constant dense<0.000000e+00> : vector<2x384xf32>
    %93 = tpu.matmul %51, %92, %cst_24 {dimension_numbers = #tpu.dot_dimension_numbers<[1], [0], [0], [1], [0, 0, 1, 1], [], []>} : vector<2x32xf32>, vector<32x384xf32>, vector<2x384xf32> -> vector<2x384xf32>
    %94 = vector.extract_strided_slice %91 {offsets = [0, 0], sizes = [2, 32], strides = [1, 1]} : vector<2x384xf32> to vector<2x32xf32>
    %95 = vector.extract_strided_slice %93 {offsets = [0, 0], sizes = [2, 32], strides = [1, 1]} : vector<2x384xf32> to vector<2x32xf32>
    %96 = arith.addf %94, %95 : vector<2x32xf32>
    %97 = arith.negf %96 : vector<2x32xf32>
    %98 = math.exp %97 : vector<2x32xf32>
    %cst_25 = arith.constant 1.000000e+00 : f32
    %99 = vector.broadcast %cst_25 : f32 to vector<2x32xf32>
    %100 = arith.addf %99, %98 : vector<2x32xf32>
    %101 = arith.divf %99, %100 : vector<2x32xf32>
    %102 = vector.extract_strided_slice %91 {offsets = [0, 128], sizes = [2, 32], strides = [1, 1]} : vector<2x384xf32> to vector<2x32xf32>
    %103 = vector.extract_strided_slice %93 {offsets = [0, 128], sizes = [2, 32], strides = [1, 1]} : vector<2x384xf32> to vector<2x32xf32>
    %104 = arith.addf %102, %103 : vector<2x32xf32>
    %105 = arith.negf %104 : vector<2x32xf32>
    %106 = math.exp %105 : vector<2x32xf32>
    %cst_26 = arith.constant 1.000000e+00 : f32
    %107 = vector.broadcast %cst_26 : f32 to vector<2x32xf32>
    %108 = arith.addf %107, %106 : vector<2x32xf32>
    %109 = arith.divf %107, %108 : vector<2x32xf32>
    %110 = vector.extract_strided_slice %91 {offsets = [0, 256], sizes = [2, 32], strides = [1, 1]} : vector<2x384xf32> to vector<2x32xf32>
    %111 = vector.extract_strided_slice %93 {offsets = [0, 256], sizes = [2, 32], strides = [1, 1]} : vector<2x384xf32> to vector<2x32xf32>
    %112 = vector.broadcast %1 : vector<1x32xf32> to vector<2x32xf32>
    %113 = arith.addf %111, %112 : vector<2x32xf32>
    %114 = arith.mulf %101, %113 : vector<2x32xf32>
    %115 = arith.addf %110, %114 : vector<2x32xf32>
    %116 = math.tanh %115 : vector<2x32xf32>
    %cst_27 = arith.constant 1.000000e+00 : f32
    %117 = vector.broadcast %cst_27 : f32 to vector<2x32xf32>
    %118 = arith.subf %117, %109 : vector<2x32xf32>
    %119 = arith.mulf %118, %116 : vector<2x32xf32>
    %120 = arith.mulf %109, %51 : vector<2x32xf32>
    %121 = arith.addf %119, %120 : vector<2x32xf32>
    %122 = vector.shape_cast %90 : vector<2x1xi1> to vector<2x1xi1>
    %123 = vector.broadcast %122 : vector<2x1xi1> to vector<2x32xi1>
    %124 = arith.select %123, %121, %51 : vector<2x32xi1>, vector<2x32xf32>
    %c40_28 = arith.constant 40 : index
    %c0_29 = arith.constant 0 : index
    %125 = vector.load %arg2[%c40_28, %c0_29] : memref<192x384xf32, #tpu.memory_space<vmem>>, vector<32x384xf32>
    %cst_30 = arith.constant dense<0.000000e+00> : vector<2x384xf32>
    %126 = tpu.matmul %124, %125, %cst_30 {dimension_numbers = #tpu.dot_dimension_numbers<[1], [0], [0], [1], [0, 0, 1, 1], [], []>} : vector<2x32xf32>, vector<32x384xf32>, vector<2x384xf32> -> vector<2x384xf32>
    %127 = vector.broadcast %2 : vector<1x384xf32> to vector<2x384xf32>
    %128 = arith.addf %126, %127 : vector<2x384xf32>
    %c72_31 = arith.constant 72 : index
    %c0_32 = arith.constant 0 : index
    %129 = vector.load %arg2[%c72_31, %c0_32] : memref<192x384xf32, #tpu.memory_space<vmem>>, vector<32x384xf32>
    %cst_33 = arith.constant dense<0.000000e+00> : vector<2x384xf32>
    %130 = tpu.matmul %88, %129, %cst_33 {dimension_numbers = #tpu.dot_dimension_numbers<[1], [0], [0], [1], [0, 0, 1, 1], [], []>} : vector<2x32xf32>, vector<32x384xf32>, vector<2x384xf32> -> vector<2x384xf32>
    %131 = vector.extract_strided_slice %128 {offsets = [0, 0], sizes = [2, 32], strides = [1, 1]} : vector<2x384xf32> to vector<2x32xf32>
    %132 = vector.extract_strided_slice %130 {offsets = [0, 0], sizes = [2, 32], strides = [1, 1]} : vector<2x384xf32> to vector<2x32xf32>
    %133 = arith.addf %131, %132 : vector<2x32xf32>
    %134 = arith.negf %133 : vector<2x32xf32>
    %135 = math.exp %134 : vector<2x32xf32>
    %cst_34 = arith.constant 1.000000e+00 : f32
    %136 = vector.broadcast %cst_34 : f32 to vector<2x32xf32>
    %137 = arith.addf %136, %135 : vector<2x32xf32>
    %138 = arith.divf %136, %137 : vector<2x32xf32>
    %139 = vector.extract_strided_slice %128 {offsets = [0, 128], sizes = [2, 32], strides = [1, 1]} : vector<2x384xf32> to vector<2x32xf32>
    %140 = vector.extract_strided_slice %130 {offsets = [0, 128], sizes = [2, 32], strides = [1, 1]} : vector<2x384xf32> to vector<2x32xf32>
    %141 = arith.addf %139, %140 : vector<2x32xf32>
    %142 = arith.negf %141 : vector<2x32xf32>
    %143 = math.exp %142 : vector<2x32xf32>
    %cst_35 = arith.constant 1.000000e+00 : f32
    %144 = vector.broadcast %cst_35 : f32 to vector<2x32xf32>
    %145 = arith.addf %144, %143 : vector<2x32xf32>
    %146 = arith.divf %144, %145 : vector<2x32xf32>
    %147 = vector.extract_strided_slice %128 {offsets = [0, 256], sizes = [2, 32], strides = [1, 1]} : vector<2x384xf32> to vector<2x32xf32>
    %148 = vector.extract_strided_slice %130 {offsets = [0, 256], sizes = [2, 32], strides = [1, 1]} : vector<2x384xf32> to vector<2x32xf32>
    %149 = vector.broadcast %3 : vector<1x32xf32> to vector<2x32xf32>
    %150 = arith.addf %148, %149 : vector<2x32xf32>
    %151 = arith.mulf %138, %150 : vector<2x32xf32>
    %152 = arith.addf %147, %151 : vector<2x32xf32>
    %153 = math.tanh %152 : vector<2x32xf32>
    %cst_36 = arith.constant 1.000000e+00 : f32
    %154 = vector.broadcast %cst_36 : f32 to vector<2x32xf32>
    %155 = arith.subf %154, %146 : vector<2x32xf32>
    %156 = arith.mulf %155, %153 : vector<2x32xf32>
    %157 = arith.mulf %146, %88 : vector<2x32xf32>
    %158 = arith.addf %156, %157 : vector<2x32xf32>
    %159 = vector.shape_cast %90 : vector<2x1xi1> to vector<2x1xi1>
    %160 = vector.broadcast %159 : vector<2x1xi1> to vector<2x32xi1>
    %161 = arith.select %160, %158, %88 : vector<2x32xi1>, vector<2x32xf32>
    %162 = vector.extract_strided_slice %13 {offsets = [2, 0, 0], sizes = [1, 2, 1], strides = [1, 1, 1]} : vector<8x2x1xi1> to vector<1x2x1xi1>
    %163 = vector.shape_cast %162 : vector<1x2x1xi1> to vector<2x1xi1>
    %164 = vector.extract_strided_slice %8 {offsets = [4, 0], sizes = [2, 384], strides = [1, 1]} : vector<16x384xf32> to vector<2x384xf32>
    %c8_37 = arith.constant 8 : index
    %c0_38 = arith.constant 0 : index
    %165 = vector.load %arg2[%c8_37, %c0_38] : memref<192x384xf32, #tpu.memory_space<vmem>>, vector<32x384xf32>
    %cst_39 = arith.constant dense<0.000000e+00> : vector<2x384xf32>
    %166 = tpu.matmul %124, %165, %cst_39 {dimension_numbers = #tpu.dot_dimension_numbers<[1], [0], [0], [1], [0, 0, 1, 1], [], []>} : vector<2x32xf32>, vector<32x384xf32>, vector<2x384xf32> -> vector<2x384xf32>
    %167 = vector.extract_strided_slice %164 {offsets = [0, 0], sizes = [2, 32], strides = [1, 1]} : vector<2x384xf32> to vector<2x32xf32>
    %168 = vector.extract_strided_slice %166 {offsets = [0, 0], sizes = [2, 32], strides = [1, 1]} : vector<2x384xf32> to vector<2x32xf32>
    %169 = arith.addf %167, %168 : vector<2x32xf32>
    %170 = arith.negf %169 : vector<2x32xf32>
    %171 = math.exp %170 : vector<2x32xf32>
    %cst_40 = arith.constant 1.000000e+00 : f32
    %172 = vector.broadcast %cst_40 : f32 to vector<2x32xf32>
    %173 = arith.addf %172, %171 : vector<2x32xf32>
    %174 = arith.divf %172, %173 : vector<2x32xf32>
    %175 = vector.extract_strided_slice %164 {offsets = [0, 128], sizes = [2, 32], strides = [1, 1]} : vector<2x384xf32> to vector<2x32xf32>
    %176 = vector.extract_strided_slice %166 {offsets = [0, 128], sizes = [2, 32], strides = [1, 1]} : vector<2x384xf32> to vector<2x32xf32>
    %177 = arith.addf %175, %176 : vector<2x32xf32>
    %178 = arith.negf %177 : vector<2x32xf32>
    %179 = math.exp %178 : vector<2x32xf32>
    %cst_41 = arith.constant 1.000000e+00 : f32
    %180 = vector.broadcast %cst_41 : f32 to vector<2x32xf32>
    %181 = arith.addf %180, %179 : vector<2x32xf32>
    %182 = arith.divf %180, %181 : vector<2x32xf32>
    %183 = vector.extract_strided_slice %164 {offsets = [0, 256], sizes = [2, 32], strides = [1, 1]} : vector<2x384xf32> to vector<2x32xf32>
    %184 = vector.extract_strided_slice %166 {offsets = [0, 256], sizes = [2, 32], strides = [1, 1]} : vector<2x384xf32> to vector<2x32xf32>
    %185 = vector.broadcast %1 : vector<1x32xf32> to vector<2x32xf32>
    %186 = arith.addf %184, %185 : vector<2x32xf32>
    %187 = arith.mulf %174, %186 : vector<2x32xf32>
    %188 = arith.addf %183, %187 : vector<2x32xf32>
    %189 = math.tanh %188 : vector<2x32xf32>
    %cst_42 = arith.constant 1.000000e+00 : f32
    %190 = vector.broadcast %cst_42 : f32 to vector<2x32xf32>
    %191 = arith.subf %190, %182 : vector<2x32xf32>
    %192 = arith.mulf %191, %189 : vector<2x32xf32>
    %193 = arith.mulf %182, %124 : vector<2x32xf32>
    %194 = arith.addf %192, %193 : vector<2x32xf32>
    %195 = vector.shape_cast %163 : vector<2x1xi1> to vector<2x1xi1>
    %196 = vector.broadcast %195 : vector<2x1xi1> to vector<2x32xi1>
    %197 = arith.select %196, %194, %124 : vector<2x32xi1>, vector<2x32xf32>
    %c40_43 = arith.constant 40 : index
    %c0_44 = arith.constant 0 : index
    %198 = vector.load %arg2[%c40_43, %c0_44] : memref<192x384xf32, #tpu.memory_space<vmem>>, vector<32x384xf32>
    %cst_45 = arith.constant dense<0.000000e+00> : vector<2x384xf32>
    %199 = tpu.matmul %197, %198, %cst_45 {dimension_numbers = #tpu.dot_dimension_numbers<[1], [0], [0], [1], [0, 0, 1, 1], [], []>} : vector<2x32xf32>, vector<32x384xf32>, vector<2x384xf32> -> vector<2x384xf32>
    %200 = vector.broadcast %2 : vector<1x384xf32> to vector<2x384xf32>
    %201 = arith.addf %199, %200 : vector<2x384xf32>
    %c72_46 = arith.constant 72 : index
    %c0_47 = arith.constant 0 : index
    %202 = vector.load %arg2[%c72_46, %c0_47] : memref<192x384xf32, #tpu.memory_space<vmem>>, vector<32x384xf32>
    %cst_48 = arith.constant dense<0.000000e+00> : vector<2x384xf32>
    %203 = tpu.matmul %161, %202, %cst_48 {dimension_numbers = #tpu.dot_dimension_numbers<[1], [0], [0], [1], [0, 0, 1, 1], [], []>} : vector<2x32xf32>, vector<32x384xf32>, vector<2x384xf32> -> vector<2x384xf32>
    %204 = vector.extract_strided_slice %201 {offsets = [0, 0], sizes = [2, 32], strides = [1, 1]} : vector<2x384xf32> to vector<2x32xf32>
    %205 = vector.extract_strided_slice %203 {offsets = [0, 0], sizes = [2, 32], strides = [1, 1]} : vector<2x384xf32> to vector<2x32xf32>
    %206 = arith.addf %204, %205 : vector<2x32xf32>
    %207 = arith.negf %206 : vector<2x32xf32>
    %208 = math.exp %207 : vector<2x32xf32>
    %cst_49 = arith.constant 1.000000e+00 : f32
    %209 = vector.broadcast %cst_49 : f32 to vector<2x32xf32>
    %210 = arith.addf %209, %208 : vector<2x32xf32>
    %211 = arith.divf %209, %210 : vector<2x32xf32>
    %212 = vector.extract_strided_slice %201 {offsets = [0, 128], sizes = [2, 32], strides = [1, 1]} : vector<2x384xf32> to vector<2x32xf32>
    %213 = vector.extract_strided_slice %203 {offsets = [0, 128], sizes = [2, 32], strides = [1, 1]} : vector<2x384xf32> to vector<2x32xf32>
    %214 = arith.addf %212, %213 : vector<2x32xf32>
    %215 = arith.negf %214 : vector<2x32xf32>
    %216 = math.exp %215 : vector<2x32xf32>
    %cst_50 = arith.constant 1.000000e+00 : f32
    %217 = vector.broadcast %cst_50 : f32 to vector<2x32xf32>
    %218 = arith.addf %217, %216 : vector<2x32xf32>
    %219 = arith.divf %217, %218 : vector<2x32xf32>
    %220 = vector.extract_strided_slice %201 {offsets = [0, 256], sizes = [2, 32], strides = [1, 1]} : vector<2x384xf32> to vector<2x32xf32>
    %221 = vector.extract_strided_slice %203 {offsets = [0, 256], sizes = [2, 32], strides = [1, 1]} : vector<2x384xf32> to vector<2x32xf32>
    %222 = vector.broadcast %3 : vector<1x32xf32> to vector<2x32xf32>
    %223 = arith.addf %221, %222 : vector<2x32xf32>
    %224 = arith.mulf %211, %223 : vector<2x32xf32>
    %225 = arith.addf %220, %224 : vector<2x32xf32>
    %226 = math.tanh %225 : vector<2x32xf32>
    %cst_51 = arith.constant 1.000000e+00 : f32
    %227 = vector.broadcast %cst_51 : f32 to vector<2x32xf32>
    %228 = arith.subf %227, %219 : vector<2x32xf32>
    %229 = arith.mulf %228, %226 : vector<2x32xf32>
    %230 = arith.mulf %219, %161 : vector<2x32xf32>
    %231 = arith.addf %229, %230 : vector<2x32xf32>
    %232 = vector.shape_cast %163 : vector<2x1xi1> to vector<2x1xi1>
    %233 = vector.broadcast %232 : vector<2x1xi1> to vector<2x32xi1>
    %234 = arith.select %233, %231, %161 : vector<2x32xi1>, vector<2x32xf32>
    %235 = vector.extract_strided_slice %13 {offsets = [3, 0, 0], sizes = [1, 2, 1], strides = [1, 1, 1]} : vector<8x2x1xi1> to vector<1x2x1xi1>
    %236 = vector.shape_cast %235 : vector<1x2x1xi1> to vector<2x1xi1>
    %237 = vector.extract_strided_slice %8 {offsets = [6, 0], sizes = [2, 384], strides = [1, 1]} : vector<16x384xf32> to vector<2x384xf32>
    %c8_52 = arith.constant 8 : index
    %c0_53 = arith.constant 0 : index
    %238 = vector.load %arg2[%c8_52, %c0_53] : memref<192x384xf32, #tpu.memory_space<vmem>>, vector<32x384xf32>
    %cst_54 = arith.constant dense<0.000000e+00> : vector<2x384xf32>
    %239 = tpu.matmul %197, %238, %cst_54 {dimension_numbers = #tpu.dot_dimension_numbers<[1], [0], [0], [1], [0, 0, 1, 1], [], []>} : vector<2x32xf32>, vector<32x384xf32>, vector<2x384xf32> -> vector<2x384xf32>
    %240 = vector.extract_strided_slice %237 {offsets = [0, 0], sizes = [2, 32], strides = [1, 1]} : vector<2x384xf32> to vector<2x32xf32>
    %241 = vector.extract_strided_slice %239 {offsets = [0, 0], sizes = [2, 32], strides = [1, 1]} : vector<2x384xf32> to vector<2x32xf32>
    %242 = arith.addf %240, %241 : vector<2x32xf32>
    %243 = arith.negf %242 : vector<2x32xf32>
    %244 = math.exp %243 : vector<2x32xf32>
    %cst_55 = arith.constant 1.000000e+00 : f32
    %245 = vector.broadcast %cst_55 : f32 to vector<2x32xf32>
    %246 = arith.addf %245, %244 : vector<2x32xf32>
    %247 = arith.divf %245, %246 : vector<2x32xf32>
    %248 = vector.extract_strided_slice %237 {offsets = [0, 128], sizes = [2, 32], strides = [1, 1]} : vector<2x384xf32> to vector<2x32xf32>
    %249 = vector.extract_strided_slice %239 {offsets = [0, 128], sizes = [2, 32], strides = [1, 1]} : vector<2x384xf32> to vector<2x32xf32>
    %250 = arith.addf %248, %249 : vector<2x32xf32>
    %251 = arith.negf %250 : vector<2x32xf32>
    %252 = math.exp %251 : vector<2x32xf32>
    %cst_56 = arith.constant 1.000000e+00 : f32
    %253 = vector.broadcast %cst_56 : f32 to vector<2x32xf32>
    %254 = arith.addf %253, %252 : vector<2x32xf32>
    %255 = arith.divf %253, %254 : vector<2x32xf32>
    %256 = vector.extract_strided_slice %237 {offsets = [0, 256], sizes = [2, 32], strides = [1, 1]} : vector<2x384xf32> to vector<2x32xf32>
    %257 = vector.extract_strided_slice %239 {offsets = [0, 256], sizes = [2, 32], strides = [1, 1]} : vector<2x384xf32> to vector<2x32xf32>
    %258 = vector.broadcast %1 : vector<1x32xf32> to vector<2x32xf32>
    %259 = arith.addf %257, %258 : vector<2x32xf32>
    %260 = arith.mulf %247, %259 : vector<2x32xf32>
    %261 = arith.addf %256, %260 : vector<2x32xf32>
    %262 = math.tanh %261 : vector<2x32xf32>
    %cst_57 = arith.constant 1.000000e+00 : f32
    %263 = vector.broadcast %cst_57 : f32 to vector<2x32xf32>
    %264 = arith.subf %263, %255 : vector<2x32xf32>
    %265 = arith.mulf %264, %262 : vector<2x32xf32>
    %266 = arith.mulf %255, %197 : vector<2x32xf32>
    %267 = arith.addf %265, %266 : vector<2x32xf32>
    %268 = vector.shape_cast %236 : vector<2x1xi1> to vector<2x1xi1>
    %269 = vector.broadcast %268 : vector<2x1xi1> to vector<2x32xi1>
    %270 = arith.select %269, %267, %197 : vector<2x32xi1>, vector<2x32xf32>
    %c40_58 = arith.constant 40 : index
    %c0_59 = arith.constant 0 : index
    %271 = vector.load %arg2[%c40_58, %c0_59] : memref<192x384xf32, #tpu.memory_space<vmem>>, vector<32x384xf32>
    %cst_60 = arith.constant dense<0.000000e+00> : vector<2x384xf32>
    %272 = tpu.matmul %270, %271, %cst_60 {dimension_numbers = #tpu.dot_dimension_numbers<[1], [0], [0], [1], [0, 0, 1, 1], [], []>} : vector<2x32xf32>, vector<32x384xf32>, vector<2x384xf32> -> vector<2x384xf32>
    %273 = vector.broadcast %2 : vector<1x384xf32> to vector<2x384xf32>
    %274 = arith.addf %272, %273 : vector<2x384xf32>
    %c72_61 = arith.constant 72 : index
    %c0_62 = arith.constant 0 : index
    %275 = vector.load %arg2[%c72_61, %c0_62] : memref<192x384xf32, #tpu.memory_space<vmem>>, vector<32x384xf32>
    %cst_63 = arith.constant dense<0.000000e+00> : vector<2x384xf32>
    %276 = tpu.matmul %234, %275, %cst_63 {dimension_numbers = #tpu.dot_dimension_numbers<[1], [0], [0], [1], [0, 0, 1, 1], [], []>} : vector<2x32xf32>, vector<32x384xf32>, vector<2x384xf32> -> vector<2x384xf32>
    %277 = vector.extract_strided_slice %274 {offsets = [0, 0], sizes = [2, 32], strides = [1, 1]} : vector<2x384xf32> to vector<2x32xf32>
    %278 = vector.extract_strided_slice %276 {offsets = [0, 0], sizes = [2, 32], strides = [1, 1]} : vector<2x384xf32> to vector<2x32xf32>
    %279 = arith.addf %277, %278 : vector<2x32xf32>
    %280 = arith.negf %279 : vector<2x32xf32>
    %281 = math.exp %280 : vector<2x32xf32>
    %cst_64 = arith.constant 1.000000e+00 : f32
    %282 = vector.broadcast %cst_64 : f32 to vector<2x32xf32>
    %283 = arith.addf %282, %281 : vector<2x32xf32>
    %284 = arith.divf %282, %283 : vector<2x32xf32>
    %285 = vector.extract_strided_slice %274 {offsets = [0, 128], sizes = [2, 32], strides = [1, 1]} : vector<2x384xf32> to vector<2x32xf32>
    %286 = vector.extract_strided_slice %276 {offsets = [0, 128], sizes = [2, 32], strides = [1, 1]} : vector<2x384xf32> to vector<2x32xf32>
    %287 = arith.addf %285, %286 : vector<2x32xf32>
    %288 = arith.negf %287 : vector<2x32xf32>
    %289 = math.exp %288 : vector<2x32xf32>
    %cst_65 = arith.constant 1.000000e+00 : f32
    %290 = vector.broadcast %cst_65 : f32 to vector<2x32xf32>
    %291 = arith.addf %290, %289 : vector<2x32xf32>
    %292 = arith.divf %290, %291 : vector<2x32xf32>
    %293 = vector.extract_strided_slice %274 {offsets = [0, 256], sizes = [2, 32], strides = [1, 1]} : vector<2x384xf32> to vector<2x32xf32>
    %294 = vector.extract_strided_slice %276 {offsets = [0, 256], sizes = [2, 32], strides = [1, 1]} : vector<2x384xf32> to vector<2x32xf32>
    %295 = vector.broadcast %3 : vector<1x32xf32> to vector<2x32xf32>
    %296 = arith.addf %294, %295 : vector<2x32xf32>
    %297 = arith.mulf %284, %296 : vector<2x32xf32>
    %298 = arith.addf %293, %297 : vector<2x32xf32>
    %299 = math.tanh %298 : vector<2x32xf32>
    %cst_66 = arith.constant 1.000000e+00 : f32
    %300 = vector.broadcast %cst_66 : f32 to vector<2x32xf32>
    %301 = arith.subf %300, %292 : vector<2x32xf32>
    %302 = arith.mulf %301, %299 : vector<2x32xf32>
    %303 = arith.mulf %292, %234 : vector<2x32xf32>
    %304 = arith.addf %302, %303 : vector<2x32xf32>
    %305 = vector.shape_cast %236 : vector<2x1xi1> to vector<2x1xi1>
    %306 = vector.broadcast %305 : vector<2x1xi1> to vector<2x32xi1>
    %307 = arith.select %306, %304, %234 : vector<2x32xi1>, vector<2x32xf32>
    %308 = vector.extract_strided_slice %13 {offsets = [4, 0, 0], sizes = [1, 2, 1], strides = [1, 1, 1]} : vector<8x2x1xi1> to vector<1x2x1xi1>
    %309 = vector.shape_cast %308 : vector<1x2x1xi1> to vector<2x1xi1>
    %310 = vector.extract_strided_slice %8 {offsets = [8, 0], sizes = [2, 384], strides = [1, 1]} : vector<16x384xf32> to vector<2x384xf32>
    %c8_67 = arith.constant 8 : index
    %c0_68 = arith.constant 0 : index
    %311 = vector.load %arg2[%c8_67, %c0_68] : memref<192x384xf32, #tpu.memory_space<vmem>>, vector<32x384xf32>
    %cst_69 = arith.constant dense<0.000000e+00> : vector<2x384xf32>
    %312 = tpu.matmul %270, %311, %cst_69 {dimension_numbers = #tpu.dot_dimension_numbers<[1], [0], [0], [1], [0, 0, 1, 1], [], []>} : vector<2x32xf32>, vector<32x384xf32>, vector<2x384xf32> -> vector<2x384xf32>
    %313 = vector.extract_strided_slice %310 {offsets = [0, 0], sizes = [2, 32], strides = [1, 1]} : vector<2x384xf32> to vector<2x32xf32>
    %314 = vector.extract_strided_slice %312 {offsets = [0, 0], sizes = [2, 32], strides = [1, 1]} : vector<2x384xf32> to vector<2x32xf32>
    %315 = arith.addf %313, %314 : vector<2x32xf32>
    %316 = arith.negf %315 : vector<2x32xf32>
    %317 = math.exp %316 : vector<2x32xf32>
    %cst_70 = arith.constant 1.000000e+00 : f32
    %318 = vector.broadcast %cst_70 : f32 to vector<2x32xf32>
    %319 = arith.addf %318, %317 : vector<2x32xf32>
    %320 = arith.divf %318, %319 : vector<2x32xf32>
    %321 = vector.extract_strided_slice %310 {offsets = [0, 128], sizes = [2, 32], strides = [1, 1]} : vector<2x384xf32> to vector<2x32xf32>
    %322 = vector.extract_strided_slice %312 {offsets = [0, 128], sizes = [2, 32], strides = [1, 1]} : vector<2x384xf32> to vector<2x32xf32>
    %323 = arith.addf %321, %322 : vector<2x32xf32>
    %324 = arith.negf %323 : vector<2x32xf32>
    %325 = math.exp %324 : vector<2x32xf32>
    %cst_71 = arith.constant 1.000000e+00 : f32
    %326 = vector.broadcast %cst_71 : f32 to vector<2x32xf32>
    %327 = arith.addf %326, %325 : vector<2x32xf32>
    %328 = arith.divf %326, %327 : vector<2x32xf32>
    %329 = vector.extract_strided_slice %310 {offsets = [0, 256], sizes = [2, 32], strides = [1, 1]} : vector<2x384xf32> to vector<2x32xf32>
    %330 = vector.extract_strided_slice %312 {offsets = [0, 256], sizes = [2, 32], strides = [1, 1]} : vector<2x384xf32> to vector<2x32xf32>
    %331 = vector.broadcast %1 : vector<1x32xf32> to vector<2x32xf32>
    %332 = arith.addf %330, %331 : vector<2x32xf32>
    %333 = arith.mulf %320, %332 : vector<2x32xf32>
    %334 = arith.addf %329, %333 : vector<2x32xf32>
    %335 = math.tanh %334 : vector<2x32xf32>
    %cst_72 = arith.constant 1.000000e+00 : f32
    %336 = vector.broadcast %cst_72 : f32 to vector<2x32xf32>
    %337 = arith.subf %336, %328 : vector<2x32xf32>
    %338 = arith.mulf %337, %335 : vector<2x32xf32>
    %339 = arith.mulf %328, %270 : vector<2x32xf32>
    %340 = arith.addf %338, %339 : vector<2x32xf32>
    %341 = vector.shape_cast %309 : vector<2x1xi1> to vector<2x1xi1>
    %342 = vector.broadcast %341 : vector<2x1xi1> to vector<2x32xi1>
    %343 = arith.select %342, %340, %270 : vector<2x32xi1>, vector<2x32xf32>
    %c40_73 = arith.constant 40 : index
    %c0_74 = arith.constant 0 : index
    %344 = vector.load %arg2[%c40_73, %c0_74] : memref<192x384xf32, #tpu.memory_space<vmem>>, vector<32x384xf32>
    %cst_75 = arith.constant dense<0.000000e+00> : vector<2x384xf32>
    %345 = tpu.matmul %343, %344, %cst_75 {dimension_numbers = #tpu.dot_dimension_numbers<[1], [0], [0], [1], [0, 0, 1, 1], [], []>} : vector<2x32xf32>, vector<32x384xf32>, vector<2x384xf32> -> vector<2x384xf32>
    %346 = vector.broadcast %2 : vector<1x384xf32> to vector<2x384xf32>
    %347 = arith.addf %345, %346 : vector<2x384xf32>
    %c72_76 = arith.constant 72 : index
    %c0_77 = arith.constant 0 : index
    %348 = vector.load %arg2[%c72_76, %c0_77] : memref<192x384xf32, #tpu.memory_space<vmem>>, vector<32x384xf32>
    %cst_78 = arith.constant dense<0.000000e+00> : vector<2x384xf32>
    %349 = tpu.matmul %307, %348, %cst_78 {dimension_numbers = #tpu.dot_dimension_numbers<[1], [0], [0], [1], [0, 0, 1, 1], [], []>} : vector<2x32xf32>, vector<32x384xf32>, vector<2x384xf32> -> vector<2x384xf32>
    %350 = vector.extract_strided_slice %347 {offsets = [0, 0], sizes = [2, 32], strides = [1, 1]} : vector<2x384xf32> to vector<2x32xf32>
    %351 = vector.extract_strided_slice %349 {offsets = [0, 0], sizes = [2, 32], strides = [1, 1]} : vector<2x384xf32> to vector<2x32xf32>
    %352 = arith.addf %350, %351 : vector<2x32xf32>
    %353 = arith.negf %352 : vector<2x32xf32>
    %354 = math.exp %353 : vector<2x32xf32>
    %cst_79 = arith.constant 1.000000e+00 : f32
    %355 = vector.broadcast %cst_79 : f32 to vector<2x32xf32>
    %356 = arith.addf %355, %354 : vector<2x32xf32>
    %357 = arith.divf %355, %356 : vector<2x32xf32>
    %358 = vector.extract_strided_slice %347 {offsets = [0, 128], sizes = [2, 32], strides = [1, 1]} : vector<2x384xf32> to vector<2x32xf32>
    %359 = vector.extract_strided_slice %349 {offsets = [0, 128], sizes = [2, 32], strides = [1, 1]} : vector<2x384xf32> to vector<2x32xf32>
    %360 = arith.addf %358, %359 : vector<2x32xf32>
    %361 = arith.negf %360 : vector<2x32xf32>
    %362 = math.exp %361 : vector<2x32xf32>
    %cst_80 = arith.constant 1.000000e+00 : f32
    %363 = vector.broadcast %cst_80 : f32 to vector<2x32xf32>
    %364 = arith.addf %363, %362 : vector<2x32xf32>
    %365 = arith.divf %363, %364 : vector<2x32xf32>
    %366 = vector.extract_strided_slice %347 {offsets = [0, 256], sizes = [2, 32], strides = [1, 1]} : vector<2x384xf32> to vector<2x32xf32>
    %367 = vector.extract_strided_slice %349 {offsets = [0, 256], sizes = [2, 32], strides = [1, 1]} : vector<2x384xf32> to vector<2x32xf32>
    %368 = vector.broadcast %3 : vector<1x32xf32> to vector<2x32xf32>
    %369 = arith.addf %367, %368 : vector<2x32xf32>
    %370 = arith.mulf %357, %369 : vector<2x32xf32>
    %371 = arith.addf %366, %370 : vector<2x32xf32>
    %372 = math.tanh %371 : vector<2x32xf32>
    %cst_81 = arith.constant 1.000000e+00 : f32
    %373 = vector.broadcast %cst_81 : f32 to vector<2x32xf32>
    %374 = arith.subf %373, %365 : vector<2x32xf32>
    %375 = arith.mulf %374, %372 : vector<2x32xf32>
    %376 = arith.mulf %365, %307 : vector<2x32xf32>
    %377 = arith.addf %375, %376 : vector<2x32xf32>
    %378 = vector.shape_cast %309 : vector<2x1xi1> to vector<2x1xi1>
    %379 = vector.broadcast %378 : vector<2x1xi1> to vector<2x32xi1>
    %380 = arith.select %379, %377, %307 : vector<2x32xi1>, vector<2x32xf32>
    %381 = vector.extract_strided_slice %13 {offsets = [5, 0, 0], sizes = [1, 2, 1], strides = [1, 1, 1]} : vector<8x2x1xi1> to vector<1x2x1xi1>
    %382 = vector.shape_cast %381 : vector<1x2x1xi1> to vector<2x1xi1>
    %383 = vector.extract_strided_slice %8 {offsets = [10, 0], sizes = [2, 384], strides = [1, 1]} : vector<16x384xf32> to vector<2x384xf32>
    %c8_82 = arith.constant 8 : index
    %c0_83 = arith.constant 0 : index
    %384 = vector.load %arg2[%c8_82, %c0_83] : memref<192x384xf32, #tpu.memory_space<vmem>>, vector<32x384xf32>
    %cst_84 = arith.constant dense<0.000000e+00> : vector<2x384xf32>
    %385 = tpu.matmul %343, %384, %cst_84 {dimension_numbers = #tpu.dot_dimension_numbers<[1], [0], [0], [1], [0, 0, 1, 1], [], []>} : vector<2x32xf32>, vector<32x384xf32>, vector<2x384xf32> -> vector<2x384xf32>
    %386 = vector.extract_strided_slice %383 {offsets = [0, 0], sizes = [2, 32], strides = [1, 1]} : vector<2x384xf32> to vector<2x32xf32>
    %387 = vector.extract_strided_slice %385 {offsets = [0, 0], sizes = [2, 32], strides = [1, 1]} : vector<2x384xf32> to vector<2x32xf32>
    %388 = arith.addf %386, %387 : vector<2x32xf32>
    %389 = arith.negf %388 : vector<2x32xf32>
    %390 = math.exp %389 : vector<2x32xf32>
    %cst_85 = arith.constant 1.000000e+00 : f32
    %391 = vector.broadcast %cst_85 : f32 to vector<2x32xf32>
    %392 = arith.addf %391, %390 : vector<2x32xf32>
    %393 = arith.divf %391, %392 : vector<2x32xf32>
    %394 = vector.extract_strided_slice %383 {offsets = [0, 128], sizes = [2, 32], strides = [1, 1]} : vector<2x384xf32> to vector<2x32xf32>
    %395 = vector.extract_strided_slice %385 {offsets = [0, 128], sizes = [2, 32], strides = [1, 1]} : vector<2x384xf32> to vector<2x32xf32>
    %396 = arith.addf %394, %395 : vector<2x32xf32>
    %397 = arith.negf %396 : vector<2x32xf32>
    %398 = math.exp %397 : vector<2x32xf32>
    %cst_86 = arith.constant 1.000000e+00 : f32
    %399 = vector.broadcast %cst_86 : f32 to vector<2x32xf32>
    %400 = arith.addf %399, %398 : vector<2x32xf32>
    %401 = arith.divf %399, %400 : vector<2x32xf32>
    %402 = vector.extract_strided_slice %383 {offsets = [0, 256], sizes = [2, 32], strides = [1, 1]} : vector<2x384xf32> to vector<2x32xf32>
    %403 = vector.extract_strided_slice %385 {offsets = [0, 256], sizes = [2, 32], strides = [1, 1]} : vector<2x384xf32> to vector<2x32xf32>
    %404 = vector.broadcast %1 : vector<1x32xf32> to vector<2x32xf32>
    %405 = arith.addf %403, %404 : vector<2x32xf32>
    %406 = arith.mulf %393, %405 : vector<2x32xf32>
    %407 = arith.addf %402, %406 : vector<2x32xf32>
    %408 = math.tanh %407 : vector<2x32xf32>
    %cst_87 = arith.constant 1.000000e+00 : f32
    %409 = vector.broadcast %cst_87 : f32 to vector<2x32xf32>
    %410 = arith.subf %409, %401 : vector<2x32xf32>
    %411 = arith.mulf %410, %408 : vector<2x32xf32>
    %412 = arith.mulf %401, %343 : vector<2x32xf32>
    %413 = arith.addf %411, %412 : vector<2x32xf32>
    %414 = vector.shape_cast %382 : vector<2x1xi1> to vector<2x1xi1>
    %415 = vector.broadcast %414 : vector<2x1xi1> to vector<2x32xi1>
    %416 = arith.select %415, %413, %343 : vector<2x32xi1>, vector<2x32xf32>
    %c40_88 = arith.constant 40 : index
    %c0_89 = arith.constant 0 : index
    %417 = vector.load %arg2[%c40_88, %c0_89] : memref<192x384xf32, #tpu.memory_space<vmem>>, vector<32x384xf32>
    %cst_90 = arith.constant dense<0.000000e+00> : vector<2x384xf32>
    %418 = tpu.matmul %416, %417, %cst_90 {dimension_numbers = #tpu.dot_dimension_numbers<[1], [0], [0], [1], [0, 0, 1, 1], [], []>} : vector<2x32xf32>, vector<32x384xf32>, vector<2x384xf32> -> vector<2x384xf32>
    %419 = vector.broadcast %2 : vector<1x384xf32> to vector<2x384xf32>
    %420 = arith.addf %418, %419 : vector<2x384xf32>
    %c72_91 = arith.constant 72 : index
    %c0_92 = arith.constant 0 : index
    %421 = vector.load %arg2[%c72_91, %c0_92] : memref<192x384xf32, #tpu.memory_space<vmem>>, vector<32x384xf32>
    %cst_93 = arith.constant dense<0.000000e+00> : vector<2x384xf32>
    %422 = tpu.matmul %380, %421, %cst_93 {dimension_numbers = #tpu.dot_dimension_numbers<[1], [0], [0], [1], [0, 0, 1, 1], [], []>} : vector<2x32xf32>, vector<32x384xf32>, vector<2x384xf32> -> vector<2x384xf32>
    %423 = vector.extract_strided_slice %420 {offsets = [0, 0], sizes = [2, 32], strides = [1, 1]} : vector<2x384xf32> to vector<2x32xf32>
    %424 = vector.extract_strided_slice %422 {offsets = [0, 0], sizes = [2, 32], strides = [1, 1]} : vector<2x384xf32> to vector<2x32xf32>
    %425 = arith.addf %423, %424 : vector<2x32xf32>
    %426 = arith.negf %425 : vector<2x32xf32>
    %427 = math.exp %426 : vector<2x32xf32>
    %cst_94 = arith.constant 1.000000e+00 : f32
    %428 = vector.broadcast %cst_94 : f32 to vector<2x32xf32>
    %429 = arith.addf %428, %427 : vector<2x32xf32>
    %430 = arith.divf %428, %429 : vector<2x32xf32>
    %431 = vector.extract_strided_slice %420 {offsets = [0, 128], sizes = [2, 32], strides = [1, 1]} : vector<2x384xf32> to vector<2x32xf32>
    %432 = vector.extract_strided_slice %422 {offsets = [0, 128], sizes = [2, 32], strides = [1, 1]} : vector<2x384xf32> to vector<2x32xf32>
    %433 = arith.addf %431, %432 : vector<2x32xf32>
    %434 = arith.negf %433 : vector<2x32xf32>
    %435 = math.exp %434 : vector<2x32xf32>
    %cst_95 = arith.constant 1.000000e+00 : f32
    %436 = vector.broadcast %cst_95 : f32 to vector<2x32xf32>
    %437 = arith.addf %436, %435 : vector<2x32xf32>
    %438 = arith.divf %436, %437 : vector<2x32xf32>
    %439 = vector.extract_strided_slice %420 {offsets = [0, 256], sizes = [2, 32], strides = [1, 1]} : vector<2x384xf32> to vector<2x32xf32>
    %440 = vector.extract_strided_slice %422 {offsets = [0, 256], sizes = [2, 32], strides = [1, 1]} : vector<2x384xf32> to vector<2x32xf32>
    %441 = vector.broadcast %3 : vector<1x32xf32> to vector<2x32xf32>
    %442 = arith.addf %440, %441 : vector<2x32xf32>
    %443 = arith.mulf %430, %442 : vector<2x32xf32>
    %444 = arith.addf %439, %443 : vector<2x32xf32>
    %445 = math.tanh %444 : vector<2x32xf32>
    %cst_96 = arith.constant 1.000000e+00 : f32
    %446 = vector.broadcast %cst_96 : f32 to vector<2x32xf32>
    %447 = arith.subf %446, %438 : vector<2x32xf32>
    %448 = arith.mulf %447, %445 : vector<2x32xf32>
    %449 = arith.mulf %438, %380 : vector<2x32xf32>
    %450 = arith.addf %448, %449 : vector<2x32xf32>
    %451 = vector.shape_cast %382 : vector<2x1xi1> to vector<2x1xi1>
    %452 = vector.broadcast %451 : vector<2x1xi1> to vector<2x32xi1>
    %453 = arith.select %452, %450, %380 : vector<2x32xi1>, vector<2x32xf32>
    %454 = vector.extract_strided_slice %13 {offsets = [6, 0, 0], sizes = [1, 2, 1], strides = [1, 1, 1]} : vector<8x2x1xi1> to vector<1x2x1xi1>
    %455 = vector.shape_cast %454 : vector<1x2x1xi1> to vector<2x1xi1>
    %456 = vector.extract_strided_slice %8 {offsets = [12, 0], sizes = [2, 384], strides = [1, 1]} : vector<16x384xf32> to vector<2x384xf32>
    %c8_97 = arith.constant 8 : index
    %c0_98 = arith.constant 0 : index
    %457 = vector.load %arg2[%c8_97, %c0_98] : memref<192x384xf32, #tpu.memory_space<vmem>>, vector<32x384xf32>
    %cst_99 = arith.constant dense<0.000000e+00> : vector<2x384xf32>
    %458 = tpu.matmul %416, %457, %cst_99 {dimension_numbers = #tpu.dot_dimension_numbers<[1], [0], [0], [1], [0, 0, 1, 1], [], []>} : vector<2x32xf32>, vector<32x384xf32>, vector<2x384xf32> -> vector<2x384xf32>
    %459 = vector.extract_strided_slice %456 {offsets = [0, 0], sizes = [2, 32], strides = [1, 1]} : vector<2x384xf32> to vector<2x32xf32>
    %460 = vector.extract_strided_slice %458 {offsets = [0, 0], sizes = [2, 32], strides = [1, 1]} : vector<2x384xf32> to vector<2x32xf32>
    %461 = arith.addf %459, %460 : vector<2x32xf32>
    %462 = arith.negf %461 : vector<2x32xf32>
    %463 = math.exp %462 : vector<2x32xf32>
    %cst_100 = arith.constant 1.000000e+00 : f32
    %464 = vector.broadcast %cst_100 : f32 to vector<2x32xf32>
    %465 = arith.addf %464, %463 : vector<2x32xf32>
    %466 = arith.divf %464, %465 : vector<2x32xf32>
    %467 = vector.extract_strided_slice %456 {offsets = [0, 128], sizes = [2, 32], strides = [1, 1]} : vector<2x384xf32> to vector<2x32xf32>
    %468 = vector.extract_strided_slice %458 {offsets = [0, 128], sizes = [2, 32], strides = [1, 1]} : vector<2x384xf32> to vector<2x32xf32>
    %469 = arith.addf %467, %468 : vector<2x32xf32>
    %470 = arith.negf %469 : vector<2x32xf32>
    %471 = math.exp %470 : vector<2x32xf32>
    %cst_101 = arith.constant 1.000000e+00 : f32
    %472 = vector.broadcast %cst_101 : f32 to vector<2x32xf32>
    %473 = arith.addf %472, %471 : vector<2x32xf32>
    %474 = arith.divf %472, %473 : vector<2x32xf32>
    %475 = vector.extract_strided_slice %456 {offsets = [0, 256], sizes = [2, 32], strides = [1, 1]} : vector<2x384xf32> to vector<2x32xf32>
    %476 = vector.extract_strided_slice %458 {offsets = [0, 256], sizes = [2, 32], strides = [1, 1]} : vector<2x384xf32> to vector<2x32xf32>
    %477 = vector.broadcast %1 : vector<1x32xf32> to vector<2x32xf32>
    %478 = arith.addf %476, %477 : vector<2x32xf32>
    %479 = arith.mulf %466, %478 : vector<2x32xf32>
    %480 = arith.addf %475, %479 : vector<2x32xf32>
    %481 = math.tanh %480 : vector<2x32xf32>
    %cst_102 = arith.constant 1.000000e+00 : f32
    %482 = vector.broadcast %cst_102 : f32 to vector<2x32xf32>
    %483 = arith.subf %482, %474 : vector<2x32xf32>
    %484 = arith.mulf %483, %481 : vector<2x32xf32>
    %485 = arith.mulf %474, %416 : vector<2x32xf32>
    %486 = arith.addf %484, %485 : vector<2x32xf32>
    %487 = vector.shape_cast %455 : vector<2x1xi1> to vector<2x1xi1>
    %488 = vector.broadcast %487 : vector<2x1xi1> to vector<2x32xi1>
    %489 = arith.select %488, %486, %416 : vector<2x32xi1>, vector<2x32xf32>
    %c40_103 = arith.constant 40 : index
    %c0_104 = arith.constant 0 : index
    %490 = vector.load %arg2[%c40_103, %c0_104] : memref<192x384xf32, #tpu.memory_space<vmem>>, vector<32x384xf32>
    %cst_105 = arith.constant dense<0.000000e+00> : vector<2x384xf32>
    %491 = tpu.matmul %489, %490, %cst_105 {dimension_numbers = #tpu.dot_dimension_numbers<[1], [0], [0], [1], [0, 0, 1, 1], [], []>} : vector<2x32xf32>, vector<32x384xf32>, vector<2x384xf32> -> vector<2x384xf32>
    %492 = vector.broadcast %2 : vector<1x384xf32> to vector<2x384xf32>
    %493 = arith.addf %491, %492 : vector<2x384xf32>
    %c72_106 = arith.constant 72 : index
    %c0_107 = arith.constant 0 : index
    %494 = vector.load %arg2[%c72_106, %c0_107] : memref<192x384xf32, #tpu.memory_space<vmem>>, vector<32x384xf32>
    %cst_108 = arith.constant dense<0.000000e+00> : vector<2x384xf32>
    %495 = tpu.matmul %453, %494, %cst_108 {dimension_numbers = #tpu.dot_dimension_numbers<[1], [0], [0], [1], [0, 0, 1, 1], [], []>} : vector<2x32xf32>, vector<32x384xf32>, vector<2x384xf32> -> vector<2x384xf32>
    %496 = vector.extract_strided_slice %493 {offsets = [0, 0], sizes = [2, 32], strides = [1, 1]} : vector<2x384xf32> to vector<2x32xf32>
    %497 = vector.extract_strided_slice %495 {offsets = [0, 0], sizes = [2, 32], strides = [1, 1]} : vector<2x384xf32> to vector<2x32xf32>
    %498 = arith.addf %496, %497 : vector<2x32xf32>
    %499 = arith.negf %498 : vector<2x32xf32>
    %500 = math.exp %499 : vector<2x32xf32>
    %cst_109 = arith.constant 1.000000e+00 : f32
    %501 = vector.broadcast %cst_109 : f32 to vector<2x32xf32>
    %502 = arith.addf %501, %500 : vector<2x32xf32>
    %503 = arith.divf %501, %502 : vector<2x32xf32>
    %504 = vector.extract_strided_slice %493 {offsets = [0, 128], sizes = [2, 32], strides = [1, 1]} : vector<2x384xf32> to vector<2x32xf32>
    %505 = vector.extract_strided_slice %495 {offsets = [0, 128], sizes = [2, 32], strides = [1, 1]} : vector<2x384xf32> to vector<2x32xf32>
    %506 = arith.addf %504, %505 : vector<2x32xf32>
    %507 = arith.negf %506 : vector<2x32xf32>
    %508 = math.exp %507 : vector<2x32xf32>
    %cst_110 = arith.constant 1.000000e+00 : f32
    %509 = vector.broadcast %cst_110 : f32 to vector<2x32xf32>
    %510 = arith.addf %509, %508 : vector<2x32xf32>
    %511 = arith.divf %509, %510 : vector<2x32xf32>
    %512 = vector.extract_strided_slice %493 {offsets = [0, 256], sizes = [2, 32], strides = [1, 1]} : vector<2x384xf32> to vector<2x32xf32>
    %513 = vector.extract_strided_slice %495 {offsets = [0, 256], sizes = [2, 32], strides = [1, 1]} : vector<2x384xf32> to vector<2x32xf32>
    %514 = vector.broadcast %3 : vector<1x32xf32> to vector<2x32xf32>
    %515 = arith.addf %513, %514 : vector<2x32xf32>
    %516 = arith.mulf %503, %515 : vector<2x32xf32>
    %517 = arith.addf %512, %516 : vector<2x32xf32>
    %518 = math.tanh %517 : vector<2x32xf32>
    %cst_111 = arith.constant 1.000000e+00 : f32
    %519 = vector.broadcast %cst_111 : f32 to vector<2x32xf32>
    %520 = arith.subf %519, %511 : vector<2x32xf32>
    %521 = arith.mulf %520, %518 : vector<2x32xf32>
    %522 = arith.mulf %511, %453 : vector<2x32xf32>
    %523 = arith.addf %521, %522 : vector<2x32xf32>
    %524 = vector.shape_cast %455 : vector<2x1xi1> to vector<2x1xi1>
    %525 = vector.broadcast %524 : vector<2x1xi1> to vector<2x32xi1>
    %526 = arith.select %525, %523, %453 : vector<2x32xi1>, vector<2x32xf32>
    %527 = vector.extract_strided_slice %13 {offsets = [7, 0, 0], sizes = [1, 2, 1], strides = [1, 1, 1]} : vector<8x2x1xi1> to vector<1x2x1xi1>
    %528 = vector.shape_cast %527 : vector<1x2x1xi1> to vector<2x1xi1>
    %529 = vector.extract_strided_slice %8 {offsets = [14, 0], sizes = [2, 384], strides = [1, 1]} : vector<16x384xf32> to vector<2x384xf32>
    %c8_112 = arith.constant 8 : index
    %c0_113 = arith.constant 0 : index
    %530 = vector.load %arg2[%c8_112, %c0_113] : memref<192x384xf32, #tpu.memory_space<vmem>>, vector<32x384xf32>
    %cst_114 = arith.constant dense<0.000000e+00> : vector<2x384xf32>
    %531 = tpu.matmul %489, %530, %cst_114 {dimension_numbers = #tpu.dot_dimension_numbers<[1], [0], [0], [1], [0, 0, 1, 1], [], []>} : vector<2x32xf32>, vector<32x384xf32>, vector<2x384xf32> -> vector<2x384xf32>
    %532 = vector.extract_strided_slice %529 {offsets = [0, 0], sizes = [2, 32], strides = [1, 1]} : vector<2x384xf32> to vector<2x32xf32>
    %533 = vector.extract_strided_slice %531 {offsets = [0, 0], sizes = [2, 32], strides = [1, 1]} : vector<2x384xf32> to vector<2x32xf32>
    %534 = arith.addf %532, %533 : vector<2x32xf32>
    %535 = arith.negf %534 : vector<2x32xf32>
    %536 = math.exp %535 : vector<2x32xf32>
    %cst_115 = arith.constant 1.000000e+00 : f32
    %537 = vector.broadcast %cst_115 : f32 to vector<2x32xf32>
    %538 = arith.addf %537, %536 : vector<2x32xf32>
    %539 = arith.divf %537, %538 : vector<2x32xf32>
    %540 = vector.extract_strided_slice %529 {offsets = [0, 128], sizes = [2, 32], strides = [1, 1]} : vector<2x384xf32> to vector<2x32xf32>
    %541 = vector.extract_strided_slice %531 {offsets = [0, 128], sizes = [2, 32], strides = [1, 1]} : vector<2x384xf32> to vector<2x32xf32>
    %542 = arith.addf %540, %541 : vector<2x32xf32>
    %543 = arith.negf %542 : vector<2x32xf32>
    %544 = math.exp %543 : vector<2x32xf32>
    %cst_116 = arith.constant 1.000000e+00 : f32
    %545 = vector.broadcast %cst_116 : f32 to vector<2x32xf32>
    %546 = arith.addf %545, %544 : vector<2x32xf32>
    %547 = arith.divf %545, %546 : vector<2x32xf32>
    %548 = vector.extract_strided_slice %529 {offsets = [0, 256], sizes = [2, 32], strides = [1, 1]} : vector<2x384xf32> to vector<2x32xf32>
    %549 = vector.extract_strided_slice %531 {offsets = [0, 256], sizes = [2, 32], strides = [1, 1]} : vector<2x384xf32> to vector<2x32xf32>
    %550 = vector.broadcast %1 : vector<1x32xf32> to vector<2x32xf32>
    %551 = arith.addf %549, %550 : vector<2x32xf32>
    %552 = arith.mulf %539, %551 : vector<2x32xf32>
    %553 = arith.addf %548, %552 : vector<2x32xf32>
    %554 = math.tanh %553 : vector<2x32xf32>
    %cst_117 = arith.constant 1.000000e+00 : f32
    %555 = vector.broadcast %cst_117 : f32 to vector<2x32xf32>
    %556 = arith.subf %555, %547 : vector<2x32xf32>
    %557 = arith.mulf %556, %554 : vector<2x32xf32>
    %558 = arith.mulf %547, %489 : vector<2x32xf32>
    %559 = arith.addf %557, %558 : vector<2x32xf32>
    %560 = vector.shape_cast %528 : vector<2x1xi1> to vector<2x1xi1>
    %561 = vector.broadcast %560 : vector<2x1xi1> to vector<2x32xi1>
    %562 = arith.select %561, %559, %489 : vector<2x32xi1>, vector<2x32xf32>
    %c40_118 = arith.constant 40 : index
    %c0_119 = arith.constant 0 : index
    %563 = vector.load %arg2[%c40_118, %c0_119] : memref<192x384xf32, #tpu.memory_space<vmem>>, vector<32x384xf32>
    %cst_120 = arith.constant dense<0.000000e+00> : vector<2x384xf32>
    %564 = tpu.matmul %562, %563, %cst_120 {dimension_numbers = #tpu.dot_dimension_numbers<[1], [0], [0], [1], [0, 0, 1, 1], [], []>} : vector<2x32xf32>, vector<32x384xf32>, vector<2x384xf32> -> vector<2x384xf32>
    %565 = vector.broadcast %2 : vector<1x384xf32> to vector<2x384xf32>
    %566 = arith.addf %564, %565 : vector<2x384xf32>
    %c72_121 = arith.constant 72 : index
    %c0_122 = arith.constant 0 : index
    %567 = vector.load %arg2[%c72_121, %c0_122] : memref<192x384xf32, #tpu.memory_space<vmem>>, vector<32x384xf32>
    %cst_123 = arith.constant dense<0.000000e+00> : vector<2x384xf32>
    %568 = tpu.matmul %526, %567, %cst_123 {dimension_numbers = #tpu.dot_dimension_numbers<[1], [0], [0], [1], [0, 0, 1, 1], [], []>} : vector<2x32xf32>, vector<32x384xf32>, vector<2x384xf32> -> vector<2x384xf32>
    %569 = vector.extract_strided_slice %566 {offsets = [0, 0], sizes = [2, 32], strides = [1, 1]} : vector<2x384xf32> to vector<2x32xf32>
    %570 = vector.extract_strided_slice %568 {offsets = [0, 0], sizes = [2, 32], strides = [1, 1]} : vector<2x384xf32> to vector<2x32xf32>
    %571 = arith.addf %569, %570 : vector<2x32xf32>
    %572 = arith.negf %571 : vector<2x32xf32>
    %573 = math.exp %572 : vector<2x32xf32>
    %cst_124 = arith.constant 1.000000e+00 : f32
    %574 = vector.broadcast %cst_124 : f32 to vector<2x32xf32>
    %575 = arith.addf %574, %573 : vector<2x32xf32>
    %576 = arith.divf %574, %575 : vector<2x32xf32>
    %577 = vector.extract_strided_slice %566 {offsets = [0, 128], sizes = [2, 32], strides = [1, 1]} : vector<2x384xf32> to vector<2x32xf32>
    %578 = vector.extract_strided_slice %568 {offsets = [0, 128], sizes = [2, 32], strides = [1, 1]} : vector<2x384xf32> to vector<2x32xf32>
    %579 = arith.addf %577, %578 : vector<2x32xf32>
    %580 = arith.negf %579 : vector<2x32xf32>
    %581 = math.exp %580 : vector<2x32xf32>
    %cst_125 = arith.constant 1.000000e+00 : f32
    %582 = vector.broadcast %cst_125 : f32 to vector<2x32xf32>
    %583 = arith.addf %582, %581 : vector<2x32xf32>
    %584 = arith.divf %582, %583 : vector<2x32xf32>
    %585 = vector.extract_strided_slice %566 {offsets = [0, 256], sizes = [2, 32], strides = [1, 1]} : vector<2x384xf32> to vector<2x32xf32>
    %586 = vector.extract_strided_slice %568 {offsets = [0, 256], sizes = [2, 32], strides = [1, 1]} : vector<2x384xf32> to vector<2x32xf32>
    %587 = vector.broadcast %3 : vector<1x32xf32> to vector<2x32xf32>
    %588 = arith.addf %586, %587 : vector<2x32xf32>
    %589 = arith.mulf %576, %588 : vector<2x32xf32>
    %590 = arith.addf %585, %589 : vector<2x32xf32>
    %591 = math.tanh %590 : vector<2x32xf32>
    %cst_126 = arith.constant 1.000000e+00 : f32
    %592 = vector.broadcast %cst_126 : f32 to vector<2x32xf32>
    %593 = arith.subf %592, %584 : vector<2x32xf32>
    %594 = arith.mulf %593, %591 : vector<2x32xf32>
    %595 = arith.mulf %584, %526 : vector<2x32xf32>
    %596 = arith.addf %594, %595 : vector<2x32xf32>
    %597 = vector.shape_cast %528 : vector<2x1xi1> to vector<2x1xi1>
    %598 = vector.broadcast %597 : vector<2x1xi1> to vector<2x32xi1>
    %599 = arith.select %598, %596, %526 : vector<2x32xi1>, vector<2x32xf32>
    %c104 = arith.constant 104 : index
    %c0_127 = arith.constant 0 : index
    %600 = vector.load %arg2[%c104, %c0_127] : memref<192x384xf32, #tpu.memory_space<vmem>>, vector<32x16xf32>
    %c188 = arith.constant 188 : index
    %c0_128 = arith.constant 0 : index
    %601 = vector.load %arg2[%c188, %c0_128] : memref<192x384xf32, #tpu.memory_space<vmem>>, vector<1x16xf32>
    %c136 = arith.constant 136 : index
    %c0_129 = arith.constant 0 : index
    %602 = vector.load %arg2[%c136, %c0_129] : memref<192x384xf32, #tpu.memory_space<vmem>>, vector<16x32xf32>
    %c189 = arith.constant 189 : index
    %c0_130 = arith.constant 0 : index
    %603 = vector.load %arg2[%c189, %c0_130] : memref<192x384xf32, #tpu.memory_space<vmem>>, vector<1x32xf32>
    %c152 = arith.constant 152 : index
    %c0_131 = arith.constant 0 : index
    %604 = vector.load %arg2[%c152, %c0_131] : memref<192x384xf32, #tpu.memory_space<vmem>>, vector<32x4xf32>
    %c190 = arith.constant 190 : index
    %c0_132 = arith.constant 0 : index
    %605 = vector.load %arg2[%c190, %c0_132] : memref<192x384xf32, #tpu.memory_space<vmem>>, vector<1x4xf32>
    %cst_133 = arith.constant dense<0.000000e+00> : vector<2x16xf32>
    %606 = tpu.matmul %599, %600, %cst_133 {dimension_numbers = #tpu.dot_dimension_numbers<[1], [0], [0], [1], [0, 0, 1, 1], [], []>} : vector<2x32xf32>, vector<32x16xf32>, vector<2x16xf32> -> vector<2x16xf32>
    %607 = vector.broadcast %601 : vector<1x16xf32> to vector<2x16xf32>
    %608 = arith.addf %606, %607 : vector<2x16xf32>
    %cst_134 = arith.constant dense<0.000000e+00> : vector<2x32xf32>
    %609 = tpu.matmul %608, %602, %cst_134 {dimension_numbers = #tpu.dot_dimension_numbers<[1], [0], [0], [1], [0, 0, 1, 1], [], []>} : vector<2x16xf32>, vector<16x32xf32>, vector<2x32xf32> -> vector<2x32xf32>
    %610 = vector.broadcast %603 : vector<1x32xf32> to vector<2x32xf32>
    %611 = arith.addf %609, %610 : vector<2x32xf32>
    %cst_135 = arith.constant 0.000000e+00 : f32
    %612 = vector.broadcast %cst_135 : f32 to vector<2x32xf32>
    %613 = arith.maximumf %611, %612 : vector<2x32xf32>
    %cst_136 = arith.constant dense<0.000000e+00> : vector<2x4xf32>
    %614 = tpu.matmul %613, %604, %cst_136 {dimension_numbers = #tpu.dot_dimension_numbers<[1], [0], [0], [1], [0, 0, 1, 1], [], []>} : vector<2x32xf32>, vector<32x4xf32>, vector<2x4xf32> -> vector<2x4xf32>
    %615 = vector.broadcast %605 : vector<1x4xf32> to vector<2x4xf32>
    %616 = arith.addf %614, %615 : vector<2x4xf32>
    %617 = arith.negf %616 : vector<2x4xf32>
    %618 = math.exp %617 : vector<2x4xf32>
    %cst_137 = arith.constant 1.000000e+00 : f32
    %619 = vector.broadcast %cst_137 : f32 to vector<2x4xf32>
    %620 = arith.addf %619, %618 : vector<2x4xf32>
    %621 = arith.divf %619, %620 : vector<2x4xf32>
    %c0_138 = arith.constant 0 : index
    %c0_139 = arith.constant 0 : index
    %622 = vector.load %arg3[%c0_138, %c0_139] : memref<2x4xf32, #tpu.memory_space<vmem>>, vector<2x4xf32>
    tpu.vector_store %arg3[%c0_138, %c0_139], %621 {strides = array<i32>} : memref<2x4xf32, #tpu.memory_space<vmem>>, vector<2x4xf32>,
    return
  }
}

</mosaic_0001>

<bundles_post_ra>
// kernel: tpu_custom_call.1
= control target key start
LH: loop header
LB: loop body
LE: loop exit
PB: predicated region body
PF: predicated region fallthrough
CT: control target
= control target key end

     0   :  { %8 = vsyncpa [#allocation3], 0  ;;  %s4035_s0 = inlined_call_operand.vmem [shape: f32[16,8], index: 0, kind: input, shape index: {}]   ;;  %s4036_s1 = inlined_call_operand.vmem [shape: s32[2,1], index: 1, kind: input, shape index: {}]   ;;  %s4037_s2 = inlined_call_operand.hbm [shape: f32[192,384], index: 2, kind: input, shape index: {}]   ;;  %s4038_s3 = inlined_call_operand.hbm [shape: f32[2,4], index: 3, kind: output, shape index: {}]  }
   0x1   :  { %9 = vsyncpa [#allocation4], 0  ;;  %s18_s14 = sshll.u32 %s4037_s2, 4  ;;  %s3072_s15 = smov [#allocation2]   ;;  %s19_s14 = int_to_ptr.hbm [resolvable:$true] %s18_s14 }
   0x2   :  { %s20_s16 = sshll.u32 %s3072_s15, 4  ;;  %s3073_s17 = smov 384   ;;  %s21_s16 = int_to_ptr.vmem [resolvable:$true] %s20_s16 }
   0x3   :  { %s3074_s18 = smov 24  }
   0x4   :  { %26 = dma.hbm_to_vmem [thread:$0]  %s19_s14, 9216, %s21_s16, [#allocation3], %s3073_s17, %s3073_s17, %s3074_s18  }
   0x5   :  { %3068 = dma.done.wait [#allocation3], 9216  }
   0x6   :  { %3069 = vsyncadd [#allocation3], 4294958080  ;;  %v4041_v0 = vmov 0   ;;  %v3104_v1 = vld [vmem:[#allocation2 + $0x60] sm:$0xff]  ;;  %v3106_v2 = vld [vmem:[#allocation2 + $0x48] sm:$0xff]  ;;  %vm49_vm0 = vcmask 64512  }
   0x7   :  { %2810 = vset.pattern.permute.xlu0 %v4041_v0  ;;  %2811 = vset.pattern.permute.xlu1 %v4041_v0  ;;  %v37_v3 = vld [vmem:[#allocation2] sm:$0xff]  ;;  %v3109_v4 = vld [vmem:[#allocation2 + $0x30] sm:$0xff]  ;;  %v38_v6 = vld [vmem:[#allocation2 + $0x8] sm:$0xff]  ;;  %v3076_v16 = vmov 0.0   ;;  %vm146_vm13 = vcmask 261120   ;;  %s2686_s28 = sshll.u32 %s4038_s3, 4  ;;  %s2687_s28 = int_to_ptr.hbm [resolvable:$true] %s2686_s28 }
   0x8   :  { %2812 = vset.pattern.permute.xlu2 %v4041_v0  ;;  %162 = vmatpush.msra.mxu3 %v3104_v1  ;;  %v40_v5 = vld [vmem:[%s4035_s0] sm:$0xff]  ;;  %v3116_v7 = vld [vmem:[#allocation2 + $0x70] sm:$0xff]  ;;  %v3118_v8 = vld [vmem:[#allocation2 + $0x18] sm:$0xff] }
   0x9   :  { %71 = vmatpush.msra.mxu0 %v37_v3  ;;  %94 = vmatpush.msra.mxu1 %v38_v6  ;;  %v3121_v9 = vld [vmem:[#allocation2 + $0x58] sm:$0xff]  ;;  %v3125_v10 = vld [vmem:[#allocation2 + $0x40] sm:$0xff]  ;;  %v39_v11 = vld [vmem:[#allocation2 + $0x10] sm:$0xff] }
   0xa   :  { %163 = vmatpush.msra.mxu3 %v3106_v2  ;;  %2696 = vmatmul.msk.f32.vlgmr.msra.gmra.mxu0 %vm49_vm0, %v40_v5  ;;  %v3130_v12 = vld [vmem:[%s4036_s1] sm:$0x3]  ;;  %v3132_v13 = vld [vmem:[#allocation2 + $0x68] sm:$0xff]  ;;  %v3142_v17 = vld [vmem:[#allocation2 + $0x50] sm:$0xff] }
   0xb   :  { %202 = vmatpush.msrb.mxu0 %v3116_v7  ;;  %2698 = vmatmul.msk.f32.vlgmr.msra.gmra.mxu1 %vm49_vm0, %v40_v5  ;;  %vm126_vm1 = vcmp.gt.s32.totalorder %v3130_v12, 0  ;;  %v3138_v14 = vld [vmem:[#allocation2 + $0x28] sm:$0xff]  ;;  %v3149_v19 = vld [vmem:[#allocation2 + $0x38] sm:$0xff]  ;;  %vm127_vm2 = vcmp.gt.s32.totalorder %v3130_v12, 1  ;;  %v3155_v20 = vld [vmem:[#allocation2 + $0x20] sm:$0xff]  ;;  %vm132_vm3 = vcmp.gt.s32.totalorder %v3130_v12, 6 }
   0xc   :  { %164 = vmatpush.msra.mxu3 %v3109_v4  ;;  %117 = vmatpush.msra.mxu2 %v39_v11  ;;  %v258_v15 = vsel %vm126_vm1, 1, %v4041_v0  ;;  %v41_v18 = vld [vmem:[%s4035_s0 + $0x8] sm:$0xff]  ;;  %4075 = vst [vmem:[#allocation8_spill] sm:$0xff] %v3149_v19  ;;  %v586_v21 = vsel %vm127_vm2, 1, %v4041_v0  ;;  %v2087_v22 = vsel %vm132_vm3, 1, %v4041_v0  ;;  %v3173_v29 = vld [vmem:[#allocation2 + $0x120] sm:$0xff] }
   0xd   :  { %203 = vmatpush.msrb.mxu0 %v3121_v9  ;;  %2700 = vmatmul.msk.f32.vlgmr.msra.gmra.mxu2 %vm49_vm0, %v40_v5  ;;  %4076 = vst [vmem:[#allocation9_spill] sm:$0xff] %v3155_v20  ;;  %v3166_v24 = vld [vmem:[#allocation2 + $0x228] ss:$8 sm:$0x7]  ;;  %v3194_v40 = vld [vmem:[#allocation2 + $0xc0] sm:$0xff] }
   0xe   :  { %165 = vmatpush.msra.mxu3 %v3118_v8  ;;  %260 = vperm.xlu0 %2810, %v258_v15   ;;  %4077 = vst [vmem:[#allocation10_spill] sm:$0xff] %v3166_v24  ;;  %v43_v25 = vperm.slane %v3166_v24, 0  ;;  %v4040_v32 = vperm.slane %v3166_v24, 1  ;;  %v3178_v33 = vld [vmem:[#allocation2 + $0x108] sm:$0xff]  ;;  %v3181_v36 = vld [vmem:[#allocation2 + $0xf0] sm:$0xff]  ;;  %v3188_v38 = vld [vmem:[#allocation2 + $0xd8] sm:$0xff] }
   0xf   :  { %166 = vmatmul.f32.vlgmr.msra.gmra.mxu3 %v3076_v16  ;;  %204 = vmatpush.msrb.mxu0 %v3125_v10  ;;  %v3191_v39 = vld [vmem:[#allocation2 + $0xd0] sm:$0xff]  ;;  %v3196_v41 = vld [vmem:[#allocation2 + $0xc8] sm:$0xff]  ;;  %v3203_v44 = vld [vmem:[#allocation2 + $0xb8] sm:$0xff] }
  0x10   :  { %182 = vmatpush.msrb.mxu3 %v3132_v13  ;;  %298 = vmatpush.msrb.mxu1 %v3194_v40  ;;  %v3205_v45 = vld [vmem:[#allocation2 + $0xa8] sm:$0xff]  ;;  %v3207_v46 = vld [vmem:[#allocation2 + $0xb0] sm:$0xff]  ;;  %v3211_v47 = vld [vmem:[#allocation2 + $0xa0] sm:$0xff] }
  0x11   :  { %205 = vmatpush.msrb.mxu0 %v3138_v14  ;;  %318 = vmatpush.msrb.mxu2 %v3196_v41  ;;  %v3213_v48 = vld [vmem:[#allocation2 + $0x90] sm:$0xff]  ;;  %v3215_v49 = vld [vmem:[#allocation2 + $0x98] sm:$0xff]  ;;  %v3219_v52 = vld [vmem:[#allocation2 + $0x88] sm:$0xff] }
  0x12   :  { %183 = vmatpush.msrb.mxu3 %v3142_v17  ;;  %2697 = vmatmul.msk.f32.gmra.mxu0 %vm49_vm0, %v41_v18  ;;  %v3221_v53 = vld [vmem:[#allocation2 + $0x78] sm:$0xff]  ;;  %v3225_v55 = vld [vmem:[#allocation2 + $0x80] sm:$0xff]  ;;  %v3234_v56 = vld [vmem:[#allocation2 + $0x128] sm:$0xff] }
  0x13   :  { %2699 = vmatmul.msk.f32.gmra.mxu1 %vm49_vm0, %v41_v18  ;;  %370 = vmatpush.msra.mxu0 %v3173_v29  ;;  %v3236_v57 = vld [vmem:[#allocation2 + $0x110] sm:$0xff]  ;;  %v3241_v58 = vld [vmem:[#allocation2 + $0xf8] sm:$0xff]  ;;  %v3246_v62 = vld [vmem:[#allocation2 + $0xe0] sm:$0xff] }
  0x14   :  { %184 = vmatpush.msrb.mxu3 %v3149_v19  ;;  %299 = vmatpush.msrb.mxu1 %v3205_v45  ;;  %v3253_v5 = vld [vmem:[#allocation2 + $0x239] ss:$0 sm:$0xff] }
  0x15   :  { %2701 = vmatmul.msk.f32.gmra.mxu2 %vm49_vm0, %v41_v18  ;;  %371 = vmatpush.msra.mxu0 %v3178_v33  ;;  %4081 = vst [vmem:[#allocation14_spill] sm:$0xff] %v3253_v5 }
  0x16   :  { %185 = vmatpush.msrb.mxu3 %v3155_v20  ;;  %588 = vperm.xlu0 %2810, %v586_v21   ;;  %v4039_v21 = vperm.slane %v3166_v24, 2 }
  0x17   :  { %186 = vmatmul.f32.vlgmr.msrb.gmra.mxu3 %v3076_v16  ;;  %372 = vmatpush.msra.mxu0 %v3181_v36 }
  0x18   :  { %338 = vmatpush.msra.mxu3 %v3191_v39  ;;  %319 = vmatpush.msrb.mxu2 %v3207_v46 }
  0x19   :  { %373 = vmatpush.msra.mxu0 %v3188_v38  ;;  %300 = vmatpush.msrb.mxu1 %v3213_v48 }
  0x1a   :  { %206 = vmatmul.f32.vlgmr.msrb.gmra.mxu0 %v3076_v16  ;;  %339 = vmatpush.msra.mxu3 %v3203_v44 }
  0x1b   :  { %499 = vmatpush.msrb.mxu0 %v3132_v13  ;;  %320 = vmatpush.msrb.mxu2 %v3215_v49 }
  0x1c   :  { %340 = vmatpush.msra.mxu3 %v3211_v47  ;;  %301 = vmatpush.msrb.mxu1 %v3221_v53 }
  0x1d   :  { %500 = vmatpush.msrb.mxu0 %v3142_v17  ;;  %321 = vmatpush.msrb.mxu2 %v3225_v55 }
  0x1e   :  { %2089 = vperm.xlu0 %2810, %v2087_v22   ;;  %341 = vmatpush.msra.mxu3 %v3219_v52 }
  0x1f   :  { %501 = vmatpush.msrb.mxu0 %v3149_v19  ;;  %390 = vmatpush.msra.mxu1 %v3234_v56 }
  0x20   :  { %479 = vmatpush.msrb.mxu3 %v3104_v1 }
  0x21   :  { %502 = vmatpush.msrb.mxu0 %v3155_v20  ;;  %391 = vmatpush.msra.mxu1 %v3236_v57 }
  0x22   :  { %374 = vmatmul.f32.vlgmr.msra.gmra.mxu0 %v3076_v16  ;;  %480 = vmatpush.msrb.mxu3 %v3106_v2 }
  0x23   :  { %650 = vmatpush.msra.mxu0 %v3191_v39  ;;  %392 = vmatpush.msra.mxu1 %v3241_v58 }
  0x24   :  { %481 = vmatpush.msrb.mxu3 %v3109_v4 }
  0x25   :  { %651 = vmatpush.msra.mxu0 %v3203_v44  ;;  %393 = vmatpush.msra.mxu1 %v3246_v62 }
  0x26   :  { %482 = vmatpush.msrb.mxu3 %v3118_v8 }
  0x27   :  { %652 = vmatpush.msra.mxu0 %v3211_v47 }
  0x29   :  { %653 = vmatpush.msra.mxu0 %v3219_v52 }
  0x87   :  { %v73_v23 = vpop.f32.mrf.mxu0 }
  0x88   :  { %v3169_v26 = vadd.f32 %v73_v23, %v43_v25  ;;  %v96_v34 = vpop.f32.mrf.mxu1 }
  0x89   :  { %v3186_v37 = vadd.f32 %v96_v34, %v4040_v32 }
  0x8a   :  { %4078 = vst [vmem:[#allocation11_spill] sm:$0xff] %v3169_v26 }
  0x8b   :  { %4080 = vst [vmem:[#allocation13_spill] sm:$0xff] %v3186_v37 }
  0x8f   :  { %v76_v27 = vpop.f32.mrf.mxu0 }
  0x90   :  { %v3171_v28 = vadd.f32 %v76_v27, %v43_v25  ;;  %v119_v22 = vpop.f32.mrf.mxu2 }
  0x92   :  { %4079 = vst [vmem:[#allocation12_spill] sm:$0xff] %v3171_v28  ;;  %v167_v30 = vpop.f32.mrf.mxu3 }
  0x93   :  { %v210_v31 = vadd.f32 %v167_v30, %v3169_v26 }
  0x95   :  { %v2702_v35 = vmul.f32 -1.442695, %v210_v31 }
  0x97   :  { %2813 = vpow2.f32 %v2702_v35  ;;  %v207_v6 = vpop.f32.mrf.mxu0  ;;  %v3259_v35 = vadd.f32 %v119_v22, %v4039_v21 }
  0x98   :  { %v250_v25 = vadd.f32 %v207_v6, %v3253_v5  ;;  %v3267_v6 = vld [vmem:[#allocation2 + $0x100] sm:$0xff] }
  0x9a   :  { %v187_v42 = vpop.f32.mrf.mxu3 }
  0x9b   :  { %v230_v43 = vadd.f32 %v187_v42, %v3186_v37 }
  0x9d   :  { %v2814_v50 = vpop.eup %2813  ;;  %v2703_v51 = vmul.f32 -1.442695, %v230_v43 }
  0x9e   :  { %v214_v54 = vadd.f32 1.0, %v2814_v50 }
  0x9f   :  { %2815 = vpow2.f32 %v2703_v51  ;;  %v3261_v51 = vld [vmem:[#allocation2 + $0x130] sm:$0xff] }
  0xa0   :  { %2817 = vrcp.f32 %v214_v54  ;;  %v226_v11 = vand.u32 2147483648, %v214_v54  ;;  %v224_v18 = vand.u32 2147483647, %v214_v54  ;;  %vm220_vm5 = vweird.f32 %v214_v54  ;;  %410 = vmatpush.msra.mxu2 %v3261_v51 }
  0xa2   :  { %v227_v30 = vor.u32 1.1754944e-38, %v226_v11  ;;  %vm225_vm7 = vcmp.eq.f32.partialorder %v224_v18, 8.507059e+37 }
  0xa5   :  { %v2816_v59 = vpop.eup %2815 }
  0xa6   :  { %v2818_v60 = vpop.eup %2817  ;;  %v234_v61 = vadd.f32 1.0, %v2816_v59  ;;  %v3263_v59 = vld [vmem:[#allocation2 + $0x118] sm:$0xff] }
  0xa7   :  { %v216_v63 = vmul.f32 %v2818_v60, %v214_v54  ;;  %vm221_vm4 = vweird.f32 %v2818_v60  ;;  %411 = vmatpush.msra.mxu2 %v3263_v59 }
  0xa8   :  { %2819 = vrcp.f32 %v234_v61  ;;  %vm222_vm6 = vmor %vm220_vm5, %vm221_vm4  ;;  %v246_v54 = vand.u32 2147483648, %v234_v61  ;;  %vm240_vm9 = vweird.f32 %v234_v61 }
  0xa9   :  { %v217_v3 = vsub.f32 1.0, %v216_v63  ;;  %412 = vmatpush.msra.mxu2 %v3267_v6 }
  0xaa   :  { %v247_v18 = vor.u32 1.1754944e-38, %v246_v54  ;;  %v3329_v54 = vpop.f32.mrf.mxu2 }
  0xab   :  { %v218_v15 = vmul.f32 %v2818_v60, %v217_v3  ;;  %v244_v3 = vand.u32 2147483647, %v234_v61  ;;  %4083 = vst [vmem:[#allocation16_spill] sm:$0xff] %v3329_v54 }
  0xad   :  { %v219_v23 = vadd.f32 %v2818_v60, %v218_v15  ;;  %v3270_v15 = vld [vmem:[#allocation2 + $0xe8] sm:$0xff]  ;;  %vm245_vm11 = vcmp.eq.f32.partialorder %v244_v3, 8.507059e+37 }
  0xae   :  { %v2820_v27 = vpop.eup %2819  ;;  %413 = vmatpush.msra.mxu2 %v3270_v15 }
  0xaf   :  { %v236_v31 = vmul.f32 %v2820_v27, %v234_v61  ;;  %v223_v34 = vsel %vm222_vm6, %v2818_v60, %v219_v23  ;;  %vm241_vm8 = vweird.f32 %v2820_v27 }
  0xb0   :  { %v228_v42 = vsel %vm225_vm7, %v227_v30, %v223_v34  ;;  %vm242_vm10 = vmor %vm240_vm9, %vm241_vm8 }
  0xb1   :  { %v237_v43 = vsub.f32 1.0, %v236_v31  ;;  %v251_v50 = vmul.f32 %v250_v25, %v228_v42  ;;  %v3274_v31 = vpop.permute.xlu0 %260 }
  0xb2   :  { %vm262_vm12 = vcmp.eq.s32.totalorder %v3274_v31, 1 }
  0xb3   :  { %v238_v63 = vmul.f32 %v2820_v27, %v237_v43  ;;  %v252_v60 = vadd.f32 %v251_v50, %v3259_v35  ;;  %v35_v50 = vld [vmem:[#allocation2 + $0x22a] ss:$8 sm:$0x7] }
  0xb5   :  { %v239_v11 = vadd.f32 %v2820_v27, %v238_v63  ;;  %2821 = vtanh.f32 %v252_v60  ;;  %v3331_v63 = vperm.slane %v35_v50, 0 }
  0xb7   :  { %v243_v22 = vsel %vm242_vm10, %v2820_v27, %v239_v11  ;;  %v375_v27 = vpop.f32.mrf.mxu0  ;;  %4084 = vst [vmem:[#allocation17_spill] sm:$0xff] %v3331_v63 }
  0xb8   :  { %v248_v23 = vsel %vm245_vm11, %v247_v18, %v243_v22 }
  0xb9   :  { %v254_v25 = vsub.f32 1.0, %v248_v23  ;;  %v256_v42 = vmul.f32 0.0, %v248_v23  ;;  %v3334_v23 = vperm.slane %v35_v50, 1 }
  0xbb   :  { %v2822_v30 = vpop.eup %2821  ;;  %4085 = vst [vmem:[#allocation18_spill] sm:$0xff] %v3334_v23 }
  0xbc   :  { %v255_v34 = vmul.f32 %v2822_v30, %v254_v25 }
  0xbe   :  { %v257_v61 = vadd.f32 %v256_v42, %v255_v34 }
  0xc0   :  { %v3279_v43 = vsel %vm262_vm12, %v257_v61, 0.0 }
  0xc1   :  { %2704 = vmatmul.msk.f32.vlgmr.msrb.gmra.mxu1 %vm146_vm13, %v3279_v43  ;;  %2705 = vmatmul.msk.f32.vlgmr.msrb.gmra.mxu2 %vm146_vm13, %v3279_v43 }
  0xc2   :  { %2706 = vmatmul.msk.f32.vlgmr.msra.gmra.mxu3 %vm146_vm13, %v3279_v43  ;;  %2710 = vmatmul.msk.f32.vlgmr.msrb.gmra.mxu0 %vm146_vm13, %v3279_v43 }
  0xc3   :  { %519 = vmatpush.msrb.mxu1 %v3116_v7  ;;  %610 = vmatpush.msrb.mxu2 %v3194_v40 }
  0xc4   :  { %630 = vmatpush.msra.mxu3 %v3196_v41  ;;  %782 = vmatpush.msrb.mxu0 %v3104_v1 }
  0xc5   :  { %520 = vmatpush.msrb.mxu1 %v3121_v9  ;;  %611 = vmatpush.msrb.mxu2 %v3205_v45 }
  0xc6   :  { %631 = vmatpush.msra.mxu3 %v3207_v46  ;;  %783 = vmatpush.msrb.mxu0 %v3106_v2 }
  0xc7   :  { %521 = vmatpush.msrb.mxu1 %v3125_v10  ;;  %612 = vmatpush.msrb.mxu2 %v3213_v48 }
  0xc8   :  { %632 = vmatpush.msra.mxu3 %v3215_v49  ;;  %784 = vmatpush.msrb.mxu0 %v3109_v4 }
  0xc9   :  { %394 = vmatmul.f32.vlgmr.msra.gmra.mxu1 %v3076_v16  ;;  %414 = vmatmul.f32.vlgmr.msra.gmra.mxu2 %v3076_v16  ;;  %v3327_v16 = vpop.f32.mrf.mxu1 }
  0xca   :  { %2709 = vmatmul.msk.f32.vlgmr.msrb.gmra.mxu3 %vm146_vm13, %v3279_v43  ;;  %522 = vmatpush.msrb.mxu1 %v3138_v14  ;;  %4082 = vst [vmem:[#allocation15_spill] sm:$0xff] %v3327_v16 }
  0xcb   :  { %613 = vmatpush.msrb.mxu2 %v3221_v53  ;;  %633 = vmatpush.msra.mxu3 %v3225_v55 }
  0xcc   :  { %673 = vmatpush.msra.mxu1 %v3173_v29  ;;  %785 = vmatpush.msrb.mxu0 %v3118_v8 }
  0xcd   :  { %693 = vmatpush.msra.mxu2 %v3234_v56  ;;  %713 = vmatpush.msrb.mxu3 %v3261_v51 }
  0xce   :  { %674 = vmatpush.msra.mxu1 %v3178_v33 }
  0xcf   :  { %694 = vmatpush.msra.mxu2 %v3236_v57  ;;  %714 = vmatpush.msrb.mxu3 %v3263_v59 }
  0xd0   :  { %675 = vmatpush.msra.mxu1 %v3181_v36 }
  0xd1   :  { %695 = vmatpush.msra.mxu2 %v3241_v58  ;;  %2711 = vmatmul.msk.f32.vlgmr.msrb.gmra.mxu1 %vm146_vm13, %v3279_v43 }
  0xd2   :  { %715 = vmatpush.msrb.mxu3 %v3267_v6  ;;  %676 = vmatpush.msra.mxu1 %v3188_v38 }
  0xd3   :  { %696 = vmatpush.msra.mxu2 %v3246_v62 }
  0xd4   :  { %802 = vmatpush.msrb.mxu1 %v3132_v13  ;;  %716 = vmatpush.msrb.mxu3 %v3270_v15 }
  0xd6   :  { %803 = vmatpush.msrb.mxu1 %v3142_v17 }
  0xd8   :  { %804 = vmatpush.msrb.mxu1 %v3149_v19 }
  0xda   :  { %805 = vmatpush.msrb.mxu1 %v3155_v20 }
 0x13e   :  { %v303_v3 = vpop.f32.mrf.mxu1 }
 0x13f   :  { %v304_v60 = vadd.f32 %v303_v3, %v3331_v63  ;;  %v504_v11 = vpop.f32.mrf.mxu0 }
 0x140   :  { %v551_v18 = vrot.slane %v504_v11, 6 }
 0x141   :  { %v418_v22 = vadd.f32 %v375_v27, %v304_v60 }
 0x142   :  { %v553_v30 = vadd.f32 %v551_v18, %v3186_v37 }
 0x143   :  { %v2707_v25 = vmul.f32 -1.442695, %v418_v22 }
 0x144   :  { %v323_v34 = vpop.f32.mrf.mxu2  ;;  %v2713_v0 = vmul.f32 -1.442695, %v553_v30 }
 0x145   :  { %2823 = vpow2.f32 %v2707_v25  ;;  %v324_v42 = vadd.f32 %v323_v34, %v3334_v23  ;;  %v343_v61 = vpop.f32.mrf.mxu3  ;;  %v3344_v23 = vperm.slane %v35_v50, 2 }
 0x146   :  { %v395_v21 = vpop.f32.mrf.mxu1 }
 0x147   :  { %v438_v32 = vadd.f32 %v395_v21, %v324_v42  ;;  %4087 = vst [vmem:[#allocation20_spill] sm:$0xff] %v3344_v23  ;;  %v344_v19 = vadd.f32 %v343_v61, %v3344_v23 }
 0x149   :  { %v2708_v54 = vmul.f32 -1.442695, %v438_v32 }
 0x14b   :  { %v2824_v28 = vpop.eup %2823  ;;  %2825 = vpow2.f32 %v2708_v54 }
 0x14c   :  { %v422_v3 = vadd.f32 1.0, %v2824_v28  ;;  %2827 = vpow2.f32 %v2713_v0  ;;  %v3342_v28 = vld [vmem:[#allocation2 + $0x23b] ss:$0 sm:$0xff]  ;;  %v415_v0 = vpop.f32.mrf.mxu2 }
 0x14d   :  { %v484_v11 = vpop.f32.mrf.mxu3  ;;  %4086 = vst [vmem:[#allocation19_spill] sm:$0xff] %v3342_v28 }
 0x14e   :  { %2829 = vrcp.f32 %v422_v3  ;;  %v528_v27 = vrot.slane %v484_v11, 6  ;;  %v434_v30 = vand.u32 2147483648, %v422_v3  ;;  %v432_v11 = vand.u32 2147483647, %v422_v3 }
 0x14f   :  { %vm428_vm15 = vweird.f32 %v422_v3 }
 0x150   :  { %v530_v60 = vadd.f32 %v528_v27, %v3169_v26  ;;  %v435_v63 = vor.u32 1.1754944e-38, %v434_v30  ;;  %vm433_vm1 = vcmp.eq.f32.partialorder %v432_v11, 8.507059e+37 }
 0x151   :  { %v2826_v22 = vpop.eup %2825 }
 0x152   :  { %v2828_v18 = vpop.eup %2827  ;;  %v442_v16 = vadd.f32 1.0, %v2826_v22  ;;  %v2712_v25 = vmul.f32 -1.442695, %v530_v60 }
 0x153   :  { %v3339_v34 = vadd.f32 1.0, %v2828_v18 }
 0x154   :  { %v2830_v24 = vpop.eup %2829  ;;  %2831 = vrcp.f32 %v442_v16  ;;  %vm448_vm3 = vweird.f32 %v442_v16 }
 0x155   :  { %2833 = vpow2.f32 %v2712_v25  ;;  %v424_v21 = vmul.f32 %v2830_v24, %v422_v3  ;;  %vm429_vm14 = vweird.f32 %v2830_v24  ;;  %v458_v25 = vadd.f32 %v415_v0, %v3342_v28 }
 0x156   :  { %2835 = vrcp.f32 %v3339_v34  ;;  %vm430_vm0 = vmor %vm428_vm15, %vm429_vm14  ;;  %v454_v3 = vand.u32 2147483648, %v442_v16  ;;  %vm563_vm11 = vweird.f32 %v3339_v34  ;;  %vm128_vm15 = vcmp.gt.s32.totalorder %v3130_v12, 2 }
 0x157   :  { %v425_v32 = vsub.f32 1.0, %v424_v21 }
 0x158   :  { %v455_v11 = vor.u32 1.1754944e-38, %v454_v3 }
 0x159   :  { %v426_v54 = vmul.f32 %v2830_v24, %v425_v32 }
 0x15a   :  { %v2832_v42 = vpop.eup %2831 }
 0x15b   :  { %v2834_v27 = vpop.eup %2833  ;;  %v444_v22 = vmul.f32 %v2832_v42, %v442_v16  ;;  %v427_v60 = vadd.f32 %v2830_v24, %v426_v54  ;;  %vm449_vm2 = vweird.f32 %v2832_v42 }
 0x15c   :  { %v534_v18 = vadd.f32 1.0, %v2834_v27  ;;  %v3347_v32 = vpop.eup %2835  ;;  %v452_v27 = vand.u32 2147483647, %v442_v16  ;;  %vm450_vm4 = vmor %vm448_vm3, %vm449_vm2 }
 0x15d   :  { %v445_v21 = vsub.f32 1.0, %v444_v22  ;;  %v431_v26 = vsel %vm430_vm0, %v2830_v24, %v427_v60  ;;  %v559_v0 = vmul.f32 %v3347_v32, %v3339_v34  ;;  %v524_v60 = vpop.f32.mrf.mxu1  ;;  %vm564_vm10 = vweird.f32 %v3347_v32 }
 0x15e   :  { %2837 = vrcp.f32 %v534_v18  ;;  %v436_v20 = vsel %vm433_vm1, %v435_v63, %v431_v26  ;;  %vm453_vm5 = vcmp.eq.f32.partialorder %v452_v27, 8.507059e+37  ;;  %v544_v16 = vand.u32 2147483647, %v534_v18  ;;  %vm565_vm14 = vmor %vm563_vm11, %vm564_vm10 }
 0x15f   :  { %v446_v37 = vmul.f32 %v2832_v42, %v445_v21  ;;  %v459_v54 = vmul.f32 %v458_v25, %v436_v20  ;;  %v560_v26 = vsub.f32 1.0, %v559_v0  ;;  %v546_v20 = vand.u32 2147483648, %v534_v18 }
 0x160   :  { %v573_v25 = vadd.f32 %v524_v60, %v3253_v5  ;;  %vm540_vm7 = vweird.f32 %v534_v18  ;;  %vm545_vm9 = vcmp.eq.f32.partialorder %v544_v16, 8.507059e+37  ;;  %v569_v60 = vand.u32 2147483648, %v3339_v34 }
 0x161   :  { %v447_v50 = vadd.f32 %v2832_v42, %v446_v37  ;;  %v460_v22 = vadd.f32 %v459_v54, %v344_v19  ;;  %v561_v19 = vmul.f32 %v3347_v32, %v560_v26  ;;  %vm129_vm0 = vcmp.gt.s32.totalorder %v3130_v12, 3 }
 0x162   :  { %v575_v0 = vrot.slane %v573_v25, 6  ;;  %vm133_vm1 = vcmp.gt.s32.totalorder %v3130_v12, 7 }
 0x163   :  { %v451_v24 = vsel %vm450_vm4, %v2832_v42, %v447_v50  ;;  %2839 = vtanh.f32 %v460_v22  ;;  %v547_v50 = vor.u32 1.1754944e-38, %v546_v20  ;;  %v582_v20 = vrot.slane %v3279_v43, 6 }
 0x164   :  { %v2838_v30 = vpop.eup %2837  ;;  %v456_v63 = vsel %vm453_vm5, %v455_v11, %v451_v24  ;;  %v562_v11 = vadd.f32 %v3347_v32, %v561_v19 }
 0x165   :  { %v536_v21 = vmul.f32 %v2838_v30, %v534_v18  ;;  %vm541_vm6 = vweird.f32 %v2838_v30  ;;  %v462_v28 = vsub.f32 1.0, %v456_v63  ;;  %v464_v3 = vmul.f32 0.0, %v456_v63 }
 0x166   :  { %vm542_vm8 = vmor %vm540_vm7, %vm541_vm6  ;;  %v566_v18 = vsel %vm565_vm14, %v3347_v32, %v562_v11  ;;  %v570_v63 = vor.u32 1.1754944e-38, %v569_v60 }
 0x167   :  { %v537_v61 = vsub.f32 1.0, %v536_v21 }
 0x169   :  { %v538_v37 = vmul.f32 %v2838_v30, %v537_v61  ;;  %v2840_v23 = vpop.eup %2839 }
 0x16a   :  { %v463_v54 = vmul.f32 %v2840_v23, %v462_v28  ;;  %v567_v23 = vand.u32 2147483647, %v3339_v34 }
 0x16b   :  { %v539_v42 = vadd.f32 %v2838_v30, %v538_v37 }
 0x16c   :  { %v465_v22 = vadd.f32 %v464_v3, %v463_v54 }
 0x16d   :  { %v543_v27 = vsel %vm542_vm8, %v2838_v30, %v539_v42  ;;  %v4088_v30 = vmov 0   ;;  %v3377_v42 = vpop.permute.xlu0 %588 }
 0x16e   :  { %v548_v24 = vsel %vm545_vm9, %v547_v50, %v543_v27  ;;  %v3359_v26 = vsel %vm262_vm12, %v465_v22, 0.0  ;;  %v889_v31 = vsel %vm128_vm15, 1, %v4088_v30  ;;  %vm568_vm12 = vcmp.eq.f32.partialorder %v567_v23, 8.507059e+37 }
 0x16f   :  { %v577_v21 = vmul.f32 %v575_v0, %v548_v24  ;;  %2717 = vmatmul.msk.f32.vlgmr.msra.gmra.mxu1 %vm146_vm13, %v3359_v26  ;;  %891 = vperm.xlu1 %2811, %v889_v31   ;;  %v571_v34 = vsel %vm568_vm12, %v570_v63, %v566_v18  ;;  %v1192_v32 = vsel %vm129_vm0, 1, %v4088_v30  ;;  %vm590_vm2 = vcmp.eq.s32.totalorder %v3377_v42, 1  ;;  %v4092_v0 = vld [vmem:[#allocation17_spill] sm:$0xff] }
 0x170   :  { %953 = vmatpush.msra.mxu1 %v3191_v39  ;;  %v580_v61 = vsub.f32 1.0, %v571_v34  ;;  %v584_v16 = vmul.f32 %v582_v20, %v571_v34  ;;  %v2390_v50 = vsel %vm133_vm1, 1, %v4088_v30 }
 0x171   :  { %v578_v28 = vadd.f32 %v577_v21, %v3259_v35  ;;  %v4093_v21 = vld [vmem:[#allocation11_spill] sm:$0xff] }
 0x172   :  { %954 = vmatpush.msra.mxu1 %v3203_v44 }
 0x173   :  { %2841 = vtanh.f32 %v578_v28  ;;  %v4094_v28 = vld [vmem:[#allocation18_spill] sm:$0xff] }
 0x174   :  { %955 = vmatpush.msra.mxu1 %v3211_v47 }
 0x176   :  { %956 = vmatpush.msra.mxu1 %v3219_v52 }
 0x177   :  { %1194 = vperm.xlu1 %2811, %v1192_v32  }
 0x179   :  { %v2842_v25 = vpop.eup %2841 }
 0x17a   :  { %v581_v37 = vmul.f32 %v2842_v25, %v580_v61 }
 0x17c   :  { %v585_v19 = vadd.f32 %v584_v16, %v581_v37 }
 0x17e   :  { %v592_v54 = vrot.slane %v585_v19, 2 }
 0x17f   :  { %2392 = vperm.xlu1 %2811, %v2390_v50  }
 0x180   :  { %v3383_v3 = vsel %vm590_vm2, %v592_v54, %v3279_v43 }
 0x181   :  { %2714 = vmatmul.msk.f32.vlgmr.msrb.gmra.mxu2 %vm146_vm13, %v3383_v3  ;;  %2715 = vmatmul.msk.f32.vlgmr.msra.gmra.mxu3 %vm146_vm13, %v3383_v3 }
 0x182   :  { %2716 = vmatmul.msk.f32.vlgmr.msra.gmra.mxu0 %vm146_vm13, %v3383_v3  ;;  %2723 = vmatmul.msk.f32.vlgmr.msrb.gmra.mxu1 %vm146_vm13, %v3383_v3 }
 0x183   :  { %822 = vmatpush.msrb.mxu2 %v3116_v7  ;;  %913 = vmatpush.msra.mxu3 %v3194_v40 }
 0x184   :  { %933 = vmatpush.msra.mxu0 %v3196_v41  ;;  %1085 = vmatpush.msrb.mxu1 %v3104_v1  ;;  %v4089_v1 = vld [vmem:[#allocation8_spill] sm:$0xff] }
 0x185   :  { %823 = vmatpush.msrb.mxu2 %v3121_v9  ;;  %914 = vmatpush.msra.mxu3 %v3205_v45 }
 0x186   :  { %934 = vmatpush.msra.mxu0 %v3207_v46  ;;  %1086 = vmatpush.msrb.mxu1 %v3106_v2  ;;  %v4090_v2 = vld [vmem:[#allocation9_spill] sm:$0xff] }
 0x187   :  { %824 = vmatpush.msrb.mxu2 %v3125_v10  ;;  %915 = vmatpush.msra.mxu3 %v3213_v48  ;;  %v4091_v10 = vld [vmem:[#allocation13_spill] sm:$0xff] }
 0x188   :  { %935 = vmatpush.msra.mxu0 %v3215_v49  ;;  %1087 = vmatpush.msrb.mxu1 %v3109_v4 }
 0x189   :  { %2718 = vmatmul.msk.f32.vlgmr.msra.gmra.mxu2 %vm146_vm13, %v3359_v26  ;;  %2719 = vmatmul.msk.f32.vlgmr.msrb.gmra.mxu3 %vm146_vm13, %v3359_v26 }
 0x18a   :  { %2722 = vmatmul.msk.f32.vlgmr.msrb.gmra.mxu0 %vm146_vm13, %v3383_v3  ;;  %825 = vmatpush.msrb.mxu2 %v3138_v14 }
 0x18b   :  { %916 = vmatpush.msra.mxu3 %v3221_v53  ;;  %936 = vmatpush.msra.mxu0 %v3225_v55 }
 0x18c   :  { %976 = vmatpush.msra.mxu2 %v3173_v29  ;;  %1088 = vmatpush.msrb.mxu1 %v3118_v8 }
 0x18d   :  { %996 = vmatpush.msrb.mxu3 %v3234_v56  ;;  %1016 = vmatpush.msrb.mxu0 %v3261_v51 }
 0x18e   :  { %977 = vmatpush.msra.mxu2 %v3178_v33 }
 0x18f   :  { %997 = vmatpush.msrb.mxu3 %v3236_v57  ;;  %1017 = vmatpush.msrb.mxu0 %v3263_v59 }
 0x190   :  { %978 = vmatpush.msra.mxu2 %v3181_v36 }
 0x191   :  { %998 = vmatpush.msrb.mxu3 %v3241_v58  ;;  %2724 = vmatmul.msk.f32.vlgmr.msrb.gmra.mxu2 %vm146_vm13, %v3383_v3 }
 0x192   :  { %1018 = vmatpush.msrb.mxu0 %v3267_v6  ;;  %979 = vmatpush.msra.mxu2 %v3188_v38 }
 0x193   :  { %999 = vmatpush.msrb.mxu3 %v3246_v62 }
 0x194   :  { %1105 = vmatpush.msrb.mxu2 %v3132_v13  ;;  %1019 = vmatpush.msrb.mxu0 %v3270_v15 }
 0x196   :  { %1106 = vmatpush.msrb.mxu2 %v3142_v17 }
 0x198   :  { %1107 = vmatpush.msrb.mxu2 %v4089_v1 }
 0x19a   :  { %1108 = vmatpush.msrb.mxu2 %v4090_v2 }
 0x1ec   :  { %v678_v4 = vpop.f32.mrf.mxu1 }
 0x1ff   :  { %v655_v7 = vpop.f32.mrf.mxu0  ;;  %v807_v8 = vpop.f32.mrf.mxu1 }
 0x200   :  { %v854_v9 = vrot.slane %v807_v8, 4 }
 0x202   :  { %v856_v12 = vadd.f32 %v854_v9, %v4091_v10 }
 0x204   :  { %v2726_v43 = vmul.f32 -1.442695, %v856_v12  ;;  %v615_v27 = vpop.f32.mrf.mxu2  ;;  %v635_v11 = vpop.f32.mrf.mxu3 }
 0x205   :  { %v616_v22 = vadd.f32 %v615_v27, %v4092_v0  ;;  %v636_v18 = vadd.f32 %v635_v11, %v4094_v28 }
 0x206   :  { %2843 = vpow2.f32 %v2726_v43 }
 0x207   :  { %v721_v13 = vadd.f32 %v678_v4, %v616_v22  ;;  %v787_v24 = vpop.f32.mrf.mxu0 }
 0x208   :  { %v831_v60 = vrot.slane %v787_v24, 4  ;;  %v4095_v24 = vld [vmem:[#allocation20_spill] sm:$0xff] }
 0x209   :  { %v2720_v17 = vmul.f32 -1.442695, %v721_v13  ;;  %v656_v11 = vadd.f32 %v655_v7, %v4095_v24 }
 0x20a   :  { %v833_v23 = vadd.f32 %v831_v60, %v4093_v21 }
 0x20b   :  { %2845 = vpow2.f32 %v2720_v17 }
 0x20c   :  { %v2844_v31 = vpop.eup %2843  ;;  %v2725_v63 = vmul.f32 -1.442695, %v833_v23  ;;  %v698_v34 = vpop.f32.mrf.mxu2 }
 0x20d   :  { %v741_v61 = vadd.f32 %v698_v34, %v636_v18  ;;  %v3438_v20 = vadd.f32 1.0, %v2844_v31  ;;  %v718_v9 = vpop.f32.mrf.mxu3  ;;  %v4096_v18 = vld [vmem:[#allocation19_spill] sm:$0xff] }
 0x20e   :  { %2847 = vpow2.f32 %v2725_v63  ;;  %v761_v31 = vadd.f32 %v718_v9, %v4096_v18 }
 0x20f   :  { %v2721_v32 = vmul.f32 -1.442695, %v741_v61  ;;  %vm866_vm0 = vweird.f32 %v3438_v20 }
 0x211   :  { %v2846_v25 = vpop.eup %2845  ;;  %2849 = vpow2.f32 %v2721_v32 }
 0x212   :  { %2851 = vrcp.f32 %v3438_v20  ;;  %v725_v37 = vadd.f32 1.0, %v2846_v25 }
 0x214   :  { %v2848_v16 = vpop.eup %2847  ;;  %2853 = vrcp.f32 %v725_v37  ;;  %v735_v27 = vand.u32 2147483647, %v725_v37  ;;  %v737_v22 = vand.u32 2147483648, %v725_v37  ;;  %v827_v13 = vpop.f32.mrf.mxu2  ;;  %vm731_vm4 = vweird.f32 %v725_v37 }
 0x215   :  { %v837_v19 = vadd.f32 1.0, %v2848_v16  ;;  %v876_v32 = vadd.f32 %v827_v13, %v3253_v5 }
 0x216   :  { %vm736_vm5 = vcmp.eq.f32.partialorder %v735_v27, 8.507059e+37 }
 0x217   :  { %v2850_v54 = vpop.eup %2849  ;;  %2855 = vrcp.f32 %v837_v19  ;;  %v849_v61 = vand.u32 2147483648, %v837_v19  ;;  %v847_v7 = vand.u32 2147483647, %v837_v19  ;;  %vm843_vm9 = vweird.f32 %v837_v19 }
 0x218   :  { %v3441_v50 = vpop.eup %2851  ;;  %v745_v1 = vadd.f32 1.0, %v2850_v54  ;;  %v738_v54 = vor.u32 1.1754944e-38, %v737_v22  ;;  %v878_v18 = vrot.slane %v876_v32, 4 }
 0x219   :  { %v862_v4 = vmul.f32 %v3441_v50, %v3438_v20  ;;  %vm867_vm8 = vweird.f32 %v3441_v50  ;;  %v850_v30 = vor.u32 1.1754944e-38, %v849_v61  ;;  %vm848_vm15 = vcmp.eq.f32.partialorder %v847_v7, 8.507059e+37 }
 0x21a   :  { %v2854_v2 = vpop.eup %2853  ;;  %2857 = vrcp.f32 %v745_v1  ;;  %vm751_vm14 = vweird.f32 %v745_v1  ;;  %v755_v22 = vand.u32 2147483647, %v745_v1  ;;  %v872_v61 = vand.u32 2147483648, %v3438_v20 }
 0x21b   :  { %v727_v8 = vmul.f32 %v2854_v2, %v725_v37  ;;  %v863_v17 = vsub.f32 1.0, %v862_v4  ;;  %vm732_vm3 = vweird.f32 %v2854_v2 }
 0x21c   :  { %vm733_vm6 = vmor %vm731_vm4, %vm732_vm3  ;;  %vm756_vm1 = vcmp.eq.f32.partialorder %v755_v22, 8.507059e+37 }
 0x21d   :  { %v2856_v12 = vpop.eup %2855  ;;  %v728_v43 = vsub.f32 1.0, %v727_v8  ;;  %v864_v9 = vmul.f32 %v3441_v50, %v863_v17  ;;  %vm868_vm3 = vmor %vm866_vm0, %vm867_vm8 }
 0x21e   :  { %v839_v60 = vmul.f32 %v2856_v12, %v837_v19  ;;  %vm844_vm7 = vweird.f32 %v2856_v12 }
 0x21f   :  { %v729_v23 = vmul.f32 %v2854_v2, %v728_v43  ;;  %vm845_vm11 = vmor %vm843_vm9, %vm844_vm7  ;;  %v865_v19 = vadd.f32 %v3441_v50, %v864_v9 }
 0x220   :  { %v2858_v63 = vpop.eup %2857  ;;  %v840_v34 = vsub.f32 1.0, %v839_v60 }
 0x221   :  { %v747_v25 = vmul.f32 %v2858_v63, %v745_v1  ;;  %v730_v16 = vadd.f32 %v2854_v2, %v729_v23  ;;  %vm752_vm10 = vweird.f32 %v2858_v63  ;;  %v757_v23 = vand.u32 2147483648, %v745_v1 }
 0x222   :  { %v841_v8 = vmul.f32 %v2856_v12, %v840_v34  ;;  %vm753_vm12 = vmor %vm751_vm14, %vm752_vm10 }
 0x223   :  { %v748_v4 = vsub.f32 1.0, %v747_v25  ;;  %v734_v43 = vsel %vm733_vm6, %v2854_v2, %v730_v16  ;;  %v758_v32 = vor.u32 1.1754944e-38, %v757_v23 }
 0x224   :  { %v739_v37 = vsel %vm736_vm5, %v738_v54, %v734_v43  ;;  %v842_v60 = vadd.f32 %v2856_v12, %v841_v8 }
 0x225   :  { %v749_v13 = vmul.f32 %v2858_v63, %v748_v4  ;;  %v762_v27 = vmul.f32 %v761_v31, %v739_v37  ;;  %v870_v31 = vand.u32 2147483647, %v3438_v20  ;;  %v885_v20 = vrot.slane %v3383_v3, 4 }
 0x226   :  { %v846_v34 = vsel %vm845_vm11, %v2856_v12, %v842_v60  ;;  %v869_v12 = vsel %vm868_vm3, %v3441_v50, %v865_v19  ;;  %v3466_v60 = vpop.permute.xlu1 %891 }
 0x227   :  { %v750_v5 = vadd.f32 %v2858_v63, %v749_v13  ;;  %v763_v25 = vadd.f32 %v762_v27, %v656_v11  ;;  %v851_v2 = vsel %vm848_vm15, %v850_v30, %v846_v34  ;;  %v873_v11 = vor.u32 1.1754944e-38, %v872_v61 }
 0x228   :  { %v880_v17 = vmul.f32 %v878_v18, %v851_v2  ;;  %vm871_vm4 = vcmp.eq.f32.partialorder %v870_v31, 8.507059e+37  ;;  %vm893_vm5 = vcmp.eq.s32.totalorder %v3466_v60, 1  ;;  %v3614_v60 = vld [vmem:[#allocation2 + $0xc0] sm:$0xff] }
 0x229   :  { %v754_v16 = vsel %vm753_vm12, %v2858_v63, %v750_v5  ;;  %2859 = vtanh.f32 %v763_v25  ;;  %v874_v54 = vsel %vm871_vm4, %v873_v11, %v869_v12 }
 0x22a   :  { %v881_v1 = vadd.f32 %v880_v17, %v3259_v35  ;;  %v759_v30 = vsel %vm756_vm1, %v758_v32, %v754_v16  ;;  %v883_v63 = vsub.f32 1.0, %v874_v54  ;;  %v887_v37 = vmul.f32 %v885_v20, %v874_v54 }
 0x22b   :  { %v765_v18 = vsub.f32 1.0, %v759_v30  ;;  %v767_v5 = vmul.f32 %v759_v30, %v3359_v26 }
 0x22c   :  { %2861 = vtanh.f32 %v881_v1 }
 0x22f   :  { %v2860_v8 = vpop.eup %2859 }
 0x230   :  { %v766_v7 = vmul.f32 %v2860_v8, %v765_v18 }
 0x232   :  { %v2862_v4 = vpop.eup %2861  ;;  %v768_v43 = vadd.f32 %v767_v5, %v766_v7 }
 0x233   :  { %v884_v9 = vmul.f32 %v2862_v4, %v883_v63  ;;  %v4100_v4 = vld [vmem:[#allocation19_spill] sm:$0xff] }
 0x234   :  { %v3464_v50 = vsel %vm590_vm2, %v768_v43, %v3359_v26  ;;  %v3484_v26 = vld [vmem:[#allocation2 + $0x70] sm:$0xff] }
 0x235   :  { %v888_v13 = vadd.f32 %v887_v37, %v884_v9  ;;  %2730 = vmatmul.msk.f32.vlgmr.msra.gmra.mxu2 %vm146_vm13, %v3464_v50 }
 0x236   :  { %1256 = vmatpush.msra.mxu2 %v3191_v39  ;;  %v3491_v39 = vld [vmem:[#allocation2 + $0x58] sm:$0xff] }
 0x237   :  { %v895_v23 = vrot.slane %v888_v13, 4 }
 0x238   :  { %1257 = vmatpush.msra.mxu2 %v3203_v44  ;;  %v3496_v44 = vld [vmem:[#allocation2 + $0x40] sm:$0xff] }
 0x239   :  { %v3476_v27 = vsel %vm893_vm5, %v895_v23, %v3383_v3 }
 0x23a   :  { %2727 = vmatmul.msk.f32.vlgmr.msra.gmra.mxu3 %vm146_vm13, %v3476_v27  ;;  %2728 = vmatmul.msk.f32.vlgmr.msra.gmra.mxu0 %vm146_vm13, %v3476_v27 }
 0x23b   :  { %2729 = vmatmul.msk.f32.vlgmr.msra.gmra.mxu1 %vm146_vm13, %v3476_v27  ;;  %1125 = vmatpush.msra.mxu3 %v3484_v26 }
 0x23c   :  { %1216 = vmatpush.msra.mxu0 %v3194_v40  ;;  %1236 = vmatpush.msra.mxu1 %v3196_v41  ;;  %v3520_v40 = vld [vmem:[#allocation2 + $0x48] sm:$0xff]  ;;  %v3544_v41 = vld [vmem:[#allocation2 + $0x38] sm:$0xff] }
 0x23d   :  { %2736 = vmatmul.msk.f32.vlgmr.msrb.gmra.mxu2 %vm146_vm13, %v3476_v27  ;;  %1126 = vmatpush.msra.mxu3 %v3491_v39  ;;  %4098 = vst [vmem:[#allocation9_spill] sm:$0xff] %v3544_v41 }
 0x23e   :  { %1217 = vmatpush.msra.mxu0 %v3205_v45  ;;  %1237 = vmatpush.msra.mxu1 %v3207_v46  ;;  %v3547_v45 = vld [vmem:[#allocation2 + $0x20] sm:$0xff] }
 0x23f   :  { %1127 = vmatpush.msra.mxu3 %v3496_v44  ;;  %1258 = vmatpush.msra.mxu2 %v3211_v47  ;;  %4099 = vst [vmem:[#allocation13_spill] sm:$0xff] %v3547_v45 }
 0x240   :  { %1218 = vmatpush.msra.mxu0 %v3213_v48  ;;  %1238 = vmatpush.msra.mxu1 %v3215_v49 }
 0x241   :  { %1128 = vmatpush.msra.mxu3 %v3138_v14  ;;  %1259 = vmatpush.msra.mxu2 %v3219_v52  ;;  %v3514_v14 = vld [vmem:[#allocation2 + $0x60] sm:$0xff] }
 0x242   :  { %2731 = vmatmul.msk.f32.vlgmr.msrb.gmra.mxu3 %vm146_vm13, %v3464_v50  ;;  %2732 = vmatmul.msk.f32.vlgmr.msrb.gmra.mxu0 %vm146_vm13, %v3464_v50 }
 0x243   :  { %2735 = vmatmul.msk.f32.vlgmr.msrb.gmra.mxu1 %vm146_vm13, %v3476_v27  ;;  %1279 = vmatpush.msrb.mxu3 %v3173_v29  ;;  %v3526_v29 = vld [vmem:[#allocation2 + $0x30] sm:$0xff] }
 0x244   :  { %1219 = vmatpush.msra.mxu0 %v3221_v53  ;;  %1239 = vmatpush.msra.mxu1 %v3225_v55 }
 0x245   :  { %1280 = vmatpush.msrb.mxu3 %v3178_v33  ;;  %1388 = vmatpush.msrb.mxu2 %v3514_v14  ;;  %v3532_v33 = vld [vmem:[#allocation2 + $0x68] sm:$0xff] }
 0x246   :  { %1299 = vmatpush.msrb.mxu0 %v3234_v56  ;;  %1319 = vmatpush.msrb.mxu1 %v3261_v51 }
 0x247   :  { %1281 = vmatpush.msrb.mxu3 %v3181_v36  ;;  %1389 = vmatpush.msrb.mxu2 %v3520_v40  ;;  %v3536_v36 = vld [vmem:[#allocation2 + $0x18] sm:$0xff] }
 0x248   :  { %1300 = vmatpush.msrb.mxu0 %v3236_v57  ;;  %1320 = vmatpush.msrb.mxu1 %v3263_v59 }
 0x249   :  { %1282 = vmatpush.msrb.mxu3 %v3188_v38  ;;  %1390 = vmatpush.msrb.mxu2 %v3526_v29  ;;  %v3540_v38 = vld [vmem:[#allocation2 + $0x50] sm:$0xff] }
 0x24a   :  { %2737 = vmatmul.msk.f32.vlgmr.msra.gmra.mxu3 %vm146_vm13, %v3476_v27  ;;  %1301 = vmatpush.msrb.mxu0 %v3241_v58  ;;  %4097 = vst [vmem:[#allocation8_spill] sm:$0xff] %v3540_v38 }
 0x24b   :  { %1408 = vmatpush.msra.mxu3 %v3532_v33  ;;  %1321 = vmatpush.msrb.mxu1 %v3267_v6 }
 0x24c   :  { %1391 = vmatpush.msrb.mxu2 %v3536_v36  ;;  %1302 = vmatpush.msrb.mxu0 %v3246_v62 }
 0x24d   :  { %1409 = vmatpush.msra.mxu3 %v3540_v38  ;;  %1322 = vmatpush.msrb.mxu1 %v3270_v15 }
 0x24f   :  { %1410 = vmatpush.msra.mxu3 %v3544_v41 }
 0x251   :  { %1411 = vmatpush.msra.mxu3 %v3547_v45 }
 0x2b7   :  { %v938_v56 = vpop.f32.mrf.mxu0 }
 0x2b8   :  { %v958_v46 = vpop.f32.mrf.mxu1  ;;  %v981_v47 = vpop.f32.mrf.mxu2  ;;  %v939_v6 = vadd.f32 %v938_v56, %v4094_v28 }
 0x2b9   :  { %v959_v18 = vadd.f32 %v958_v46, %v4095_v24 }
 0x2bd   :  { %v918_v48 = vpop.f32.mrf.mxu3 }
 0x2be   :  { %v919_v49 = vadd.f32 %v918_v48, %v4092_v0 }
 0x2bf   :  { %v1021_v30 = vpop.f32.mrf.mxu0 }
 0x2c0   :  { %v1024_v52 = vadd.f32 %v981_v47, %v919_v49  ;;  %v1090_v53 = vpop.f32.mrf.mxu1  ;;  %v1110_v55 = vpop.f32.mrf.mxu2  ;;  %v1064_v43 = vadd.f32 %v1021_v30, %v4100_v4  ;;  %v4101_v49 = vld [vmem:[#allocation14_spill] sm:$0xff] }
 0x2c1   :  { %v1134_v57 = vrot.slane %v1090_v53, 2  ;;  %v1157_v58 = vrot.slane %v1110_v55, 2 }
 0x2c2   :  { %v2733_v62 = vmul.f32 -1.442695, %v1024_v52 }
 0x2c3   :  { %v1136_v51 = vadd.f32 %v1134_v57, %v4093_v21  ;;  %v1159_v59 = vadd.f32 %v1157_v58, %v4091_v10 }
 0x2c4   :  { %2863 = vpow2.f32 %v2733_v62 }
 0x2c5   :  { %v2738_v15 = vmul.f32 -1.442695, %v1136_v51  ;;  %v2739_v42 = vmul.f32 -1.442695, %v1159_v59  ;;  %v1001_v3 = vpop.f32.mrf.mxu3 }
 0x2c6   :  { %v1044_v22 = vadd.f32 %v1001_v3, %v939_v6 }
 0x2c7   :  { %2865 = vpow2.f32 %v2738_v15 }
 0x2c8   :  { %2867 = vpow2.f32 %v2739_v42  ;;  %v2734_v34 = vmul.f32 -1.442695, %v1044_v22 }
 0x2ca   :  { %v2864_v25 = vpop.eup %2863  ;;  %2869 = vpow2.f32 %v2734_v34 }
 0x2cb   :  { %v1028_v2 = vadd.f32 1.0, %v2864_v25 }
 0x2cd   :  { %v2866_v19 = vpop.eup %2865  ;;  %2871 = vrcp.f32 %v1028_v2  ;;  %v1040_v54 = vand.u32 2147483648, %v1028_v2  ;;  %v1130_v8 = vpop.f32.mrf.mxu3  ;;  %v1038_v63 = vand.u32 2147483647, %v1028_v2  ;;  %vm1034_vm6 = vweird.f32 %v1028_v2 }
 0x2ce   :  { %v2868_v17 = vpop.eup %2867  ;;  %v1140_v61 = vadd.f32 1.0, %v2866_v19  ;;  %v1179_v46 = vadd.f32 %v1130_v8, %v4101_v49  ;;  %v3593_v49 = vld [vmem:[#allocation2 + $0xd0] sm:$0xff] }
 0x2cf   :  { %v3554_v21 = vadd.f32 1.0, %v2868_v17  ;;  %v1041_v52 = vor.u32 1.1754944e-38, %v1040_v54  ;;  %vm1039_vm9 = vcmp.eq.f32.partialorder %v1038_v63, 8.507059e+37  ;;  %v4102_v54 = vmov 0  }
 0x2d0   :  { %v2870_v10 = vpop.eup %2869  ;;  %2873 = vrcp.f32 %v1140_v61  ;;  %v1150_v37 = vand.u32 2147483647, %v1140_v61  ;;  %v1152_v48 = vand.u32 2147483648, %v1140_v61  ;;  %vm1146_vm10 = vweird.f32 %v1140_v61 }
 0x2d1   :  { %2875 = vrcp.f32 %v3554_v21  ;;  %v3557_v32 = vadd.f32 1.0, %v2870_v10  ;;  %v1181_v42 = vrot.slane %v1179_v46, 2  ;;  %v1175_v17 = vand.u32 2147483648, %v3554_v21  ;;  %v3596_v46 = vpop.permute.xlu1 %1194 }
 0x2d2   :  { %vm1151_vm11 = vcmp.eq.f32.partialorder %v1150_v37, 8.507059e+37  ;;  %v1153_v15 = vor.u32 1.1754944e-38, %v1152_v48  ;;  %vm1169_vm1 = vweird.f32 %v3554_v21 }
 0x2d3   :  { %v2872_v16 = vpop.eup %2871  ;;  %2877 = vrcp.f32 %v3557_v32  ;;  %v1060_v6 = vand.u32 2147483648, %v3557_v32  ;;  %v1058_v22 = vand.u32 2147483647, %v3557_v32  ;;  %vm1054_vm0 = vweird.f32 %v3557_v32 }
 0x2d4   :  { %v1030_v31 = vmul.f32 %v2872_v16, %v1028_v2  ;;  %vm1035_vm2 = vweird.f32 %v2872_v16 }
 0x2d5   :  { %vm1036_vm7 = vmor %vm1034_vm6, %vm1035_vm2  ;;  %vm1059_vm2 = vcmp.eq.f32.partialorder %v1058_v22, 8.507059e+37  ;;  %v3664_v22 = vld [vmem:[#allocation2 + $0x128] sm:$0xff] }
 0x2d6   :  { %v2874_v1 = vpop.eup %2873  ;;  %v1031_v12 = vsub.f32 1.0, %v1030_v31  ;;  %v1061_v31 = vor.u32 1.1754944e-38, %v1060_v6  ;;  %v3651_v6 = vld [vmem:[#allocation2 + $0x120] sm:$0xff] }
 0x2d7   :  { %v3560_v11 = vpop.eup %2875  ;;  %v1142_v7 = vmul.f32 %v2874_v1, %v1140_v61  ;;  %vm1147_vm8 = vweird.f32 %v2874_v1 }
 0x2d8   :  { %v1032_v5 = vmul.f32 %v2872_v16, %v1031_v12  ;;  %v1165_v20 = vmul.f32 %v3560_v11, %v3554_v21  ;;  %vm1148_vm14 = vmor %vm1146_vm10, %vm1147_vm8  ;;  %vm1170_vm12 = vweird.f32 %v3560_v11  ;;  %v2988_v12 = vld [vmem:[%s4036_s1] sm:$0x3]  ;;  %s3077_s1 = smov [#allocation5]  }
 0x2d9   :  { %v1143_v9 = vsub.f32 1.0, %v1142_v7  ;;  %v2878_v13 = vpop.eup %2877  ;;  %vm1171_vm4 = vmor %vm1169_vm1, %vm1170_vm12  ;;  %vm130_vm6 = vcmp.gt.s32.totalorder %v2988_v12, 4  ;;  %v1176_v7 = vor.u32 1.1754944e-38, %v1175_v17  ;;  %vm131_vm8 = vcmp.gt.s32.totalorder %v2988_v12, 5  ;;  %v3680_v17 = vld [vmem:[#allocation2 + $0xd8] sm:$0xff]  ;;  %s2684_s25 = sshll.u32 %s3077_s1, 4  ;;  %s2685_s25 = int_to_ptr.vmem [resolvable:$true] %s2684_s25 }
 0x2da   :  { %v1033_v23 = vadd.f32 %v2872_v16, %v1032_v5  ;;  %v1166_v47 = vsub.f32 1.0, %v1165_v20  ;;  %v1050_v53 = vmul.f32 %v2878_v13, %v3557_v32  ;;  %vm1055_vm15 = vweird.f32 %v2878_v13 }
 0x2db   :  { %v1144_v55 = vmul.f32 %v2874_v1, %v1143_v9  ;;  %vm1056_vm3 = vmor %vm1054_vm0, %vm1055_vm15  ;;  %v1484_v8 = vsel %vm130_vm6, 1, %v4102_v54  ;;  %v1784_v9 = vsel %vm131_vm8, 1, %v4102_v54 }
 0x2dc   :  { %v1037_v56 = vsel %vm1036_vm7, %v2872_v16, %v1033_v23  ;;  %v1167_v57 = vmul.f32 %v3560_v11, %v1166_v47  ;;  %v1051_v62 = vsub.f32 1.0, %v1050_v53  ;;  %v1173_v16 = vand.u32 2147483647, %v3554_v21  ;;  %1486 = vperm.xlu2 %2812, %v1484_v8   ;;  %v3599_v53 = vld [vmem:[#allocation2 + $0xb8] sm:$0xff] }
 0x2dd   :  { %v1042_v58 = vsel %vm1039_vm9, %v1041_v52, %v1037_v56  ;;  %v1145_v51 = vadd.f32 %v2874_v1, %v1144_v55  ;;  %vm1196_vm9 = vcmp.eq.s32.totalorder %v3596_v46, 1  ;;  %v3617_v55 = vld [vmem:[#allocation2 + $0xc8] sm:$0xff]  ;;  %v3626_v56 = vld [vmem:[#allocation2 + $0xb0] sm:$0xff] }
 0x2de   :  { %v1065_v59 = vmul.f32 %v1064_v43, %v1042_v58  ;;  %v1052_v3 = vmul.f32 %v2878_v13, %v1051_v62  ;;  %v1168_v19 = vadd.f32 %v3560_v11, %v1167_v57  ;;  %vm1174_vm7 = vcmp.eq.f32.partialorder %v1173_v16, 8.507059e+37  ;;  %v3630_v57 = vld [vmem:[#allocation2 + $0xa0] sm:$0xff]  ;;  %v3633_v58 = vld [vmem:[#allocation2 + $0x90] sm:$0xff]  ;;  %v3636_v62 = vld [vmem:[#allocation2 + $0x98] sm:$0xff] }
 0x2df   :  { %v1149_v34 = vsel %vm1148_vm14, %v2874_v1, %v1145_v51  ;;  %v1188_v43 = vrot.slane %v3476_v27, 2  ;;  %v3639_v51 = vld [vmem:[#allocation2 + $0x28] sm:$0xff]  ;;  %v3694_v16 = vld [vmem:[#allocation2 + $0xe0] sm:$0xff] }
 0x2e0   :  { %v1066_v25 = vadd.f32 %v1065_v59, %v959_v18  ;;  %v1154_v2 = vsel %vm1151_vm11, %v1153_v15, %v1149_v34  ;;  %v1053_v10 = vadd.f32 %v2878_v13, %v1052_v3  ;;  %v1172_v32 = vsel %vm1171_vm4, %v3560_v11, %v1168_v19  ;;  %v3642_v59 = vld [vmem:[#allocation2 + $0x88] sm:$0xff]  ;;  %v3654_v15 = vld [vmem:[#allocation2 + $0x78] sm:$0xff]  ;;  %v3667_v34 = vld [vmem:[#allocation2 + $0x130] sm:$0xff] }
 0x2e1   :  { %v1183_v61 = vmul.f32 %v1181_v42, %v1154_v2  ;;  %v1177_v21 = vsel %vm1174_vm7, %v1176_v7, %v1172_v32  ;;  %v3657_v42 = vld [vmem:[#allocation2 + $0x80] sm:$0xff]  ;;  %v3660_v3 = vld [vmem:[#allocation2 + $0x108] sm:$0xff]  ;;  %v3674_v2 = vld [vmem:[#allocation2 + $0x110] sm:$0xff] }
 0x2e2   :  { %2879 = vtanh.f32 %v1066_v25  ;;  %v1057_v30 = vsel %vm1056_vm3, %v2878_v13, %v1053_v10  ;;  %v1186_v4 = vsub.f32 1.0, %v1177_v21  ;;  %v1190_v23 = vmul.f32 %v1188_v43, %v1177_v21  ;;  %v3670_v25 = vld [vmem:[#allocation2 + $0xf0] sm:$0xff]  ;;  %v3677_v19 = vld [vmem:[#allocation2 + $0x118] sm:$0xff]  ;;  %v3690_v10 = vld [vmem:[#allocation2 + $0x100] sm:$0xff] }
 0x2e3   :  { %v1184_v1 = vadd.f32 %v1183_v61, %v3259_v35  ;;  %v1062_v18 = vsel %vm1059_vm2, %v1061_v31, %v1057_v30  ;;  %v3686_v61 = vld [vmem:[#allocation2 + $0xf8] sm:$0xff]  ;;  %v3698_v31 = vld [vmem:[#allocation2 + $0xe8] sm:$0xff] }
 0x2e4   :  { %v1068_v5 = vsub.f32 1.0, %v1062_v18  ;;  %v1070_v20 = vmul.f32 %v1062_v18, %v3464_v50  ;;  %1786 = vperm.xlu2 %2812, %v1784_v9   ;;  %v4103_v21 = vld [vmem:[#allocation10_spill] sm:$0xff] }
 0x2e5   :  { %2881 = vtanh.f32 %v1184_v1 }
 0x2e8   :  { %v2880_v35 = vpop.eup %2879 }
 0x2e9   :  { %v1069_v63 = vmul.f32 %v2880_v35, %v1068_v5  ;;  %v4104_v5 = vperm.slane %v4103_v21, 1  ;;  %v4105_v35 = vld [vmem:[#allocation15_spill] sm:$0xff] }
 0x2eb   :  { %v2882_v11 = vpop.eup %2881  ;;  %v1071_v37 = vadd.f32 %v1070_v20, %v1069_v63  ;;  %v3708_v63 = vadd.f32 %v4105_v35, %v4104_v5 }
 0x2ec   :  { %v1187_v13 = vmul.f32 %v2882_v11, %v1186_v4 }
 0x2ed   :  { %v3589_v47 = vsel %vm893_vm5, %v1071_v37, %v3464_v50  ;;  %4106 = vst [vmem:[#allocation11_spill] sm:$0xff] %v3708_v63 }
 0x2ee   :  { %v1191_v48 = vadd.f32 %v1190_v23, %v1187_v13  ;;  %2743 = vmatmul.msk.f32.vlgmr.msrb.gmra.mxu3 %vm146_vm13, %v3589_v47 }
 0x2ef   :  { %1545 = vmatpush.msrb.mxu3 %v3593_v49 }
 0x2f0   :  { %v1198_v52 = vrot.slane %v1191_v48, 6 }
 0x2f1   :  { %1546 = vmatpush.msrb.mxu3 %v3599_v53 }
 0x2f2   :  { %v3605_v50 = vsel %vm1196_vm9, %v1198_v52, %v3476_v27  ;;  %v3623_v27 = vld [vmem:[#allocation2 + $0xa8] sm:$0xff] }
 0x2f3   :  { %2740 = vmatmul.msk.f32.vlgmr.msra.gmra.mxu0 %vm146_vm13, %v3605_v50  ;;  %2741 = vmatmul.msk.f32.vlgmr.msra.gmra.mxu1 %vm146_vm13, %v3605_v50  ;;  %v4107_v52 = vld [vmem:[#allocation12_spill] sm:$0xff] }
 0x2f4   :  { %2742 = vmatmul.msk.f32.vlgmr.msra.gmra.mxu2 %vm146_vm13, %v3605_v50  ;;  %1428 = vmatpush.msra.mxu0 %v3484_v26 }
 0x2f5   :  { %1505 = vmatpush.msra.mxu1 %v3614_v60  ;;  %1525 = vmatpush.msra.mxu2 %v3617_v55 }
 0x2f6   :  { %2749 = vmatmul.msk.f32.vlgmr.msra.gmra.mxu3 %vm146_vm13, %v3605_v50  ;;  %1429 = vmatpush.msra.mxu0 %v3491_v39 }
 0x2f7   :  { %1506 = vmatpush.msra.mxu1 %v3623_v27  ;;  %1526 = vmatpush.msra.mxu2 %v3626_v56 }
 0x2f8   :  { %1430 = vmatpush.msra.mxu0 %v3496_v44  ;;  %1547 = vmatpush.msrb.mxu3 %v3630_v57 }
 0x2f9   :  { %1507 = vmatpush.msra.mxu1 %v3633_v58  ;;  %1527 = vmatpush.msra.mxu2 %v3636_v62 }
 0x2fa   :  { %1431 = vmatpush.msra.mxu0 %v3639_v51  ;;  %1548 = vmatpush.msrb.mxu3 %v3642_v59 }
 0x2fb   :  { %2744 = vmatmul.msk.f32.vlgmr.msrb.gmra.mxu0 %vm146_vm13, %v3589_v47  ;;  %2745 = vmatmul.msk.f32.vlgmr.msrb.gmra.mxu1 %vm146_vm13, %v3589_v47 }
 0x2fc   :  { %2748 = vmatmul.msk.f32.vlgmr.msrb.gmra.mxu2 %vm146_vm13, %v3605_v50  ;;  %1568 = vmatpush.msrb.mxu0 %v3651_v6 }
 0x2fd   :  { %1508 = vmatpush.msra.mxu1 %v3654_v15  ;;  %1528 = vmatpush.msra.mxu2 %v3657_v42 }
 0x2fe   :  { %1569 = vmatpush.msrb.mxu0 %v3660_v3  ;;  %1677 = vmatpush.msra.mxu3 %v3514_v14 }
 0x2ff   :  { %1588 = vmatpush.msrb.mxu1 %v3664_v22  ;;  %1608 = vmatpush.msrb.mxu2 %v3667_v34 }
 0x300   :  { %1570 = vmatpush.msrb.mxu0 %v3670_v25  ;;  %1678 = vmatpush.msra.mxu3 %v3520_v40 }
 0x301   :  { %1589 = vmatpush.msrb.mxu1 %v3674_v2  ;;  %1609 = vmatpush.msrb.mxu2 %v3677_v19 }
 0x302   :  { %1571 = vmatpush.msrb.mxu0 %v3680_v17  ;;  %1679 = vmatpush.msra.mxu3 %v3526_v29 }
 0x303   :  { %2750 = vmatmul.msk.f32.vlgmr.msra.gmra.mxu0 %vm146_vm13, %v3605_v50  ;;  %1590 = vmatpush.msrb.mxu1 %v3686_v61 }
 0x304   :  { %1697 = vmatpush.msra.mxu0 %v3532_v33  ;;  %1610 = vmatpush.msrb.mxu2 %v3690_v10 }
 0x305   :  { %1680 = vmatpush.msra.mxu3 %v3536_v36  ;;  %1591 = vmatpush.msrb.mxu1 %v3694_v16 }
 0x306   :  { %1698 = vmatpush.msra.mxu0 %v3540_v38  ;;  %1611 = vmatpush.msrb.mxu2 %v3698_v31 }
 0x308   :  { %1699 = vmatpush.msra.mxu0 %v3544_v41 }
 0x30a   :  { %1700 = vmatpush.msra.mxu0 %v3547_v45 }
 0x370   :  { %v1221_v1 = vpop.f32.mrf.mxu0  ;;  %v1241_v18 = vpop.f32.mrf.mxu1 }
 0x371   :  { %v1222_v30 = vadd.f32 %v1221_v1, %v4092_v0  ;;  %v1284_v12 = vpop.f32.mrf.mxu3  ;;  %v1242_v8 = vadd.f32 %v1241_v18, %v4094_v28 }
 0x373   :  { %v1327_v32 = vadd.f32 %v1284_v12, %v1222_v30 }
 0x375   :  { %v2746_v54 = vmul.f32 -1.442695, %v1327_v32 }
 0x377   :  { %2883 = vpow2.f32 %v2746_v54  ;;  %v1261_v7 = vpop.f32.mrf.mxu2 }
 0x378   :  { %v1304_v20 = vpop.f32.mrf.mxu0  ;;  %v1262_v28 = vadd.f32 %v1261_v7, %v4095_v24 }
 0x379   :  { %v1347_v4 = vadd.f32 %v1304_v20, %v1242_v8  ;;  %v1413_v43 = vpop.f32.mrf.mxu3 }
 0x37a   :  { %v1456_v9 = vadd.f32 %v1413_v43, %v3708_v63 }
 0x37b   :  { %v2747_v11 = vmul.f32 -1.442695, %v1347_v4 }
 0x37c   :  { %v2752_v37 = vmul.f32 -1.442695, %v1456_v9 }
 0x37d   :  { %v2884_v13 = vpop.eup %2883  ;;  %2885 = vpow2.f32 %v2747_v11 }
 0x37e   :  { %v1331_v23 = vadd.f32 1.0, %v2884_v13  ;;  %2887 = vpow2.f32 %v2752_v37  ;;  %v1324_v37 = vpop.f32.mrf.mxu1 }
 0x37f   :  { %v1393_v48 = vpop.f32.mrf.mxu2 }
 0x380   :  { %2889 = vrcp.f32 %v1331_v23  ;;  %v1436_v1 = vadd.f32 %v1393_v48, %v4107_v52  ;;  %v1343_v20 = vand.u32 2147483648, %v1331_v23  ;;  %v1341_v9 = vand.u32 2147483647, %v1331_v23  ;;  %v3717_v52 = vld [vmem:[#allocation2 + $0x23b] ss:$0 sm:$0xff] }
 0x381   :  { %vm1337_vm10 = vweird.f32 %v1331_v23  ;;  %4108 = vst [vmem:[#allocation19_spill] sm:$0xff] %v3717_v52 }
 0x382   :  { %v2751_v12 = vmul.f32 -1.442695, %v1436_v1  ;;  %vm1342_vm14 = vcmp.eq.f32.partialorder %v1341_v9, 8.507059e+37 }
 0x383   :  { %v2886_v30 = vpop.eup %2885 }
 0x384   :  { %v2888_v32 = vpop.eup %2887  ;;  %v1351_v18 = vadd.f32 1.0, %v2886_v30  ;;  %2891 = vpow2.f32 %v2751_v12  ;;  %v1344_v30 = vor.u32 1.1754944e-38, %v1343_v20 }
 0x385   :  { %v3712_v54 = vadd.f32 1.0, %v2888_v32 }
 0x386   :  { %v2890_v8 = vpop.eup %2889  ;;  %2893 = vrcp.f32 %v1351_v18  ;;  %vm1357_vm12 = vweird.f32 %v1351_v18 }
 0x387   :  { %v1333_v5 = vmul.f32 %v2890_v8, %v1331_v23  ;;  %2895 = vrcp.f32 %v3712_v54  ;;  %vm1338_vm5 = vweird.f32 %v2890_v8  ;;  %v1361_v23 = vand.u32 2147483647, %v1351_v18 }
 0x388   :  { %vm1339_vm11 = vmor %vm1337_vm10, %vm1338_vm5  ;;  %vm1466_vm8 = vweird.f32 %v3712_v54 }
 0x389   :  { %v1334_v35 = vsub.f32 1.0, %v1333_v5  ;;  %vm1362_vm1 = vcmp.eq.f32.partialorder %v1361_v23, 8.507059e+37  ;;  %v3725_v23 = vld [vmem:[#allocation2 + $0x239] ss:$0 sm:$0xff] }
 0x38a   :  { %v2892_v4 = vpop.eup %2891  ;;  %4109 = vst [vmem:[#allocation14_spill] sm:$0xff] %v3725_v23 }
 0x38b   :  { %v1335_v43 = vmul.f32 %v2890_v8, %v1334_v35  ;;  %v1440_v13 = vadd.f32 1.0, %v2892_v4  ;;  %v1367_v35 = vadd.f32 %v3717_v52, %v1324_v37  ;;  %v1363_v4 = vand.u32 2147483648, %v1351_v18 }
 0x38c   :  { %v2894_v11 = vpop.eup %2893 }
 0x38d   :  { %v1353_v48 = vmul.f32 %v2894_v11, %v1351_v18  ;;  %v1336_v1 = vadd.f32 %v2890_v8, %v1335_v43  ;;  %2897 = vrcp.f32 %v1440_v13  ;;  %v3715_v12 = vpop.eup %2895  ;;  %vm1358_vm15 = vweird.f32 %v2894_v11 }
 0x38e   :  { %v1462_v20 = vmul.f32 %v3715_v12, %v3712_v54  ;;  %vm1359_vm0 = vmor %vm1357_vm12, %vm1358_vm15  ;;  %v1364_v9 = vor.u32 1.1754944e-38, %v1363_v4  ;;  %vm1446_vm4 = vweird.f32 %v1440_v13  ;;  %vm1467_vm7 = vweird.f32 %v3715_v12 }
 0x38f   :  { %v1354_v32 = vsub.f32 1.0, %v1353_v48  ;;  %v1340_v5 = vsel %vm1339_vm11, %v2890_v8, %v1336_v1  ;;  %vm1468_vm5 = vmor %vm1466_vm8, %vm1467_vm7 }
 0x390   :  { %v1345_v63 = vsel %vm1342_vm14, %v1344_v30, %v1340_v5  ;;  %v1463_v7 = vsub.f32 1.0, %v1462_v20  ;;  %v1452_v5 = vand.u32 2147483648, %v1440_v13 }
 0x391   :  { %v1355_v0 = vmul.f32 %v2894_v11, %v1354_v32  ;;  %v1368_v43 = vmul.f32 %v1367_v35, %v1345_v63  ;;  %v1450_v63 = vand.u32 2147483647, %v1440_v13 }
 0x392   :  { %v1464_v52 = vmul.f32 %v3715_v12, %v1463_v7 }
 0x393   :  { %v1356_v45 = vadd.f32 %v2894_v11, %v1355_v0  ;;  %v1369_v48 = vadd.f32 %v1368_v43, %v1262_v28  ;;  %v2898_v8 = vpop.eup %2897  ;;  %v1433_v0 = vpop.f32.mrf.mxu0  ;;  %vm1451_vm6 = vcmp.eq.f32.partialorder %v1450_v63, 8.507059e+37 }
 0x394   :  { %v1442_v37 = vmul.f32 %v2898_v8, %v1440_v13  ;;  %vm1447_vm3 = vweird.f32 %v2898_v8  ;;  %v1476_v20 = vadd.f32 %v3725_v23, %v1433_v0  ;;  %v4111_v13 = vld [vmem:[#allocation16_spill] sm:$0xff]  ;;  %v3751_v63 = vpop.permute.xlu2 %1486 }
 0x395   :  { %v1360_v1 = vsel %vm1359_vm0, %v2894_v11, %v1356_v45  ;;  %2899 = vtanh.f32 %v1369_v48  ;;  %vm1448_vm2 = vmor %vm1446_vm4, %vm1447_vm3  ;;  %v1453_v45 = vor.u32 1.1754944e-38, %v1452_v5 }
 0x396   :  { %v1365_v30 = vsel %vm1362_vm1, %v1364_v9, %v1360_v1  ;;  %v1443_v32 = vsub.f32 1.0, %v1442_v37  ;;  %v1465_v1 = vadd.f32 %v3715_v12, %v1464_v52 }
 0x397   :  { %v1371_v35 = vsub.f32 1.0, %v1365_v30  ;;  %v1373_v11 = vmul.f32 %v1365_v30, %v3589_v47  ;;  %v1472_v30 = vand.u32 2147483648, %v3712_v54 }
 0x398   :  { %v1444_v24 = vmul.f32 %v2898_v8, %v1443_v32  ;;  %v1470_v32 = vand.u32 2147483647, %v3712_v54 }
 0x399   :  { %v1473_v5 = vor.u32 1.1754944e-38, %v1472_v30 }
 0x39a   :  { %v1445_v28 = vadd.f32 %v2898_v8, %v1444_v24  ;;  %v4110_v24 = vperm.slane %v4103_v21, 2  ;;  %v1469_v21 = vsel %vm1468_vm5, %v3715_v12, %v1465_v1  ;;  %vm1471_vm10 = vcmp.eq.f32.partialorder %v1470_v32, 8.507059e+37 }
 0x39b   :  { %v2900_v18 = vpop.eup %2899 }
 0x39c   :  { %v1372_v43 = vmul.f32 %v2900_v18, %v1371_v35  ;;  %v1449_v4 = vsel %vm1448_vm2, %v2898_v8, %v1445_v28  ;;  %v3733_v37 = vadd.f32 %v4111_v13, %v4110_v24  ;;  %v4114_v24 = vld [vmem:[#allocation11_spill] sm:$0xff] }
 0x39d   :  { %v1454_v48 = vsel %vm1451_vm6, %v1453_v45, %v1449_v4  ;;  %v4113_v45 = vld [vmem:[#allocation17_spill] sm:$0xff] }
 0x39e   :  { %v1374_v9 = vadd.f32 %v1373_v11, %v1372_v43  ;;  %v1477_v7 = vmul.f32 %v1476_v20, %v1454_v48 }
 0x3a0   :  { %v3739_v8 = vsel %vm1196_vm9, %v1374_v9, %v3589_v47  ;;  %v1478_v52 = vadd.f32 %v1477_v7, %v3733_v37  ;;  %v1474_v47 = vsel %vm1471_vm10, %v1473_v5, %v1469_v21  ;;  %vm1488_vm9 = vcmp.eq.s32.totalorder %v3751_v63, 1  ;;  %v4115_v7 = vld [vmem:[#allocation18_spill] sm:$0xff] }
 0x3a1   :  { %2756 = vmatmul.msk.f32.vlgmr.msrb.gmra.mxu0 %vm146_vm13, %v3739_v8  ;;  %v1480_v46 = vsub.f32 1.0, %v1474_v47  ;;  %v1482_v0 = vmul.f32 %v1474_v47, %v3605_v50 }
 0x3a2   :  { %1848 = vmatpush.msrb.mxu0 %v3593_v49  ;;  %2901 = vtanh.f32 %v1478_v52 }
 0x3a4   :  { %1849 = vmatpush.msrb.mxu0 %v3599_v53 }
 0x3a6   :  { %1850 = vmatpush.msrb.mxu0 %v3630_v57 }
 0x3a8   :  { %1851 = vmatpush.msrb.mxu0 %v3642_v59  ;;  %v2902_v54 = vpop.eup %2901 }
 0x3a9   :  { %v1481_v35 = vmul.f32 %v2902_v54, %v1480_v46 }
 0x3ab   :  { %v1483_v12 = vadd.f32 %v1482_v0, %v1481_v35 }
 0x3ad   :  { %v3758_v18 = vsel %vm1488_vm9, %v1483_v12, %v3605_v50  ;;  %v4112_v50 = vld [vmem:[#allocation13_spill] sm:$0xff] }
 0x3ae   :  { %2753 = vmatmul.msk.f32.vlgmr.msra.gmra.mxu1 %vm146_vm13, %v3758_v18  ;;  %2754 = vmatmul.msk.f32.vlgmr.msra.gmra.mxu2 %vm146_vm13, %v3758_v18 }
 0x3af   :  { %2755 = vmatmul.msk.f32.vlgmr.msrb.gmra.mxu3 %vm146_vm13, %v3758_v18  ;;  %2762 = vmatmul.msk.f32.vlgmr.msra.gmra.mxu0 %vm146_vm13, %v3758_v18 }
 0x3b0   :  { %1717 = vmatpush.msra.mxu1 %v3484_v26  ;;  %1808 = vmatpush.msra.mxu2 %v3614_v60 }
 0x3b1   :  { %1828 = vmatpush.msrb.mxu3 %v3617_v55  ;;  %1980 = vmatpush.msra.mxu0 %v3514_v14 }
 0x3b2   :  { %1718 = vmatpush.msra.mxu1 %v3491_v39  ;;  %1809 = vmatpush.msra.mxu2 %v3623_v27 }
 0x3b3   :  { %1829 = vmatpush.msrb.mxu3 %v3626_v56  ;;  %1981 = vmatpush.msra.mxu0 %v3520_v40 }
 0x3b4   :  { %1719 = vmatpush.msra.mxu1 %v3496_v44  ;;  %1810 = vmatpush.msra.mxu2 %v3633_v58 }
 0x3b5   :  { %1830 = vmatpush.msrb.mxu3 %v3636_v62  ;;  %1982 = vmatpush.msra.mxu0 %v3526_v29 }
 0x3b6   :  { %2757 = vmatmul.msk.f32.vlgmr.msrb.gmra.mxu1 %vm146_vm13, %v3739_v8  ;;  %2758 = vmatmul.msk.f32.vlgmr.msrb.gmra.mxu2 %vm146_vm13, %v3739_v8 }
 0x3b7   :  { %2761 = vmatmul.msk.f32.vlgmr.msra.gmra.mxu3 %vm146_vm13, %v3758_v18  ;;  %1720 = vmatpush.msra.mxu1 %v3639_v51 }
 0x3b8   :  { %1811 = vmatpush.msra.mxu2 %v3654_v15  ;;  %1831 = vmatpush.msrb.mxu3 %v3657_v42 }
 0x3b9   :  { %1871 = vmatpush.msrb.mxu1 %v3651_v6  ;;  %1983 = vmatpush.msra.mxu0 %v3536_v36 }
 0x3ba   :  { %1891 = vmatpush.msrb.mxu2 %v3664_v22  ;;  %1911 = vmatpush.msra.mxu3 %v3667_v34 }
 0x3bb   :  { %1872 = vmatpush.msrb.mxu1 %v3660_v3 }
 0x3bc   :  { %1892 = vmatpush.msrb.mxu2 %v3674_v2  ;;  %1912 = vmatpush.msra.mxu3 %v3677_v19 }
 0x3bd   :  { %1873 = vmatpush.msrb.mxu1 %v3670_v25 }
 0x3be   :  { %1893 = vmatpush.msrb.mxu2 %v3686_v61  ;;  %2763 = vmatmul.msk.f32.vlgmr.msra.gmra.mxu1 %vm146_vm13, %v3758_v18 }
 0x3bf   :  { %1913 = vmatpush.msra.mxu3 %v3690_v10  ;;  %1874 = vmatpush.msrb.mxu1 %v3680_v17 }
 0x3c0   :  { %1894 = vmatpush.msrb.mxu2 %v3694_v16 }
 0x3c1   :  { %2000 = vmatpush.msra.mxu1 %v3532_v33  ;;  %1914 = vmatpush.msra.mxu3 %v3698_v31 }
 0x3c3   :  { %2001 = vmatpush.msra.mxu1 %v3540_v38 }
 0x3c5   :  { %2002 = vmatpush.msra.mxu1 %v3544_v41 }
 0x3c7   :  { %2003 = vmatpush.msra.mxu1 %v4112_v50 }
 0x41e   :  { %v1573_v28 = vpop.f32.mrf.mxu0 }
 0x42b   :  { %v1510_v43 = vpop.f32.mrf.mxu1 }
 0x42c   :  { %v1511_v11 = vadd.f32 %v1510_v43, %v4113_v45  ;;  %v1702_v4 = vpop.f32.mrf.mxu0  ;;  %v4116_v43 = vld [vmem:[#allocation12_spill] sm:$0xff] }
 0x42d   :  { %v1749_v48 = vrot.slane %v1702_v4, 6 }
 0x42e   :  { %v1616_v20 = vadd.f32 %v1573_v28, %v1511_v11 }
 0x42f   :  { %v1751_v13 = vadd.f32 %v1749_v48, %v4114_v24 }
 0x430   :  { %v2759_v9 = vmul.f32 -1.442695, %v1616_v20 }
 0x431   :  { %v1530_v1 = vpop.f32.mrf.mxu2  ;;  %v2765_v5 = vmul.f32 -1.442695, %v1751_v13 }
 0x432   :  { %2903 = vpow2.f32 %v2759_v9  ;;  %v1531_v30 = vadd.f32 %v1530_v1, %v4115_v7  ;;  %v1550_v32 = vpop.f32.mrf.mxu3 }
 0x433   :  { %v1593_v52 = vpop.f32.mrf.mxu1 }
 0x434   :  { %v1636_v21 = vadd.f32 %v1593_v52, %v1531_v30 }
 0x436   :  { %v2760_v47 = vmul.f32 -1.442695, %v1636_v21 }
 0x438   :  { %v2904_v46 = vpop.eup %2903  ;;  %2905 = vpow2.f32 %v2760_v47 }
 0x439   :  { %v1620_v54 = vadd.f32 1.0, %v2904_v46  ;;  %2907 = vpow2.f32 %v2765_v5  ;;  %v1613_v47 = vpop.f32.mrf.mxu2 }
 0x43a   :  { %v1682_v35 = vpop.f32.mrf.mxu3 }
 0x43b   :  { %2909 = vrcp.f32 %v1620_v54  ;;  %v1726_v0 = vrot.slane %v1682_v35, 6  ;;  %v1632_v30 = vand.u32 2147483648, %v1620_v54  ;;  %v1630_v21 = vand.u32 2147483647, %v1620_v54 }
 0x43c   :  { %vm1626_vm14 = vweird.f32 %v1620_v54 }
 0x43d   :  { %v1728_v11 = vadd.f32 %v1726_v0, %v4116_v43  ;;  %v1633_v0 = vor.u32 1.1754944e-38, %v1632_v30  ;;  %vm1631_vm12 = vcmp.eq.f32.partialorder %v1630_v21, 8.507059e+37 }
 0x43e   :  { %v2906_v12 = vpop.eup %2905 }
 0x43f   :  { %v1640_v28 = vadd.f32 1.0, %v2906_v12  ;;  %v2908_v4 = vpop.eup %2907  ;;  %v2764_v9 = vmul.f32 -1.442695, %v1728_v11 }
 0x440   :  { %v3812_v1 = vadd.f32 1.0, %v2908_v4  ;;  %v4117_v4 = vld [vmem:[#allocation19_spill] sm:$0xff] }
 0x441   :  { %v2910_v20 = vpop.eup %2909  ;;  %2911 = vrcp.f32 %v1640_v28  ;;  %v1652_v50 = vand.u32 2147483648, %v1640_v28  ;;  %v1650_v38 = vand.u32 2147483647, %v1640_v28  ;;  %vm1646_vm1 = vweird.f32 %v1640_v28 }
 0x442   :  { %v1622_v48 = vmul.f32 %v2910_v20, %v1620_v54  ;;  %2913 = vpow2.f32 %v2764_v9  ;;  %vm1627_vm11 = vweird.f32 %v2910_v20  ;;  %v4118_v9 = vld [vmem:[#allocation20_spill] sm:$0xff]  ;;  %vm1761_vm10 = vweird.f32 %v3812_v1 }
 0x443   :  { %2915 = vrcp.f32 %v3812_v1  ;;  %vm1628_vm15 = vmor %vm1626_vm14, %vm1627_vm11  ;;  %v1551_v43 = vadd.f32 %v1550_v32, %v4118_v9  ;;  %vm1651_vm4 = vcmp.eq.f32.partialorder %v1650_v38, 8.507059e+37  ;;  %v1765_v63 = vand.u32 2147483647, %v3812_v1 }
 0x444   :  { %v1623_v13 = vsub.f32 1.0, %v1622_v48  ;;  %v1656_v48 = vadd.f32 %v4117_v4, %v1613_v47 }
 0x445   :  { %vm1766_vm11 = vcmp.eq.f32.partialorder %v1765_v63, 8.507059e+37 }
 0x446   :  { %v1624_v52 = vmul.f32 %v2910_v20, %v1623_v13 }
 0x447   :  { %v2912_v5 = vpop.eup %2911 }
 0x448   :  { %v1642_v46 = vmul.f32 %v2912_v5, %v1640_v28  ;;  %v1625_v35 = vadd.f32 %v2910_v20, %v1624_v52  ;;  %v2914_v12 = vpop.eup %2913  ;;  %vm1647_vm0 = vweird.f32 %v2912_v5 }
 0x449   :  { %v1732_v45 = vadd.f32 1.0, %v2914_v12  ;;  %v2916_v52 = vpop.eup %2915  ;;  %vm1648_vm3 = vmor %vm1646_vm1, %vm1647_vm0  ;;  %v1722_v12 = vpop.f32.mrf.mxu1 }
 0x44a   :  { %v1643_v7 = vsub.f32 1.0, %v1642_v46  ;;  %v1629_v11 = vsel %vm1628_vm15, %v2910_v20, %v1625_v35  ;;  %v1653_v46 = vor.u32 1.1754944e-38, %v1652_v50  ;;  %v1757_v21 = vmul.f32 %v2916_v52, %v3812_v1 }
 0x44b   :  { %v1634_v13 = vsel %vm1631_vm12, %v1633_v0, %v1629_v11  ;;  %2917 = vrcp.f32 %v1732_v45  ;;  %v1744_v4 = vand.u32 2147483648, %v1732_v45  ;;  %v1742_v50 = vand.u32 2147483647, %v1732_v45 }
 0x44c   :  { %v1644_v24 = vmul.f32 %v2912_v5, %v1643_v7  ;;  %v1657_v41 = vmul.f32 %v1656_v48, %v1634_v13  ;;  %v1758_v7 = vsub.f32 1.0, %v1757_v21  ;;  %v1771_v28 = vadd.f32 %v3725_v23, %v1722_v12 }
 0x44d   :  { %vm1738_vm6 = vweird.f32 %v1732_v45  ;;  %vm1743_vm8 = vcmp.eq.f32.partialorder %v1742_v50, 8.507059e+37  ;;  %vm1762_vm5 = vweird.f32 %v2916_v52  ;;  %v1780_v12 = vrot.slane %v3758_v18, 6 }
 0x44e   :  { %v1645_v54 = vadd.f32 %v2912_v5, %v1644_v24  ;;  %v1658_v30 = vadd.f32 %v1657_v41, %v1551_v43  ;;  %v1759_v43 = vmul.f32 %v2916_v52, %v1758_v7 }
 0x450   :  { %v1649_v20 = vsel %vm1648_vm3, %v2912_v5, %v1645_v54  ;;  %2919 = vtanh.f32 %v1658_v30  ;;  %v1745_v54 = vor.u32 1.1754944e-38, %v1744_v4 }
 0x451   :  { %v1654_v32 = vsel %vm1651_vm4, %v1653_v46, %v1649_v20  ;;  %v2918_v47 = vpop.eup %2917  ;;  %v1773_v20 = vrot.slane %v1771_v28, 6 }
 0x452   :  { %v1734_v35 = vmul.f32 %v2918_v47, %v1732_v45  ;;  %v1660_v0 = vsub.f32 1.0, %v1654_v32  ;;  %v1662_v24 = vmul.f32 %v1654_v32, %v3739_v8  ;;  %vm1739_vm2 = vweird.f32 %v2918_v47 }
 0x453   :  { %vm1740_vm7 = vmor %vm1738_vm6, %vm1739_vm2  ;;  %v1760_v32 = vadd.f32 %v2916_v52, %v1759_v43  ;;  %v1767_v45 = vand.u32 2147483648, %v3812_v1 }
 0x454   :  { %v1735_v48 = vsub.f32 1.0, %v1734_v35 }
 0x456   :  { %v2920_v11 = vpop.eup %2919  ;;  %v1736_v41 = vmul.f32 %v2918_v47, %v1735_v48 }
 0x457   :  { %v1661_v13 = vmul.f32 %v2920_v11, %v1660_v0 }
 0x458   :  { %v1737_v38 = vadd.f32 %v2918_v47, %v1736_v41 }
 0x459   :  { %v1663_v5 = vadd.f32 %v1662_v24, %v1661_v13  ;;  %v3836_v13 = vpop.permute.xlu2 %1786 }
 0x45a   :  { %v1741_v46 = vsel %vm1740_vm7, %v2918_v47, %v1737_v38  ;;  %v1768_v47 = vor.u32 1.1754944e-38, %v1767_v45  ;;  %vm1788_vm14 = vcmp.eq.s32.totalorder %v3836_v13, 1 }
 0x45b   :  { %v3823_v30 = vsel %vm1488_vm9, %v1663_v5, %v3739_v8  ;;  %v1746_v21 = vsel %vm1743_vm8, %v1745_v54, %v1741_v46  ;;  %vm1763_vm9 = vmor %vm1761_vm10, %vm1762_vm5  ;;  %v4123_v5 = vld [vmem:[#allocation17_spill] sm:$0xff] }
 0x45c   :  { %2769 = vmatmul.msk.f32.vlgmr.msrb.gmra.mxu1 %vm146_vm13, %v3823_v30  ;;  %v1775_v35 = vmul.f32 %v1773_v20, %v1746_v21  ;;  %v1764_v4 = vsel %vm1763_vm9, %v2916_v52, %v1760_v32  ;;  %v4124_v32 = vld [vmem:[#allocation12_spill] sm:$0xff] }
 0x45d   :  { %2151 = vmatpush.msrb.mxu1 %v3593_v49  ;;  %v1769_v7 = vsel %vm1766_vm11, %v1768_v47, %v1764_v4 }
 0x45e   :  { %v1776_v8 = vadd.f32 %v1775_v35, %v3733_v37  ;;  %v1778_v0 = vsub.f32 1.0, %v1769_v7  ;;  %v1782_v1 = vmul.f32 %v1780_v12, %v1769_v7  ;;  %v4125_v35 = vld [vmem:[#allocation18_spill] sm:$0xff] }
 0x45f   :  { %2152 = vmatpush.msrb.mxu1 %v3599_v53 }
 0x460   :  { %2921 = vtanh.f32 %v1776_v8 }
 0x461   :  { %2153 = vmatpush.msrb.mxu1 %v3630_v57 }
 0x463   :  { %2154 = vmatpush.msrb.mxu1 %v3642_v59 }
 0x466   :  { %v2922_v11 = vpop.eup %2921 }
 0x467   :  { %v1779_v48 = vmul.f32 %v2922_v11, %v1778_v0 }
 0x469   :  { %v1783_v24 = vadd.f32 %v1782_v1, %v1779_v48 }
 0x46b   :  { %v1790_v41 = vrot.slane %v1783_v24, 2 }
 0x46d   :  { %v3842_v52 = vsel %vm1788_vm14, %v1790_v41, %v3758_v18  ;;  %v4122_v18 = vld [vmem:[#allocation11_spill] sm:$0xff] }
 0x46e   :  { %2766 = vmatmul.msk.f32.vlgmr.msra.gmra.mxu2 %vm146_vm13, %v3842_v52  ;;  %2767 = vmatmul.msk.f32.vlgmr.msrb.gmra.mxu3 %vm146_vm13, %v3842_v52 }
 0x46f   :  { %2768 = vmatmul.msk.f32.vlgmr.msrb.gmra.mxu0 %vm146_vm13, %v3842_v52  ;;  %2775 = vmatmul.msk.f32.vlgmr.msra.gmra.mxu1 %vm146_vm13, %v3842_v52 }
 0x470   :  { %2020 = vmatpush.msra.mxu2 %v3484_v26  ;;  %2111 = vmatpush.msrb.mxu3 %v3614_v60  ;;  %v4119_v26 = vld [vmem:[#allocation8_spill] sm:$0xff] }
 0x471   :  { %2131 = vmatpush.msrb.mxu0 %v3617_v55  ;;  %2283 = vmatpush.msra.mxu1 %v3514_v14 }
 0x472   :  { %2021 = vmatpush.msra.mxu2 %v3491_v39  ;;  %2112 = vmatpush.msrb.mxu3 %v3623_v27  ;;  %v4120_v39 = vld [vmem:[#allocation9_spill] sm:$0xff] }
 0x473   :  { %2132 = vmatpush.msrb.mxu0 %v3626_v56  ;;  %2284 = vmatpush.msra.mxu1 %v3520_v40 }
 0x474   :  { %2022 = vmatpush.msra.mxu2 %v3496_v44  ;;  %2113 = vmatpush.msrb.mxu3 %v3633_v58  ;;  %v4121_v44 = vld [vmem:[#allocation13_spill] sm:$0xff] }
 0x475   :  { %2133 = vmatpush.msrb.mxu0 %v3636_v62  ;;  %2285 = vmatpush.msra.mxu1 %v3526_v29 }
 0x476   :  { %2770 = vmatmul.msk.f32.vlgmr.msrb.gmra.mxu2 %vm146_vm13, %v3823_v30  ;;  %2771 = vmatmul.msk.f32.vlgmr.msra.gmra.mxu3 %vm146_vm13, %v3823_v30 }
 0x477   :  { %2774 = vmatmul.msk.f32.vlgmr.msra.gmra.mxu0 %vm146_vm13, %v3842_v52  ;;  %2023 = vmatpush.msra.mxu2 %v3639_v51 }
 0x478   :  { %2114 = vmatpush.msrb.mxu3 %v3654_v15  ;;  %2134 = vmatpush.msrb.mxu0 %v3657_v42 }
 0x479   :  { %2174 = vmatpush.msrb.mxu2 %v3651_v6  ;;  %2286 = vmatpush.msra.mxu1 %v3536_v36 }
 0x47a   :  { %2194 = vmatpush.msra.mxu3 %v3664_v22  ;;  %2214 = vmatpush.msra.mxu0 %v3667_v34 }
 0x47b   :  { %2175 = vmatpush.msrb.mxu2 %v3660_v3 }
 0x47c   :  { %2195 = vmatpush.msra.mxu3 %v3674_v2  ;;  %2215 = vmatpush.msra.mxu0 %v3677_v19 }
 0x47d   :  { %2176 = vmatpush.msrb.mxu2 %v3670_v25 }
 0x47e   :  { %2196 = vmatpush.msra.mxu3 %v3686_v61  ;;  %2776 = vmatmul.msk.f32.vlgmr.msra.gmra.mxu2 %vm146_vm13, %v3842_v52 }
 0x47f   :  { %2216 = vmatpush.msra.mxu0 %v3690_v10  ;;  %2177 = vmatpush.msrb.mxu2 %v3680_v17 }
 0x480   :  { %2197 = vmatpush.msra.mxu3 %v3694_v16 }
 0x481   :  { %2303 = vmatpush.msra.mxu2 %v3532_v33  ;;  %2217 = vmatpush.msra.mxu0 %v3698_v31 }
 0x483   :  { %2304 = vmatpush.msra.mxu2 %v4119_v26 }
 0x485   :  { %2305 = vmatpush.msra.mxu2 %v4120_v39 }
 0x487   :  { %2306 = vmatpush.msra.mxu2 %v4121_v44 }
 0x4d9   :  { %v1876_v14 = vpop.f32.mrf.mxu1 }
 0x4ec   :  { %v1853_v40 = vpop.f32.mrf.mxu0  ;;  %v2005_v29 = vpop.f32.mrf.mxu1 }
 0x4ed   :  { %v2052_v36 = vrot.slane %v2005_v29, 4 }
 0x4ef   :  { %v2054_v50 = vadd.f32 %v2052_v36, %v4122_v18 }
 0x4f1   :  { %v2778_v28 = vmul.f32 -1.442695, %v2054_v50  ;;  %v1813_v43 = vpop.f32.mrf.mxu2  ;;  %v1833_v46 = vpop.f32.mrf.mxu3 }
 0x4f2   :  { %v1814_v38 = vadd.f32 %v1813_v43, %v4123_v5  ;;  %v1834_v63 = vadd.f32 %v1833_v46, %v4125_v35  ;;  %v1854_v43 = vadd.f32 %v1853_v40, %v4118_v9 }
 0x4f3   :  { %2923 = vpow2.f32 %v2778_v28 }
 0x4f4   :  { %v1919_v33 = vadd.f32 %v1876_v14, %v1814_v38  ;;  %v1985_v54 = vpop.f32.mrf.mxu0 }
 0x4f5   :  { %v2029_v20 = vrot.slane %v1985_v54, 4 }
 0x4f6   :  { %v2772_v21 = vmul.f32 -1.442695, %v1919_v33 }
 0x4f7   :  { %v2031_v45 = vadd.f32 %v2029_v20, %v4124_v32 }
 0x4f8   :  { %2925 = vpow2.f32 %v2772_v21  ;;  %v4126_v21 = vld [vmem:[#allocation19_spill] sm:$0xff] }
 0x4f9   :  { %v2924_v8 = vpop.eup %2923  ;;  %v2777_v4 = vmul.f32 -1.442695, %v2031_v45  ;;  %v1896_v47 = vpop.f32.mrf.mxu2 }
 0x4fa   :  { %v3896_v7 = vadd.f32 1.0, %v2924_v8  ;;  %v1939_v0 = vadd.f32 %v1896_v47, %v1834_v63  ;;  %v1916_v29 = vpop.f32.mrf.mxu3 }
 0x4fb   :  { %2927 = vpow2.f32 %v2777_v4  ;;  %v1959_v45 = vadd.f32 %v4126_v21, %v1916_v29 }
 0x4fc   :  { %v2773_v12 = vmul.f32 -1.442695, %v1939_v0  ;;  %2929 = vrcp.f32 %v3896_v7  ;;  %v2070_v0 = vand.u32 2147483648, %v3896_v7  ;;  %vm2064_vm10 = vweird.f32 %v3896_v7 }
 0x4fe   :  { %v2926_v11 = vpop.eup %2925  ;;  %2931 = vpow2.f32 %v2773_v12 }
 0x4ff   :  { %v1923_v48 = vadd.f32 1.0, %v2926_v11 }
 0x501   :  { %v2928_v1 = vpop.eup %2927  ;;  %2933 = vrcp.f32 %v1923_v48  ;;  %v2025_v28 = vpop.f32.mrf.mxu2  ;;  %v1933_v46 = vand.u32 2147483647, %v1923_v48  ;;  %v1935_v20 = vand.u32 2147483648, %v1923_v48  ;;  %vm1929_vm12 = vweird.f32 %v1923_v48 }
 0x502   :  { %v2035_v24 = vadd.f32 1.0, %v2928_v1  ;;  %v3899_v41 = vpop.eup %2929  ;;  %v2074_v4 = vadd.f32 %v3725_v23, %v2025_v28 }
 0x503   :  { %v2060_v14 = vmul.f32 %v3899_v41, %v3896_v7  ;;  %vm1934_vm3 = vcmp.eq.f32.partialorder %v1933_v46, 8.507059e+37  ;;  %v1936_v29 = vor.u32 1.1754944e-38, %v1935_v20  ;;  %vm2065_vm8 = vweird.f32 %v3899_v41 }
 0x504   :  { %2935 = vrcp.f32 %v2035_v24  ;;  %v2932_v26 = vpop.eup %2931  ;;  %v2045_v12 = vand.u32 2147483647, %v2035_v24  ;;  %v2047_v11 = vand.u32 2147483648, %v2035_v24  ;;  %vm2041_vm4 = vweird.f32 %v2035_v24  ;;  %vm2066_vm11 = vmor %vm2064_vm10, %vm2065_vm8 }
 0x505   :  { %v1943_v39 = vadd.f32 1.0, %v2932_v26  ;;  %v2061_v54 = vsub.f32 1.0, %v2060_v14  ;;  %v2076_v28 = vrot.slane %v2074_v4, 4  ;;  %v2068_v4 = vand.u32 2147483647, %v3896_v7 }
 0x506   :  { %vm2046_vm6 = vcmp.eq.f32.partialorder %v2045_v12, 8.507059e+37  ;;  %v2083_v7 = vrot.slane %v3842_v52, 4 }
 0x507   :  { %v2934_v44 = vpop.eup %2933  ;;  %2937 = vrcp.f32 %v1943_v39  ;;  %v2062_v14 = vmul.f32 %v3899_v41, %v2061_v54  ;;  %v1955_v23 = vand.u32 2147483648, %v1943_v39  ;;  %v1953_v54 = vand.u32 2147483647, %v1943_v39 }
 0x508   :  { %v1925_v36 = vmul.f32 %v2934_v44, %v1923_v48  ;;  %vm1930_vm15 = vweird.f32 %v2934_v44  ;;  %v2048_v48 = vor.u32 1.1754944e-38, %v2047_v11  ;;  %vm1949_vm5 = vweird.f32 %v1943_v39 }
 0x509   :  { %vm1931_vm1 = vmor %vm1929_vm12, %vm1930_vm15  ;;  %v2063_v46 = vadd.f32 %v3899_v41, %v2062_v14  ;;  %v1956_v12 = vor.u32 1.1754944e-38, %v1955_v23  ;;  %vm1954_vm15 = vcmp.eq.f32.partialorder %v1953_v54, 8.507059e+37  ;;  %vm2069_vm12 = vcmp.eq.f32.partialorder %v2068_v4, 8.507059e+37 }
 0x50a   :  { %v2936_v50 = vpop.eup %2935  ;;  %v1926_v38 = vsub.f32 1.0, %v1925_v36 }
 0x50b   :  { %v2037_v33 = vmul.f32 %v2936_v50, %v2035_v24  ;;  %vm2042_vm0 = vweird.f32 %v2936_v50 }
 0x50c   :  { %v1927_v63 = vmul.f32 %v2934_v44, %v1926_v38  ;;  %vm2043_vm2 = vmor %vm2041_vm4, %vm2042_vm0 }
 0x50d   :  { %v2038_v8 = vsub.f32 1.0, %v2037_v33  ;;  %v2938_v47 = vpop.eup %2937 }
 0x50e   :  { %v1945_v1 = vmul.f32 %v2938_v47, %v1943_v39  ;;  %v1928_v40 = vadd.f32 %v2934_v44, %v1927_v63  ;;  %vm1950_vm7 = vweird.f32 %v2938_v47 }
 0x50f   :  { %v2039_v26 = vmul.f32 %v2936_v50, %v2038_v8  ;;  %vm1951_vm9 = vmor %vm1949_vm5, %vm1950_vm7 }
 0x510   :  { %v1946_v36 = vsub.f32 1.0, %v1945_v1  ;;  %v1932_v38 = vsel %vm1931_vm1, %v2934_v44, %v1928_v40 }
 0x511   :  { %v2040_v33 = vadd.f32 %v2936_v50, %v2039_v26  ;;  %v1937_v21 = vsel %vm1934_vm3, %v1936_v29, %v1932_v38 }
 0x512   :  { %v1947_v9 = vmul.f32 %v2938_v47, %v1946_v36  ;;  %v1960_v63 = vmul.f32 %v1959_v45, %v1937_v21  ;;  %v2067_v21 = vsel %vm2066_vm11, %v3899_v41, %v2063_v46  ;;  %v2071_v45 = vor.u32 1.1754944e-38, %v2070_v0  ;;  %v3916_v36 = vpop.permute.xlu0 %2089 }
 0x513   :  { %v2044_v8 = vsel %vm2043_vm2, %v2936_v50, %v2040_v33  ;;  %vm2091_vm0 = vcmp.eq.s32.totalorder %v3916_v36, 1 }
 0x514   :  { %v2049_v18 = vsel %vm2046_vm6, %v2048_v48, %v2044_v8  ;;  %v1948_v24 = vadd.f32 %v2938_v47, %v1947_v9  ;;  %v1961_v44 = vadd.f32 %v1960_v63, %v1854_v43  ;;  %v2072_v9 = vsel %vm2069_vm12, %v2071_v45, %v2067_v21 }
 0x515   :  { %v2078_v20 = vmul.f32 %v2076_v28, %v2049_v18  ;;  %v2081_v40 = vsub.f32 1.0, %v2072_v9  ;;  %v2085_v14 = vmul.f32 %v2083_v7, %v2072_v9  ;;  %v4129_v9 = vld [vmem:[#allocation19_spill] sm:$0xff] }
 0x516   :  { %v1952_v11 = vsel %vm1951_vm9, %v2938_v47, %v1948_v24  ;;  %2939 = vtanh.f32 %v1961_v44 }
 0x517   :  { %v2079_v50 = vadd.f32 %v2078_v20, %v3733_v37  ;;  %v1957_v1 = vsel %vm1954_vm15, %v1956_v12, %v1952_v11  ;;  %v4128_v20 = vld [vmem:[#allocation20_spill] sm:$0xff] }
 0x518   :  { %v1963_v18 = vsub.f32 1.0, %v1957_v1  ;;  %v1965_v23 = vmul.f32 %v1957_v1, %v3823_v30 }
 0x519   :  { %2941 = vtanh.f32 %v2079_v50 }
 0x51c   :  { %v2940_v39 = vpop.eup %2939 }
 0x51d   :  { %v1964_v43 = vmul.f32 %v2940_v39, %v1963_v18 }
 0x51f   :  { %v2942_v47 = vpop.eup %2941  ;;  %v1966_v29 = vadd.f32 %v1965_v23, %v1964_v43 }
 0x520   :  { %v2082_v26 = vmul.f32 %v2942_v47, %v2081_v40 }
 0x521   :  { %v3921_v0 = vsel %vm1788_vm14, %v1966_v29, %v3823_v30  ;;  %v3016_v30 = vld [vmem:[#allocation2 + $0x70] sm:$0xff] }
 0x522   :  { %v2086_v41 = vadd.f32 %v2085_v14, %v2082_v26  ;;  %2782 = vmatmul.msk.f32.vlgmr.msrb.gmra.mxu2 %vm146_vm13, %v3921_v0  ;;  %v4130_v26 = vld [vmem:[#allocation14_spill] sm:$0xff] }
 0x523   :  { %2454 = vmatpush.msrb.mxu2 %v3593_v49  ;;  %v3017_v49 = vld [vmem:[#allocation2 + $0x58] sm:$0xff] }
 0x524   :  { %v2093_v38 = vrot.slane %v2086_v41, 4 }
 0x525   :  { %2455 = vmatpush.msrb.mxu2 %v3599_v53  ;;  %v3018_v53 = vld [vmem:[#allocation2 + $0x40] sm:$0xff] }
 0x526   :  { %v3930_v33 = vsel %vm2091_vm0, %v2093_v38, %v3842_v52 }
 0x527   :  { %2779 = vmatmul.msk.f32.vlgmr.msrb.gmra.mxu3 %vm146_vm13, %v3930_v33  ;;  %2780 = vmatmul.msk.f32.vlgmr.msrb.gmra.mxu0 %vm146_vm13, %v3930_v33 }
 0x528   :  { %2781 = vmatmul.msk.f32.vlgmr.msrb.gmra.mxu1 %vm146_vm13, %v3930_v33  ;;  %2323 = vmatpush.msrb.mxu3 %v3016_v30 }
 0x529   :  { %2414 = vmatpush.msrb.mxu0 %v3614_v60  ;;  %2434 = vmatpush.msrb.mxu1 %v3617_v55 }
 0x52a   :  { %2324 = vmatpush.msrb.mxu3 %v3017_v49  ;;  %2456 = vmatpush.msrb.mxu2 %v3630_v57 }
 0x52b   :  { %2788 = vmatmul.msk.f32.vlgmr.msra.gmra.mxu2 %vm146_vm13, %v3930_v33  ;;  %2415 = vmatpush.msrb.mxu0 %v3623_v27 }
 0x52c   :  { %2325 = vmatpush.msrb.mxu3 %v3018_v53  ;;  %2435 = vmatpush.msrb.mxu1 %v3626_v56 }
 0x52d   :  { %2416 = vmatpush.msrb.mxu0 %v3633_v58  ;;  %2457 = vmatpush.msrb.mxu2 %v3642_v59 }
 0x52e   :  { %2326 = vmatpush.msrb.mxu3 %v3639_v51  ;;  %2436 = vmatpush.msrb.mxu1 %v3636_v62 }
 0x52f   :  { %2783 = vmatmul.msk.f32.vlgmr.msra.gmra.mxu3 %vm146_vm13, %v3921_v0  ;;  %2784 = vmatmul.msk.f32.vlgmr.msra.gmra.mxu0 %vm146_vm13, %v3921_v0 }
 0x530   :  { %2787 = vmatmul.msk.f32.vlgmr.msra.gmra.mxu1 %vm146_vm13, %v3930_v33  ;;  %2477 = vmatpush.msra.mxu3 %v3651_v6 }
 0x531   :  { %2417 = vmatpush.msrb.mxu0 %v3654_v15  ;;  %2437 = vmatpush.msrb.mxu1 %v3657_v42 }
 0x532   :  { %2478 = vmatpush.msra.mxu3 %v3660_v3 }
 0x533   :  { %2497 = vmatpush.msra.mxu0 %v3664_v22  ;;  %2517 = vmatpush.msra.mxu1 %v3667_v34  ;;  %v4127_v22 = vld [vmem:[#allocation11_spill] sm:$0xff] }
 0x534   :  { %2479 = vmatpush.msra.mxu3 %v3670_v25 }
 0x535   :  { %2498 = vmatpush.msra.mxu0 %v3674_v2  ;;  %2518 = vmatpush.msra.mxu1 %v3677_v19 }
 0x536   :  { %2480 = vmatpush.msra.mxu3 %v3680_v17 }
 0x537   :  { %2499 = vmatpush.msra.mxu0 %v3686_v61  ;;  %2789 = vmatmul.msk.f32.vlgmr.msrb.gmra.mxu3 %vm146_vm13, %v3930_v33 }
 0x538   :  { %2519 = vmatpush.msra.mxu1 %v3690_v10 }
 0x539   :  { %2500 = vmatpush.msra.mxu0 %v3694_v16 }
 0x53a   :  { %2520 = vmatpush.msra.mxu1 %v3698_v31 }
 0x5a4   :  { %v2136_v62 = vpop.f32.mrf.mxu0 }
 0x5a5   :  { %v2156_v60 = vpop.f32.mrf.mxu1  ;;  %v2179_v55 = vpop.f32.mrf.mxu2  ;;  %v2137_v3 = vadd.f32 %v2136_v62, %v4125_v35 }
 0x5a6   :  { %v2157_v4 = vadd.f32 %v2156_v60, %v4128_v20 }
 0x5aa   :  { %v2116_v27 = vpop.f32.mrf.mxu3 }
 0x5ab   :  { %v2117_v56 = vadd.f32 %v2116_v27, %v4123_v5 }
 0x5ac   :  { %v2219_v46 = vpop.f32.mrf.mxu0 }
 0x5ad   :  { %v2222_v57 = vadd.f32 %v2179_v55, %v2117_v56  ;;  %v2288_v58 = vpop.f32.mrf.mxu1  ;;  %v2262_v18 = vadd.f32 %v4129_v9, %v2219_v46 }
 0x5ae   :  { %v2332_v51 = vrot.slane %v2288_v58, 2  ;;  %v2308_v59 = vpop.f32.mrf.mxu2 }
 0x5af   :  { %v2785_v6 = vmul.f32 -1.442695, %v2222_v57  ;;  %v2355_v15 = vrot.slane %v2308_v59, 2 }
 0x5b0   :  { %v2334_v42 = vadd.f32 %v2332_v51, %v4124_v32 }
 0x5b1   :  { %2943 = vpow2.f32 %v2785_v6  ;;  %v2357_v34 = vadd.f32 %v2355_v15, %v4127_v22 }
 0x5b2   :  { %v2790_v25 = vmul.f32 -1.442695, %v2334_v42  ;;  %v2199_v2 = vpop.f32.mrf.mxu3 }
 0x5b3   :  { %v2791_v19 = vmul.f32 -1.442695, %v2357_v34  ;;  %v2242_v17 = vadd.f32 %v2199_v2, %v2137_v3 }
 0x5b4   :  { %2945 = vpow2.f32 %v2790_v25 }
 0x5b5   :  { %2947 = vpow2.f32 %v2791_v19  ;;  %v2786_v61 = vmul.f32 -1.442695, %v2242_v17 }
 0x5b7   :  { %v2944_v10 = vpop.eup %2943  ;;  %2949 = vpow2.f32 %v2786_v61 }
 0x5b8   :  { %v2226_v16 = vadd.f32 1.0, %v2944_v10 }
 0x5ba   :  { %v2946_v31 = vpop.eup %2945  ;;  %2951 = vrcp.f32 %v2226_v16  ;;  %v2238_v12 = vand.u32 2147483648, %v2226_v16  ;;  %v2328_v11 = vpop.f32.mrf.mxu3  ;;  %v2236_v45 = vand.u32 2147483647, %v2226_v16  ;;  %vm2232_vm1 = vweird.f32 %v2226_v16 }
 0x5bb   :  { %v2948_v13 = vpop.eup %2947  ;;  %v2338_v52 = vadd.f32 1.0, %v2946_v31  ;;  %v2377_v14 = vadd.f32 %v4130_v26, %v2328_v11  ;;  %v2574_v26 = vld [vmem:[#allocation2 + $0x138] sm:$0xff] }
 0x5bc   :  { %v3976_v32 = vadd.f32 1.0, %v2948_v13  ;;  %v2239_v29 = vor.u32 1.1754944e-38, %v2238_v12  ;;  %vm2237_vm2 = vcmp.eq.f32.partialorder %v2236_v45, 8.507059e+37 }
 0x5bd   :  { %v2950_v28 = vpop.eup %2949  ;;  %2953 = vrcp.f32 %v2338_v52  ;;  %v2348_v43 = vand.u32 2147483647, %v2338_v52  ;;  %v2350_v47 = vand.u32 2147483648, %v2338_v52  ;;  %vm2344_vm6 = vweird.f32 %v2338_v52 }
 0x5be   :  { %2955 = vrcp.f32 %v3976_v32  ;;  %v3979_v48 = vadd.f32 1.0, %v2950_v28  ;;  %v2379_v58 = vrot.slane %v2377_v14, 2  ;;  %v2373_v3 = vand.u32 2147483648, %v3976_v32  ;;  %v2579_v14 = vld [vmem:[#allocation2 + $0x198] sm:$0xff] }
 0x5bf   :  { %vm2349_vm7 = vcmp.eq.f32.partialorder %v2348_v43, 8.507059e+37  ;;  %v2351_v57 = vor.u32 1.1754944e-38, %v2350_v47  ;;  %vm2367_vm11 = vweird.f32 %v3976_v32  ;;  %v2371_v25 = vand.u32 2147483647, %v3976_v32 }
 0x5c0   :  { %v2952_v63 = vpop.eup %2951  ;;  %2957 = vrcp.f32 %v3979_v48  ;;  %v2258_v56 = vand.u32 2147483648, %v3979_v48  ;;  %v2256_v51 = vand.u32 2147483647, %v3979_v48  ;;  %vm2252_vm9 = vweird.f32 %v3979_v48 }
 0x5c1   :  { %v2228_v8 = vmul.f32 %v2952_v63, %v2226_v16  ;;  %vm2233_vm14 = vweird.f32 %v2952_v63  ;;  %v2374_v16 = vor.u32 1.1754944e-38, %v2373_v3 }
 0x5c2   :  { %vm2234_vm3 = vmor %vm2232_vm1, %vm2233_vm14  ;;  %v2259_v2 = vor.u32 1.1754944e-38, %v2258_v56  ;;  %vm2257_vm14 = vcmp.eq.f32.partialorder %v2256_v51, 8.507059e+37  ;;  %vm2372_vm1 = vcmp.eq.f32.partialorder %v2371_v25, 8.507059e+37 }
 0x5c3   :  { %v2954_v54 = vpop.eup %2953  ;;  %v2229_v24 = vsub.f32 1.0, %v2228_v8 }
 0x5c4   :  { %v3982_v44 = vpop.eup %2955  ;;  %v2340_v50 = vmul.f32 %v2954_v54, %v2338_v52  ;;  %vm2345_vm4 = vweird.f32 %v2954_v54 }
 0x5c5   :  { %v2230_v21 = vmul.f32 %v2952_v63, %v2229_v24  ;;  %v2363_v1 = vmul.f32 %v3982_v44, %v3976_v32  ;;  %vm2346_vm8 = vmor %vm2344_vm6, %vm2345_vm4  ;;  %vm2368_vm10 = vweird.f32 %v3982_v44 }
 0x5c6   :  { %v2341_v39 = vsub.f32 1.0, %v2340_v50  ;;  %v2958_v40 = vpop.eup %2957  ;;  %vm2369_vm12 = vmor %vm2367_vm11, %vm2368_vm10 }
 0x5c7   :  { %v2231_v7 = vadd.f32 %v2952_v63, %v2230_v21  ;;  %v2364_v23 = vsub.f32 1.0, %v2363_v1  ;;  %v2248_v41 = vmul.f32 %v2958_v40, %v3979_v48  ;;  %vm2253_vm5 = vweird.f32 %v2958_v40 }
 0x5c8   :  { %v2342_v38 = vmul.f32 %v2954_v54, %v2341_v39  ;;  %vm2254_vm15 = vmor %vm2252_vm9, %vm2253_vm5  ;;  %v2577_v39 = vld [vmem:[#allocation2 + $0x180] sm:$0xff]  ;;  %vm2610_vm9 = vcmask 130048  }
 0x5c9   :  { %v2235_v30 = vsel %vm2234_vm3, %v2952_v63, %v2231_v7  ;;  %v2365_v49 = vmul.f32 %v3982_v44, %v2364_v23  ;;  %v2249_v60 = vsub.f32 1.0, %v2248_v41  ;;  %v2386_v63 = vrot.slane %v3930_v33, 2  ;;  %2602 = vmatpush.msra.mxu2 %v2577_v39  ;;  %v2575_v7 = vld [vmem:[#allocation2 + $0x150] sm:$0xff] }
 0x5ca   :  { %v2240_v53 = vsel %vm2237_vm2, %v2239_v29, %v2235_v30  ;;  %v2343_v55 = vadd.f32 %v2954_v54, %v2342_v38 }
 0x5cb   :  { %v2263_v27 = vmul.f32 %v2262_v18, %v2240_v53  ;;  %v2250_v62 = vmul.f32 %v2958_v40, %v2249_v60  ;;  %v2366_v42 = vadd.f32 %v3982_v44, %v2365_v49 }
 0x5cc   :  { %v2347_v59 = vsel %vm2346_vm8, %v2954_v54, %v2343_v55 }
 0x5cd   :  { %v2264_v6 = vadd.f32 %v2263_v27, %v2157_v4  ;;  %v2352_v15 = vsel %vm2349_vm7, %v2351_v57, %v2347_v59  ;;  %v2251_v34 = vadd.f32 %v2958_v40, %v2250_v62  ;;  %v2370_v61 = vsel %vm2369_vm12, %v3982_v44, %v2366_v42  ;;  %v4008_v44 = vpop.permute.xlu1 %2392 }
 0x5ce   :  { %v2381_v22 = vmul.f32 %v2379_v58, %v2352_v15  ;;  %v2375_v31 = vsel %vm2372_vm1, %v2374_v16, %v2370_v61  ;;  %vm2394_vm3 = vcmp.eq.s32.totalorder %v4008_v44, 1  ;;  %vm2677_vm12 = vcmask 25600  }
 0x5cf   :  { %2959 = vtanh.f32 %v2264_v6  ;;  %v2255_v17 = vsel %vm2254_vm15, %v2958_v40, %v2251_v34  ;;  %v2384_v32 = vsub.f32 1.0, %v2375_v31  ;;  %v2388_v46 = vmul.f32 %v2386_v63, %v2375_v31  ;;  %v2576_v40 = vld [vmem:[#allocation2 + $0x168] sm:$0xff]  ;;  %v3019_v6 = vld [vmem:[#allocation2 + $0x23b] ss:$0 sm:$0xff] }
 0x5d0   :  { %v2382_v19 = vadd.f32 %v2381_v22, %v3733_v37  ;;  %v2260_v10 = vsel %vm2257_vm14, %v2259_v2, %v2255_v17  ;;  %2603 = vmatpush.msra.mxu2 %v2576_v40  ;;  %v2584_v63 = vld [vmem:[#allocation2 + $0x1f8] sm:$0xff] }
 0x5d1   :  { %v2266_v13 = vsub.f32 1.0, %v2260_v10  ;;  %v2268_v48 = vmul.f32 %v2260_v10, %v3921_v0 }
 0x5d2   :  { %2961 = vtanh.f32 %v2382_v19  ;;  %2604 = vmatpush.msra.mxu2 %v2575_v7 }
 0x5d4   :  { %2605 = vmatpush.msra.mxu2 %v2574_v26 }
 0x5d5   :  { %v2960_v52 = vpop.eup %2959 }
 0x5d6   :  { %v2267_v28 = vmul.f32 %v2960_v52, %v2266_v13 }
 0x5d8   :  { %v2962_v8 = vpop.eup %2961  ;;  %v2269_v54 = vadd.f32 %v2268_v48, %v2267_v28 }
 0x5d9   :  { %v2385_v37 = vmul.f32 %v2962_v8, %v2384_v32  ;;  %v2585_v32 = vld [vmem:[#allocation2 + $0x210] sm:$0xff]  ;;  %v2578_v8 = vld [vmem:[#allocation2 + $0x22c] ss:$0 sm:$0xff] }
 0x5da   :  { %v4006_v24 = vsel %vm2091_vm0, %v2269_v54, %v3921_v0 }
 0x5db   :  { %2795 = vmatmul.msk.f32.vlgmr.msra.gmra.mxu3 %vm146_vm13, %v4006_v24  ;;  %v2389_v4 = vadd.f32 %v2388_v46, %v2385_v37  ;;  %v2583_v46 = vld [vmem:[#allocation2 + $0x1e0] sm:$0xff] }
 0x5dd   :  { %v2396_v12 = vrot.slane %v2389_v4, 6  ;;  %v2582_v4 = vld [vmem:[#allocation2 + $0x1c8] sm:$0xff] }
 0x5df   :  { %v2398_v11 = vsel %vm2394_vm3, %v2396_v12, %v3930_v33  ;;  %v2581_v12 = vld [vmem:[#allocation2 + $0x22d] ss:$0 sm:$0xff] }
 0x5e0   :  { %2792 = vmatmul.msk.f32.vlgmr.msrb.gmra.mxu0 %vm146_vm13, %v2398_v11  ;;  %2793 = vmatmul.msk.f32.vlgmr.msrb.gmra.mxu1 %vm146_vm13, %v2398_v11 }
 0x5e1   :  { %2794 = vmatmul.msk.f32.vlgmr.msrb.gmra.mxu2 %vm146_vm13, %v2398_v11  ;;  %2650 = vmatpush.msrb.mxu0 %v2585_v32 }
 0x5e3   :  { %2651 = vmatpush.msrb.mxu0 %v2584_v63 }
 0x5e5   :  { %2652 = vmatpush.msrb.mxu0 %v2583_v46 }
 0x5e7   :  { %2653 = vmatpush.msrb.mxu0 %v2582_v4 }
 0x5e8   :  { %2796 = vmatmul.msk.f32.vlgmr.msra.gmra.mxu0 %vm146_vm13, %v4006_v24  ;;  %2797 = vmatmul.msk.f32.vlgmr.msra.gmra.mxu1 %vm146_vm13, %v4006_v24 }
 0x65d   :  { %v2419_v36 = vpop.f32.mrf.mxu0  ;;  %v2439_v45 = vpop.f32.mrf.mxu1 }
 0x65e   :  { %v2420_v0 = vadd.f32 %v2419_v36, %v4123_v5  ;;  %v2482_v50 = vpop.f32.mrf.mxu3  ;;  %v2440_v33 = vadd.f32 %v2439_v45, %v4125_v35  ;;  %v2580_v5 = vld [vmem:[#allocation2 + $0x1b0] sm:$0xff] }
 0x65f   :  { %2628 = vmatpush.msrb.mxu3 %v2580_v5 }
 0x660   :  { %v2525_v21 = vadd.f32 %v2482_v50, %v2420_v0 }
 0x661   :  { %2629 = vmatpush.msrb.mxu3 %v2579_v14 }
 0x662   :  { %v2798_v1 = vmul.f32 -1.442695, %v2525_v21 }
 0x664   :  { %2963 = vpow2.f32 %v2798_v1  ;;  %v2459_v56 = vpop.f32.mrf.mxu2 }
 0x665   :  { %v2502_v9 = vpop.f32.mrf.mxu0  ;;  %v2522_v27 = vpop.f32.mrf.mxu1  ;;  %v2460_v42 = vadd.f32 %v2459_v56, %v4128_v20 }
 0x666   :  { %v2545_v18 = vadd.f32 %v2502_v9, %v2440_v33  ;;  %v2565_v15 = vadd.f32 %v3019_v6, %v2522_v27 }
 0x668   :  { %v2799_v43 = vmul.f32 -1.442695, %v2545_v18 }
 0x66a   :  { %v2964_v23 = vpop.eup %2963  ;;  %2965 = vpow2.f32 %v2799_v43 }
 0x66b   :  { %v2529_v47 = vadd.f32 1.0, %v2964_v23 }
 0x66d   :  { %2967 = vrcp.f32 %v2529_v47  ;;  %v2541_v49 = vand.u32 2147483648, %v2529_v47  ;;  %v2539_v60 = vand.u32 2147483647, %v2529_v47  ;;  %vm2535_vm4 = vweird.f32 %v2529_v47 }
 0x66f   :  { %v2542_v62 = vor.u32 1.1754944e-38, %v2541_v49  ;;  %vm2540_vm6 = vcmp.eq.f32.partialorder %v2539_v60, 8.507059e+37 }
 0x670   :  { %v2966_v35 = vpop.eup %2965 }
 0x671   :  { %v2549_v29 = vadd.f32 1.0, %v2966_v35 }
 0x673   :  { %v2968_v41 = vpop.eup %2967  ;;  %2969 = vrcp.f32 %v2549_v29  ;;  %v2561_v34 = vand.u32 2147483648, %v2549_v29  ;;  %v2559_v2 = vand.u32 2147483647, %v2549_v29  ;;  %vm2555_vm8 = vweird.f32 %v2549_v29 }
 0x674   :  { %v2531_v38 = vmul.f32 %v2968_v41, %v2529_v47  ;;  %vm2536_vm0 = vweird.f32 %v2968_v41 }
 0x675   :  { %vm2537_vm2 = vmor %vm2535_vm4, %vm2536_vm0  ;;  %v2562_v61 = vor.u32 1.1754944e-38, %v2561_v34  ;;  %vm2560_vm10 = vcmp.eq.f32.partialorder %v2559_v2, 8.507059e+37 }
 0x676   :  { %v2532_v30 = vsub.f32 1.0, %v2531_v38 }
 0x678   :  { %v2533_v53 = vmul.f32 %v2968_v41, %v2532_v30 }
 0x679   :  { %v2970_v55 = vpop.eup %2969 }
 0x67a   :  { %v2551_v57 = vmul.f32 %v2970_v55, %v2549_v29  ;;  %v2534_v58 = vadd.f32 %v2968_v41, %v2533_v53  ;;  %vm2556_vm7 = vweird.f32 %v2970_v55 }
 0x67b   :  { %vm2557_vm5 = vmor %vm2555_vm8, %vm2556_vm7 }
 0x67c   :  { %v2552_v51 = vsub.f32 1.0, %v2551_v57  ;;  %v2538_v59 = vsel %vm2537_vm2, %v2968_v41, %v2534_v58 }
 0x67d   :  { %v2543_v3 = vsel %vm2540_vm6, %v2542_v62, %v2538_v59 }
 0x67e   :  { %v2553_v22 = vmul.f32 %v2970_v55, %v2552_v51  ;;  %v2566_v25 = vmul.f32 %v2565_v15, %v2543_v3 }
 0x680   :  { %v2554_v19 = vadd.f32 %v2970_v55, %v2553_v22  ;;  %v2567_v17 = vadd.f32 %v2566_v25, %v2460_v42 }
 0x682   :  { %v2558_v10 = vsel %vm2557_vm5, %v2970_v55, %v2554_v19  ;;  %2971 = vtanh.f32 %v2567_v17 }
 0x683   :  { %v2563_v16 = vsel %vm2560_vm10, %v2562_v61, %v2558_v10 }
 0x684   :  { %v2569_v31 = vsub.f32 1.0, %v2563_v16  ;;  %v2571_v20 = vmul.f32 %v2563_v16, %v4006_v24 }
 0x688   :  { %v2972_v13 = vpop.eup %2971 }
 0x689   :  { %v2570_v52 = vmul.f32 %v2972_v13, %v2569_v31 }
 0x68b   :  { %v2572_v28 = vadd.f32 %v2571_v20, %v2570_v52 }
 0x68d   :  { %v2573_v48 = vsel %vm2394_vm3, %v2572_v28, %v4006_v24  ;;  %v2586_v24 = vld [vmem:[#allocation2 + $0x22e] ss:$0 sm:$0xff] }
 0x68e   :  { %2800 = vmatmul.msk.f32.vlgmr.msra.gmra.mxu2 %vm146_vm13, %v2573_v48 }
 0x711   :  { %v2607_v54 = vpop.f32.mrf.mxu2 }
 0x712   :  { %v2608_v37 = vadd.f32 %v2607_v54, %v2578_v8 }
 0x714   :  { %2801 = vmatmul.msk.f32.vlgmr.msrb.gmra.mxu3 %vm2610_vm9, %v2608_v37 }
 0x797   :  { %v2631_v11 = vpop.f32.mrf.mxu3 }
 0x798   :  { %v2632_v36 = vadd.f32 %v2631_v11, %v2581_v12 }
 0x79a   :  { %v2634_v44 = vmax.f32 %v2632_v36, 0.0 }
 0x79c   :  { %2802 = vmatmul.msk.f32.vlgmr.msrb.gmra.mxu0 %vm146_vm13, %v2634_v44 }
 0x819   :  { %v2655_v0 = vpop.f32.mrf.mxu0 }
 0x81a   :  { %v2656_v50 = vadd.f32 %v2655_v0, %v2586_v24 }
 0x81c   :  { %v2803_v21 = vmul.f32 -1.442695, %v2656_v50 }
 0x81e   :  { %2973 = vpow2.f32 %v2803_v21 }
 0x824   :  { %v2974_v45 = vpop.eup %2973 }
 0x825   :  { %v2661_v1 = vadd.f32 1.0, %v2974_v45 }
 0x827   :  { %2975 = vrcp.f32 %v2661_v1  ;;  %v2673_v39 = vand.u32 2147483648, %v2661_v1  ;;  %v2671_v40 = vand.u32 2147483647, %v2661_v1  ;;  %vm2667_vm13 = vweird.f32 %v2661_v1 }
 0x829   :  { %v2674_v23 = vor.u32 1.1754944e-38, %v2673_v39  ;;  %vm2672_vm14 = vcmp.eq.f32.partialorder %v2671_v40, 8.507059e+37 }
 0x82d   :  { %v2976_v33 = vpop.eup %2975 }
 0x82e   :  { %v2663_v9 = vmul.f32 %v2976_v33, %v2661_v1  ;;  %vm2668_vm11 = vweird.f32 %v2976_v33 }
 0x82f   :  { %vm2669_vm15 = vmor %vm2667_vm13, %vm2668_vm11 }
 0x830   :  { %v2664_v18 = vsub.f32 1.0, %v2663_v9 }
 0x832   :  { %v2665_v43 = vmul.f32 %v2976_v33, %v2664_v18 }
 0x834   :  { %v2666_v7 = vadd.f32 %v2976_v33, %v2665_v43 }
 0x836   :  { %v2670_v47 = vsel %vm2669_vm15, %v2976_v33, %v2666_v7 }
 0x837   :  { %v2675_v26 = vsel %vm2672_vm14, %v2674_v23, %v2670_v47 }
 0x838   :  { %2678 = vst.msk [vmem:[#allocation5] sm:$0x3] %vm2677_vm12, %v2675_v26 }
 0x839   :  { %2689 = dma.vmem_to_hbm [thread:$0]  %s2685_s25, 32, %s2687_s28, [#allocation4]  }
 0x83a   :  { %3070 = dma.done.wait [#allocation4], 32  }
 0x83b   :  { %3071 = vsyncadd [#allocation4], 4294967264 }
 0x83c   :  { %2694 = vsyncpa [#allocation3], 1 }
 0x83d   :  { %2695 = vsyncpa [#allocation4], 1 }

</bundles_post_ra>
